<compile_context>
chip_gen: v6e
topology: v6e:2x2x1
jax: 0.10.0
libtpu: 0.0.40
codegen_flags: <defaults>
</compile_context>

<pallas_src>
import functools
import math

import jax
import jax.numpy as jnp
from jax.experimental import pallas as pl
from jax.experimental.pallas import tpu as pltpu


MXU_DTYPE = jnp.float32  # set to jnp.bfloat16 on v6e/v7x at larger C/L; epilogue stays f32


# =============================================================================
# Fused Pallas kernel: the whole ResBlock forward in one pallas_call.
# =============================================================================
def _fused_resblock_kernel(*refs, n_params, treedef):
    x_ref, sr_ref, sl_ref = refs[0], refs[1], refs[2]
    param_refs = refs[3:3 + n_params]
    o_ref = refs[3 + n_params]
    P = jax.tree_util.tree_unflatten(treedef, param_refs)

    x = x_ref[...]        # (C1, T) activation slab, batch folded into lanes
    sr = sr_ref[...]      # (T, T) shift-right matrix (block-diagonal per batch element)
    sl = sl_ref[...]      # (T, T) shift-left matrix

    def dot(a, b):
        return jnp.dot(a.astype(MXU_DTYPE), b.astype(MXU_DTYPE),
                       preferred_element_type=jnp.float32)

    def silu(v):
        return v * jax.nn.sigmoid(v)

    def conv1x1(p, v):                       # ConvO(k=1): bare conv
        return dot(p['w'][...], v)

    def conv1x1_bn_silu(p, v):               # Conv(k=1): BN folded into w, bias kept
        return silu(dot(p['w'][...], v) + p['b'][...])

    def repconv(p, v, act):                  # RepConvN folded to one 3-tap conv
        w = p['w']                           # (3, Cout, Cin), tap-major, BN-folded
        vr = dot(v, sr)                      # column l <- v[:, l-1]  (zero at seams)
        vl = dot(v, sl)                      # column l <- v[:, l+1]
        y = dot(w[0], vr) + dot(w[1], v) + dot(w[2], vl) + p['b'][...]
        return silu(y) if act else y

    def affine_silu(bn, v):                  # post-sum eval-mode BatchNorm + SiLU
        return silu(v * bn['s'][...] + bn['b'][...])

    def repnbottleneck(p, v):
        t = repconv(p['cv1'], v, act=True)
        t = repconv(p['cv2'], t, act=False)              # LastLayer -> no BN / act
        y = t + conv1x1(p['cv3'], v)
        if v.shape[0] == y.shape[0]:                     # shortcut (shortcut=True, c1==c2)
            y = y + v
        return affine_silu(p['bn'], y)

    def repncsp(p, v):
        t = conv1x1_bn_silu(p['cv1'], v)
        for mp in p['m']:
            t = repnbottleneck(mp, t)
        t2 = conv1x1_bn_silu(p['cv2'], v)
        # cv3 consumes channel-concat([t, t2]); weight pre-split -> partial matmuls
        y = dot(p['cv3']['wa'][...], t) + dot(p['cv3']['wb'][...], t2)
        y = y + conv1x1(p['cv4'], v)
        if v.shape[0] == y.shape[0]:                     # add (c1 == c2)
            y = y + v
        return affine_silu(p['bn'], y)

    def elan4(p, v):
        # cv1 output is chunk(2) along channels: weight pre-split over out-channels
        y0 = silu(dot(p['cv1']['wa'][...], v) + p['cv1']['ba'][...])
        y1 = silu(dot(p['cv1']['wb'][...], v) + p['cv1']['bb'][...])
        y2 = repconv(p['cv2'][1], repncsp(p['cv2'][0], y1), act=True)
        y3 = repconv(p['cv3'][1], repncsp(p['cv3'][0], y2), act=True)
        # cv4 consumes channel-concat([y0, y1, y2, y3]); weight pre-split
        return (dot(p['cv4']['w0'][...], y0) + dot(p['cv4']['w1'][...], y1)
                + dot(p['cv4']['w2'][...], y2) + dot(p['cv4']['w3'][...], y3))

    # ---------------- ResBlock forward (s == 1, a == False) ----------------
    if len(P['conv1']['w'].shape) == 3:      # k == 3 -> RepConvN
        y1 = repconv(P['conv1'], x, act=True)
    else:                                    # k == 1 -> Conv
        y1 = conv1x1_bn_silu(P['conv1'], x)
    y = elan4(P['elan'], y1)
    y = y + x + conv1x1(P['conv3'], y1)
    o_ref[...] = affine_silu(P['bn'], y).astype(o_ref.dtype)


def _shift_matrices(tile, L):
    idx = jnp.arange(tile)
    row, col = idx[:, None], idx[None, :]
    same = (row // L) == (col // L)          # never shift across batch-element seams
    sr = (same & (row == col - 1)).astype(jnp.float32)   # col l <- col l-1
    sl = (same & (row == col + 1)).astype(jnp.float32)   # col l <- col l+1
    return sr, sl


def resblock_fused_forward(packed, x, *, s=1):
    """x: (B, C1, L) -> (B, C2, L); the whole ResBlock in one Pallas kernel."""
    # TODO(synk): s == 2 (strided convs) not implemented in the fused kernel.
    assert s == 1, "fused kernel implements stride 1 only"
    B, C1, L = x.shape
    C2 = packed['bn']['s'].shape[0]
    BL = B * L
    # Lane tile: 128 lanes (unmasked vst) when possible; must hold whole sequences.
    tile = 128 if BL % 128 == 0 else BL
    assert tile % L == 0, "lane tile must contain whole sequences"

    x2d = jnp.transpose(x, (1, 0, 2)).reshape(C1, BL)      # batch folded into lanes
    sr, sl = _shift_matrices(tile, L)
    leaves, treedef = jax.tree_util.tree_flatten(packed)

    def _bcast_map(ndim, i):
        return (0,) * ndim

    in_specs = [
        pl.BlockSpec((C1, tile), lambda i: (0, i)),
        pl.BlockSpec((tile, tile), lambda i: (0, 0)),
        pl.BlockSpec((tile, tile), lambda i: (0, 0)),
    ] + [pl.BlockSpec(a.shape, functools.partial(_bcast_map, a.ndim)) for a in leaves]

    y2d = pl.pallas_call(
        functools.partial(_fused_resblock_kernel,
                          n_params=len(leaves), treedef=treedef),
        out_shape=jax.ShapeDtypeStruct((C2, BL), x.dtype),
        grid=(BL // tile,),
        in_specs=in_specs,
        out_specs=pl.BlockSpec((C2, tile), lambda i: (0, i)),
        compiler_params=pltpu.CompilerParams(
            dimension_semantics=("parallel",),   # independent lane tiles -> both TCs on v7x
        ),
    )(x2d, sr, sl, *leaves)

    return jnp.transpose(y2d.reshape(C2, B, L), (1, 0, 2))


# =============================================================================
# Parameter init (PyTorch-like), host-side BN / RepVGG folding, JAX reference.
# =============================================================================
class KeyGen:
    def __init__(self, key):
        self._key = key

    def __call__(self):
        self._key, sub = jax.random.split(self._key)
        return sub


def _conv_w(key, cout, cin, k):
    # PyTorch Conv1d default init: U(-1/sqrt(fan_in), 1/sqrt(fan_in)), bias=False.
    bound = 1.0 / math.sqrt(cin * k)
    return jax.random.uniform(key, (cout, cin, k), jnp.float32, -bound, bound)


def _bn_default(c, eps=1e-5):
    # Eval-mode BatchNorm1d, default params/stats, folded to y = x*scale + bias.
    scale = jnp.full((c,), 1.0 / math.sqrt(1.0 + eps), jnp.float32)
    bias = jnp.zeros((c,), jnp.float32)
    return scale, bias


def init_convo(kg, c1, c2, k):
    return {'w': _conv_w(kg(), c2, c1, k)}


def init_conv(kg, c1, c2, k):
    return {'w': _conv_w(kg(), c2, c1, k), 'bn': _bn_default(c2)}


def init_repconvn(kg, c1, c2, bn=False, last=False):
    return {'conv1': init_convo(kg, c1, c2, 3),   # 3-tap branch (pad 1)
            'conv2': init_convo(kg, c1, c2, 1),   # 1-tap branch (pad 0)
            'bn': _bn_default(c2),
            'bn_flag': bool(bn and c1 == c2),
            'last': bool(last)}


def init_repnbottleneck(kg, c1, c2, shortcut=True, e=0.5):
    c_ = int(c2 * e)
    return {'cv1': init_repconvn(kg, c1, c_, bn=True),
            'cv2': init_repconvn(kg, c_, c2, bn=True, last=True),
            'cv3': init_convo(kg, c1, c2, 1),
            'add': bool(shortcut and c1 == c2),
            'bn': _bn_default(c2)}


def init_repncsp(kg, c1, c2, n=1, shortcut=True, e=0.5):
    c_ = int(c2 * e)
    return {'cv1': init_conv(kg, c1, c_, 1),
            'cv2': init_conv(kg, c1, c_, 1),
            'cv3': init_convo(kg, 2 * c_, c2, 1),
            'cv4': init_convo(kg, c1, c2, 1),
            'm': [init_repnbottleneck(kg, c_, c_, shortcut, e=1.0) for _ in range(n)],
            'add': bool(c1 == c2),
            'bn': _bn_default(c2)}


def init_elan4(kg, c1, c2, c3, c4, c5=1):
    return {'cv1': init_conv(kg, c1, c3, 1),
            'cv2': [init_repncsp(kg, c3 // 2, c4, c5), init_repconvn(kg, c4, c4, bn=True)],
            'cv3': [init_repncsp(kg, c4, c4, c5), init_repconvn(kg, c4, c4, bn=True)],
            'cv4': init_convo(kg, c3 + 2 * c4, c2, 1)}


def init_resblock(kg, c1, c2, k, s, e, n, a=False):
    # TODO(synk): a=True path (ChannelAttention / SpatialAttention) not implemented.
    c = int(c1 * e)
    p = {'c': c, 's': s, 'a': a, 'k': k}
    p['conv1'] = init_repconvn(kg, c1, c) if k == 3 else init_conv(kg, c1, c, k)
    p['conv2'] = init_convo(kg, c1, c2, 1)        # only used on the s == 2 path
    p['conv3'] = init_convo(kg, c, c2, 1)
    p['elan'] = init_elan4(kg, c, c2, c, c // 2, n)
    p['bn'] = _bn_default(c2)
    return p


# ---------------- host-side folding / packing for the fused kernel ----------------
def _pack_conv1x1(p):
    return {'w': p['w'][:, :, 0]}


def _pack_conv_bn_silu(p):
    s, b = p['bn']
    return {'w': p['w'][:, :, 0] * s[:, None], 'b': b[:, None]}


def _pack_repconv(p):
    # RepVGG fold: 1-tap branch and (optional) identity hit the centre tap of the
    # 3-tap branch; post-sum eval BN scale folded into the weight (unless LastLayer).
    w = jnp.transpose(p['conv1']['w'], (2, 0, 1))            # (3, Cout, Cin)
    w = w.at[1].add(p['conv2']['w'][:, :, 0])
    cout = w.shape[1]
    if p['bn_flag']:
        w = w.at[1].add(jnp.eye(cout, dtype=jnp.float32))
    if p['last']:
        return {'w': w, 'b': jnp.zeros((cout, 1), jnp.float32)}
    s, b = p['bn']
    return {'w': w * s[None, :, None], 'b': b[:, None]}


def _pack_affine(bn):
    s, b = bn
    return {'s': s[:, None], 'b': b[:, None]}


def _pack_repnbottleneck(p):
    return {'cv1': _pack_repconv(p['cv1']), 'cv2': _pack_repconv(p['cv2']),
            'cv3': _pack_conv1x1(p['cv3']), 'bn': _pack_affine(p['bn'])}


def _pack_repncsp(p):
    c_ = p['cv1']['w'].shape[0]
    w3 = p['cv3']['w'][:, :, 0]
    return {'cv1': _pack_conv_bn_silu(p['cv1']),
            'cv2': _pack_conv_bn_silu(p['cv2']),
            'cv3': {'wa': w3[:, :c_], 'wb': w3[:, c_:]},      # split over the channel concat
            'cv4': _pack_conv1x1(p['cv4']),
            'm': [_pack_repnbottleneck(mp) for mp in p['m']],
            'bn': _pack_affine(p['bn'])}


def _pack_elan4(p):
    cv1 = _pack_conv_bn_silu(p['cv1'])
    c3 = cv1['w'].shape[0]
    h = c3 // 2
    c4 = p['cv2'][0]['cv3']['w'].shape[0]
    w4 = p['cv4']['w'][:, :, 0]
    return {'cv1': {'wa': cv1['w'][:h], 'ba': cv1['b'][:h],   # chunk(2) via out-ch split
                    'wb': cv1['w'][h:], 'bb': cv1['b'][h:]},
            'cv2': [_pack_repncsp(p['cv2'][0]), _pack_repconv(p['cv2'][1])],
            'cv3': [_pack_repncsp(p['cv3'][0]), _pack_repconv(p['cv3'][1])],
            'cv4': {'w0': w4[:, :h], 'w1': w4[:, h:2 * h],
                    'w2': w4[:, 2 * h:2 * h + c4], 'w3': w4[:, 2 * h + c4:2 * h + 2 * c4]}}


def pack_resblock(p):
    # TODO(synk): fused path supports k in {1, 3} and stride 1 only.
    assert p['k'] in (1, 3)
    conv1 = _pack_repconv(p['conv1']) if p['k'] == 3 else _pack_conv_bn_silu(p['conv1'])
    return {'conv1': conv1,
            'conv3': _pack_conv1x1(p['conv3']),
            'elan': _pack_elan4(p['elan']),
            'bn': _pack_affine(p['bn'])}


# ---------------- pure-JAX / XLA reference of the PyTorch forward ----------------
def _conv1d(x, w, stride=1, pad=0):
    return jax.lax.conv_general_dilated(
        x, w, window_strides=(stride,), padding=[(pad, pad)],
        dimension_numbers=('NCH', 'OIH', 'NCH'),
        precision=jax.lax.Precision.HIGHEST)


def _bn(bn, x):
    s, b = bn
    return x * s[None, :, None] + b[None, :, None]


def _silu(x):
    return x * jax.nn.sigmoid(x)


def ref_repconvn(p, x, s=1):
    y = _conv1d(x, p['conv1']['w'], s, 1) + _conv1d(x, p['conv2']['w'], s, 0)
    if p['bn_flag']:
        y = y + x
    return y if p['last'] else _silu(_bn(p['bn'], y))


def ref_conv(p, x, s=1):
    k = p['w'].shape[2]
    return _silu(_bn(p['bn'], _conv1d(x, p['w'], s, k // 2)))


def ref_repnbottleneck(p, x):
    y = ref_repconvn(p['cv2'], ref_repconvn(p['cv1'], x)) + _conv1d(x, p['cv3']['w'])
    if p['add']:
        y = x + y
    return _silu(_bn(p['bn'], y))


def ref_repncsp(p, x):
    t = ref_conv(p['cv1'], x)
    for mp in p['m']:
        t = ref_repnbottleneck(mp, t)
    y = _conv1d(jnp.concatenate([t, ref_conv(p['cv2'], x)], axis=1), p['cv3']['w'])
    y = y + _conv1d(x, p['cv4']['w'])
    if p['add']:
        y = y + x
    return _silu(_bn(p['bn'], y))


def ref_elan4(p, x):
    t = ref_conv(p['cv1'], x)
    h = t.shape[1] // 2
    y = [t[:, :h], t[:, h:]]
    for csp, rep in (p['cv2'], p['cv3']):
        y.append(ref_repconvn(rep, ref_repncsp(csp, y[-1])))
    return _conv1d(jnp.concatenate(y, axis=1), p['cv4']['w'])


def ref_resblock(p, x):
    s = p['s']
    y1 = ref_repconvn(p['conv1'], x, s) if p['k'] == 3 else ref_conv(p['conv1'], x, s)
    y = ref_elan4(p['elan'], y1)
    y3 = _conv1d(y1, p['conv3']['w'])
    if s == 2:
        y = y + _conv1d(x, p['conv2']['w'], s) + y3
    else:
        y = y + x + y3
    return _silu(_bn(p['bn'], y))


# =============================================================================
if __name__ == "__main__":
    B, C1, C2, L = 2, 16, 16, 64
    k, s, e, n = 3, 1, 0.5, 1

    kg = KeyGen(jax.random.PRNGKey(0))
    raw = init_resblock(kg, C1, C2, k, s, e, n, a=False)
    x = jax.random.normal(kg(), (B, C1, L), jnp.float32)

    packed = pack_resblock(raw)
    fused = jax.jit(lambda inp: resblock_fused_forward(packed, inp, s=s))
    out = jax.block_until_ready(fused(x))

    assert out.shape == (B, C2, L), out.shape
    assert bool(jnp.all(jnp.isfinite(out)))

    # Verify the fused Pallas kernel against the pure-JAX/XLA reference forward.
    ref = jax.block_until_ready(jax.jit(lambda inp: ref_resblock(raw, inp))(x))
    assert bool(jnp.allclose(out, ref, rtol=2e-2, atol=2e-2)), \
        float(jnp.max(jnp.abs(out - ref)))

    print("KERNEL_OK")
</pallas_src>

<mosaic_0001>
module attributes {stable_mosaic.version = 11 : i64} {
  func.func @_fused_resblock_kernel(%arg0: i32, %arg1: memref<16x128xf32, #tpu.memory_space<vmem>>, %arg2: memref<128x128xf32, #tpu.memory_space<vmem>>, %arg3: memref<128x128xf32, #tpu.memory_space<vmem>>, %arg4: memref<16x1xf32, #tpu.memory_space<vmem>>, %arg5: memref<16x1xf32, #tpu.memory_space<vmem>>, %arg6: memref<8x1xf32, #tpu.memory_space<vmem>>, %arg7: memref<3x8x16xf32, #tpu.memory_space<vmem>>, %arg8: memref<16x8xf32, #tpu.memory_space<vmem>>, %arg9: memref<4x1xf32, #tpu.memory_space<vmem>>, %arg10: memref<4x1xf32, #tpu.memory_space<vmem>>, %arg11: memref<4x8xf32, #tpu.memory_space<vmem>>, %arg12: memref<4x8xf32, #tpu.memory_space<vmem>>, %arg13: memref<4x1xf32, #tpu.memory_space<vmem>>, %arg14: memref<4x1xf32, #tpu.memory_space<vmem>>, %arg15: memref<2x1xf32, #tpu.memory_space<vmem>>, %arg16: memref<2x4xf32, #tpu.memory_space<vmem>>, %arg17: memref<2x1xf32, #tpu.memory_space<vmem>>, %arg18: memref<2x4xf32, #tpu.memory_space<vmem>>, %arg19: memref<4x2xf32, #tpu.memory_space<vmem>>, %arg20: memref<4x2xf32, #tpu.memory_space<vmem>>, %arg21: memref<4x4xf32, #tpu.memory_space<vmem>>, %arg22: memref<2x1xf32, #tpu.memory_space<vmem>>, %arg23: memref<2x1xf32, #tpu.memory_space<vmem>>, %arg24: memref<2x1xf32, #tpu.memory_space<vmem>>, %arg25: memref<3x2x2xf32, #tpu.memory_space<vmem>>, %arg26: memref<2x1xf32, #tpu.memory_space<vmem>>, %arg27: memref<3x2x2xf32, #tpu.memory_space<vmem>>, %arg28: memref<2x2xf32, #tpu.memory_space<vmem>>, %arg29: memref<4x1xf32, #tpu.memory_space<vmem>>, %arg30: memref<3x4x4xf32, #tpu.memory_space<vmem>>, %arg31: memref<4x1xf32, #tpu.memory_space<vmem>>, %arg32: memref<4x1xf32, #tpu.memory_space<vmem>>, %arg33: memref<2x1xf32, #tpu.memory_space<vmem>>, %arg34: memref<2x4xf32, #tpu.memory_space<vmem>>, %arg35: memref<2x1xf32, #tpu.memory_space<vmem>>, %arg36: memref<2x4xf32, #tpu.memory_space<vmem>>, %arg37: memref<4x2xf32, #tpu.memory_space<vmem>>, %arg38: memref<4x2xf32, #tpu.memory_space<vmem>>, %arg39: memref<4x4xf32, #tpu.memory_space<vmem>>, %arg40: memref<2x1xf32, #tpu.memory_space<vmem>>, %arg41: memref<2x1xf32, #tpu.memory_space<vmem>>, %arg42: memref<2x1xf32, #tpu.memory_space<vmem>>, %arg43: memref<3x2x2xf32, #tpu.memory_space<vmem>>, %arg44: memref<2x1xf32, #tpu.memory_space<vmem>>, %arg45: memref<3x2x2xf32, #tpu.memory_space<vmem>>, %arg46: memref<2x2xf32, #tpu.memory_space<vmem>>, %arg47: memref<4x1xf32, #tpu.memory_space<vmem>>, %arg48: memref<3x4x4xf32, #tpu.memory_space<vmem>>, %arg49: memref<16x4xf32, #tpu.memory_space<vmem>>, %arg50: memref<16x4xf32, #tpu.memory_space<vmem>>, %arg51: memref<16x4xf32, #tpu.memory_space<vmem>>, %arg52: memref<16x4xf32, #tpu.memory_space<vmem>>, %arg53: memref<16x128xf32, #tpu.memory_space<vmem>>) attributes {dimension_semantics = [#tpu.dimension_semantics<parallel>], iteration_bounds = array<i64: 1>, scalar_prefetch = 0 : i64, scratch_operands = 0 : i64, tpu.core_type = #tpu.core_type<tc>, window_params = [{transform_indices = @transform_0, window_bounds = array<i64: 16, 128>}, {pipeline_mode = #tpu.pipeline_mode<synchronous>, transform_indices = @transform_1, window_bounds = array<i64: 128, 128>}, {pipeline_mode = #tpu.pipeline_mode<synchronous>, transform_indices = @transform_2, window_bounds = array<i64: 128, 128>}, {pipeline_mode = #tpu.pipeline_mode<synchronous>, transform_indices = @transform_3, window_bounds = array<i64: 16, 1>}, {pipeline_mode = #tpu.pipeline_mode<synchronous>, transform_indices = @transform_4, window_bounds = array<i64: 16, 1>}, {pipeline_mode = #tpu.pipeline_mode<synchronous>, transform_indices = @transform_5, window_bounds = array<i64: 8, 1>}, {pipeline_mode = #tpu.pipeline_mode<synchronous>, transform_indices = @transform_6, window_bounds = array<i64: 3, 8, 16>}, {pipeline_mode = #tpu.pipeline_mode<synchronous>, transform_indices = @transform_7, window_bounds = array<i64: 16, 8>}, {pipeline_mode = #tpu.pipeline_mode<synchronous>, transform_indices = @transform_8, window_bounds = array<i64: 4, 1>}, {pipeline_mode = #tpu.pipeline_mode<synchronous>, transform_indices = @transform_9, window_bounds = array<i64: 4, 1>}, {pipeline_mode = #tpu.pipeline_mode<synchronous>, transform_indices = @transform_10, window_bounds = array<i64: 4, 8>}, {pipeline_mode = #tpu.pipeline_mode<synchronous>, transform_indices = @transform_11, window_bounds = array<i64: 4, 8>}, {pipeline_mode = #tpu.pipeline_mode<synchronous>, transform_indices = @transform_12, window_bounds = array<i64: 4, 1>}, {pipeline_mode = #tpu.pipeline_mode<synchronous>, transform_indices = @transform_13, window_bounds = array<i64: 4, 1>}, {pipeline_mode = #tpu.pipeline_mode<synchronous>, transform_indices = @transform_14, window_bounds = array<i64: 2, 1>}, {pipeline_mode = #tpu.pipeline_mode<synchronous>, transform_indices = @transform_15, window_bounds = array<i64: 2, 4>}, {pipeline_mode = #tpu.pipeline_mode<synchronous>, transform_indices = @transform_16, window_bounds = array<i64: 2, 1>}, {pipeline_mode = #tpu.pipeline_mode<synchronous>, transform_indices = @transform_17, window_bounds = array<i64: 2, 4>}, {pipeline_mode = #tpu.pipeline_mode<synchronous>, transform_indices = @transform_18, window_bounds = array<i64: 4, 2>}, {pipeline_mode = #tpu.pipeline_mode<synchronous>, transform_indices = @transform_19, window_bounds = array<i64: 4, 2>}, {pipeline_mode = #tpu.pipeline_mode<synchronous>, transform_indices = @transform_20, window_bounds = array<i64: 4, 4>}, {pipeline_mode = #tpu.pipeline_mode<synchronous>, transform_indices = @transform_21, window_bounds = array<i64: 2, 1>}, {pipeline_mode = #tpu.pipeline_mode<synchronous>, transform_indices = @transform_22, window_bounds = array<i64: 2, 1>}, {pipeline_mode = #tpu.pipeline_mode<synchronous>, transform_indices = @transform_23, window_bounds = array<i64: 2, 1>}, {pipeline_mode = #tpu.pipeline_mode<synchronous>, transform_indices = @transform_24, window_bounds = array<i64: 3, 2, 2>}, {pipeline_mode = #tpu.pipeline_mode<synchronous>, transform_indices = @transform_25, window_bounds = array<i64: 2, 1>}, {pipeline_mode = #tpu.pipeline_mode<synchronous>, transform_indices = @transform_26, window_bounds = array<i64: 3, 2, 2>}, {pipeline_mode = #tpu.pipeline_mode<synchronous>, transform_indices = @transform_27, window_bounds = array<i64: 2, 2>}, {pipeline_mode = #tpu.pipeline_mode<synchronous>, transform_indices = @transform_28, window_bounds = array<i64: 4, 1>}, {pipeline_mode = #tpu.pipeline_mode<synchronous>, transform_indices = @transform_29, window_bounds = array<i64: 3, 4, 4>}, {pipeline_mode = #tpu.pipeline_mode<synchronous>, transform_indices = @transform_30, window_bounds = array<i64: 4, 1>}, {pipeline_mode = #tpu.pipeline_mode<synchronous>, transform_indices = @transform_31, window_bounds = array<i64: 4, 1>}, {pipeline_mode = #tpu.pipeline_mode<synchronous>, transform_indices = @transform_32, window_bounds = array<i64: 2, 1>}, {pipeline_mode = #tpu.pipeline_mode<synchronous>, transform_indices = @transform_33, window_bounds = array<i64: 2, 4>}, {pipeline_mode = #tpu.pipeline_mode<synchronous>, transform_indices = @transform_34, window_bounds = array<i64: 2, 1>}, {pipeline_mode = #tpu.pipeline_mode<synchronous>, transform_indices = @transform_35, window_bounds = array<i64: 2, 4>}, {pipeline_mode = #tpu.pipeline_mode<synchronous>, transform_indices = @transform_36, window_bounds = array<i64: 4, 2>}, {pipeline_mode = #tpu.pipeline_mode<synchronous>, transform_indices = @transform_37, window_bounds = array<i64: 4, 2>}, {pipeline_mode = #tpu.pipeline_mode<synchronous>, transform_indices = @transform_38, window_bounds = array<i64: 4, 4>}, {pipeline_mode = #tpu.pipeline_mode<synchronous>, transform_indices = @transform_39, window_bounds = array<i64: 2, 1>}, {pipeline_mode = #tpu.pipeline_mode<synchronous>, transform_indices = @transform_40, window_bounds = array<i64: 2, 1>}, {pipeline_mode = #tpu.pipeline_mode<synchronous>, transform_indices = @transform_41, window_bounds = array<i64: 2, 1>}, {pipeline_mode = #tpu.pipeline_mode<synchronous>, transform_indices = @transform_42, window_bounds = array<i64: 3, 2, 2>}, {pipeline_mode = #tpu.pipeline_mode<synchronous>, transform_indices = @transform_43, window_bounds = array<i64: 2, 1>}, {pipeline_mode = #tpu.pipeline_mode<synchronous>, transform_indices = @transform_44, window_bounds = array<i64: 3, 2, 2>}, {pipeline_mode = #tpu.pipeline_mode<synchronous>, transform_indices = @transform_45, window_bounds = array<i64: 2, 2>}, {pipeline_mode = #tpu.pipeline_mode<synchronous>, transform_indices = @transform_46, window_bounds = array<i64: 4, 1>}, {pipeline_mode = #tpu.pipeline_mode<synchronous>, transform_indices = @transform_47, window_bounds = array<i64: 3, 4, 4>}, {pipeline_mode = #tpu.pipeline_mode<synchronous>, transform_indices = @transform_48, window_bounds = array<i64: 16, 4>}, {pipeline_mode = #tpu.pipeline_mode<synchronous>, transform_indices = @transform_49, window_bounds = array<i64: 16, 4>}, {pipeline_mode = #tpu.pipeline_mode<synchronous>, transform_indices = @transform_50, window_bounds = array<i64: 16, 4>}, {pipeline_mode = #tpu.pipeline_mode<synchronous>, transform_indices = @transform_51, window_bounds = array<i64: 16, 4>}, {transform_indices = @transform_52, window_bounds = array<i64: 16, 128>}]} {
    %c0 = arith.constant 0 : index
    %c0_0 = arith.constant 0 : index
    %0 = vector.load %arg1[%c0, %c0_0] : memref<16x128xf32, #tpu.memory_space<vmem>>, vector<16x128xf32>
    %c0_1 = arith.constant 0 : index
    %c0_2 = arith.constant 0 : index
    %1 = vector.load %arg2[%c0_1, %c0_2] : memref<128x128xf32, #tpu.memory_space<vmem>>, vector<128x128xf32>
    %c0_3 = arith.constant 0 : index
    %c0_4 = arith.constant 0 : index
    %2 = vector.load %arg3[%c0_3, %c0_4] : memref<128x128xf32, #tpu.memory_space<vmem>>, vector<128x128xf32>
    %cst = arith.constant dense<0.000000e+00> : vector<16x128xf32>
    %3 = tpu.matmul %0, %1, %cst {dimension_numbers = #tpu.dot_dimension_numbers<[1], [0], [0], [1], [0, 0, 1, 1], [], []>} : vector<16x128xf32>, vector<128x128xf32>, vector<16x128xf32> -> vector<16x128xf32>
    %cst_5 = arith.constant dense<0.000000e+00> : vector<16x128xf32>
    %4 = tpu.matmul %0, %2, %cst_5 {dimension_numbers = #tpu.dot_dimension_numbers<[1], [0], [0], [1], [0, 0, 1, 1], [], []>} : vector<16x128xf32>, vector<128x128xf32>, vector<16x128xf32> -> vector<16x128xf32>
    %c0_6 = arith.constant 0 : index
    %c0_7 = arith.constant 0 : index
    %c0_8 = arith.constant 0 : index
    %5 = vector.load %arg7[%c0_6, %c0_7, %c0_8] : memref<3x8x16xf32, #tpu.memory_space<vmem>>, vector<1x8x16xf32>
    %6 = vector.shape_cast %5 : vector<1x8x16xf32> to vector<8x16xf32>
    %cst_9 = arith.constant dense<0.000000e+00> : vector<8x128xf32>
    %7 = tpu.matmul %6, %3, %cst_9 {dimension_numbers = #tpu.dot_dimension_numbers<[1], [0], [0], [1], [0, 0, 1, 1], [], []>} : vector<8x16xf32>, vector<16x128xf32>, vector<8x128xf32> -> vector<8x128xf32>
    %c1 = arith.constant 1 : index
    %c0_10 = arith.constant 0 : index
    %c0_11 = arith.constant 0 : index
    %8 = vector.load %arg7[%c1, %c0_10, %c0_11] : memref<3x8x16xf32, #tpu.memory_space<vmem>>, vector<1x8x16xf32>
    %9 = vector.shape_cast %8 : vector<1x8x16xf32> to vector<8x16xf32>
    %cst_12 = arith.constant dense<0.000000e+00> : vector<8x128xf32>
    %10 = tpu.matmul %9, %0, %cst_12 {dimension_numbers = #tpu.dot_dimension_numbers<[1], [0], [0], [1], [0, 0, 1, 1], [], []>} : vector<8x16xf32>, vector<16x128xf32>, vector<8x128xf32> -> vector<8x128xf32>
    %11 = arith.addf %7, %10 : vector<8x128xf32>
    %c2 = arith.constant 2 : index
    %c0_13 = arith.constant 0 : index
    %c0_14 = arith.constant 0 : index
    %12 = vector.load %arg7[%c2, %c0_13, %c0_14] : memref<3x8x16xf32, #tpu.memory_space<vmem>>, vector<1x8x16xf32>
    %13 = vector.shape_cast %12 : vector<1x8x16xf32> to vector<8x16xf32>
    %cst_15 = arith.constant dense<0.000000e+00> : vector<8x128xf32>
    %14 = tpu.matmul %13, %4, %cst_15 {dimension_numbers = #tpu.dot_dimension_numbers<[1], [0], [0], [1], [0, 0, 1, 1], [], []>} : vector<8x16xf32>, vector<16x128xf32>, vector<8x128xf32> -> vector<8x128xf32>
    %15 = arith.addf %11, %14 : vector<8x128xf32>
    %c0_16 = arith.constant 0 : index
    %c0_17 = arith.constant 0 : index
    %16 = vector.load %arg6[%c0_16, %c0_17] : memref<8x1xf32, #tpu.memory_space<vmem>>, vector<8x1xf32>
    %17 = vector.broadcast %16 : vector<8x1xf32> to vector<8x128xf32>
    %18 = arith.addf %15, %17 : vector<8x128xf32>
    %19 = arith.negf %18 : vector<8x128xf32>
    %20 = math.exp %19 : vector<8x128xf32>
    %cst_18 = arith.constant 1.000000e+00 : f32
    %21 = vector.broadcast %cst_18 : f32 to vector<8x128xf32>
    %22 = arith.addf %21, %20 : vector<8x128xf32>
    %23 = arith.divf %21, %22 : vector<8x128xf32>
    %24 = arith.mulf %18, %23 : vector<8x128xf32>
    %c0_19 = arith.constant 0 : index
    %c0_20 = arith.constant 0 : index
    %25 = vector.load %arg11[%c0_19, %c0_20] : memref<4x8xf32, #tpu.memory_space<vmem>>, vector<4x8xf32>
    %cst_21 = arith.constant dense<0.000000e+00> : vector<4x128xf32>
    %26 = tpu.matmul %25, %24, %cst_21 {dimension_numbers = #tpu.dot_dimension_numbers<[1], [0], [0], [1], [0, 0, 1, 1], [], []>} : vector<4x8xf32>, vector<8x128xf32>, vector<4x128xf32> -> vector<4x128xf32>
    %c0_22 = arith.constant 0 : index
    %c0_23 = arith.constant 0 : index
    %27 = vector.load %arg9[%c0_22, %c0_23] : memref<4x1xf32, #tpu.memory_space<vmem>>, vector<4x1xf32>
    %28 = vector.broadcast %27 : vector<4x1xf32> to vector<4x128xf32>
    %29 = arith.addf %26, %28 : vector<4x128xf32>
    %30 = arith.negf %29 : vector<4x128xf32>
    %31 = math.exp %30 : vector<4x128xf32>
    %cst_24 = arith.constant 1.000000e+00 : f32
    %32 = vector.broadcast %cst_24 : f32 to vector<4x128xf32>
    %33 = arith.addf %32, %31 : vector<4x128xf32>
    %34 = arith.divf %32, %33 : vector<4x128xf32>
    %35 = arith.mulf %29, %34 : vector<4x128xf32>
    %c0_25 = arith.constant 0 : index
    %c0_26 = arith.constant 0 : index
    %36 = vector.load %arg12[%c0_25, %c0_26] : memref<4x8xf32, #tpu.memory_space<vmem>>, vector<4x8xf32>
    %cst_27 = arith.constant dense<0.000000e+00> : vector<4x128xf32>
    %37 = tpu.matmul %36, %24, %cst_27 {dimension_numbers = #tpu.dot_dimension_numbers<[1], [0], [0], [1], [0, 0, 1, 1], [], []>} : vector<4x8xf32>, vector<8x128xf32>, vector<4x128xf32> -> vector<4x128xf32>
    %c0_28 = arith.constant 0 : index
    %c0_29 = arith.constant 0 : index
    %38 = vector.load %arg10[%c0_28, %c0_29] : memref<4x1xf32, #tpu.memory_space<vmem>>, vector<4x1xf32>
    %39 = vector.broadcast %38 : vector<4x1xf32> to vector<4x128xf32>
    %40 = arith.addf %37, %39 : vector<4x128xf32>
    %41 = arith.negf %40 : vector<4x128xf32>
    %42 = math.exp %41 : vector<4x128xf32>
    %cst_30 = arith.constant 1.000000e+00 : f32
    %43 = vector.broadcast %cst_30 : f32 to vector<4x128xf32>
    %44 = arith.addf %43, %42 : vector<4x128xf32>
    %45 = arith.divf %43, %44 : vector<4x128xf32>
    %46 = arith.mulf %40, %45 : vector<4x128xf32>
    %c0_31 = arith.constant 0 : index
    %c0_32 = arith.constant 0 : index
    %47 = vector.load %arg16[%c0_31, %c0_32] : memref<2x4xf32, #tpu.memory_space<vmem>>, vector<2x4xf32>
    %cst_33 = arith.constant dense<0.000000e+00> : vector<2x128xf32>
    %48 = tpu.matmul %47, %46, %cst_33 {dimension_numbers = #tpu.dot_dimension_numbers<[1], [0], [0], [1], [0, 0, 1, 1], [], []>} : vector<2x4xf32>, vector<4x128xf32>, vector<2x128xf32> -> vector<2x128xf32>
    %c0_34 = arith.constant 0 : index
    %c0_35 = arith.constant 0 : index
    %49 = vector.load %arg15[%c0_34, %c0_35] : memref<2x1xf32, #tpu.memory_space<vmem>>, vector<2x1xf32>
    %50 = vector.broadcast %49 : vector<2x1xf32> to vector<2x128xf32>
    %51 = arith.addf %48, %50 : vector<2x128xf32>
    %52 = arith.negf %51 : vector<2x128xf32>
    %53 = math.exp %52 : vector<2x128xf32>
    %cst_36 = arith.constant 1.000000e+00 : f32
    %54 = vector.broadcast %cst_36 : f32 to vector<2x128xf32>
    %55 = arith.addf %54, %53 : vector<2x128xf32>
    %56 = arith.divf %54, %55 : vector<2x128xf32>
    %57 = arith.mulf %51, %56 : vector<2x128xf32>
    %cst_37 = arith.constant dense<0.000000e+00> : vector<2x128xf32>
    %58 = tpu.matmul %57, %1, %cst_37 {dimension_numbers = #tpu.dot_dimension_numbers<[1], [0], [0], [1], [0, 0, 1, 1], [], []>} : vector<2x128xf32>, vector<128x128xf32>, vector<2x128xf32> -> vector<2x128xf32>
    %cst_38 = arith.constant dense<0.000000e+00> : vector<2x128xf32>
    %59 = tpu.matmul %57, %2, %cst_38 {dimension_numbers = #tpu.dot_dimension_numbers<[1], [0], [0], [1], [0, 0, 1, 1], [], []>} : vector<2x128xf32>, vector<128x128xf32>, vector<2x128xf32> -> vector<2x128xf32>
    %c0_39 = arith.constant 0 : index
    %c0_40 = arith.constant 0 : index
    %c0_41 = arith.constant 0 : index
    %60 = vector.load %arg25[%c0_39, %c0_40, %c0_41] : memref<3x2x2xf32, #tpu.memory_space<vmem>>, vector<1x2x2xf32>
    %61 = vector.shape_cast %60 : vector<1x2x2xf32> to vector<2x2xf32>
    %cst_42 = arith.constant dense<0.000000e+00> : vector<2x128xf32>
    %62 = tpu.matmul %61, %58, %cst_42 {dimension_numbers = #tpu.dot_dimension_numbers<[1], [0], [0], [1], [0, 0, 1, 1], [], []>} : vector<2x2xf32>, vector<2x128xf32>, vector<2x128xf32> -> vector<2x128xf32>
    %c1_43 = arith.constant 1 : index
    %c0_44 = arith.constant 0 : index
    %c0_45 = arith.constant 0 : index
    %63 = vector.load %arg25[%c1_43, %c0_44, %c0_45] : memref<3x2x2xf32, #tpu.memory_space<vmem>>, vector<1x2x2xf32>
    %64 = vector.shape_cast %63 : vector<1x2x2xf32> to vector<2x2xf32>
    %cst_46 = arith.constant dense<0.000000e+00> : vector<2x128xf32>
    %65 = tpu.matmul %64, %57, %cst_46 {dimension_numbers = #tpu.dot_dimension_numbers<[1], [0], [0], [1], [0, 0, 1, 1], [], []>} : vector<2x2xf32>, vector<2x128xf32>, vector<2x128xf32> -> vector<2x128xf32>
    %66 = arith.addf %62, %65 : vector<2x128xf32>
    %c2_47 = arith.constant 2 : index
    %c0_48 = arith.constant 0 : index
    %c0_49 = arith.constant 0 : index
    %67 = vector.load %arg25[%c2_47, %c0_48, %c0_49] : memref<3x2x2xf32, #tpu.memory_space<vmem>>, vector<1x2x2xf32>
    %68 = vector.shape_cast %67 : vector<1x2x2xf32> to vector<2x2xf32>
    %cst_50 = arith.constant dense<0.000000e+00> : vector<2x128xf32>
    %69 = tpu.matmul %68, %59, %cst_50 {dimension_numbers = #tpu.dot_dimension_numbers<[1], [0], [0], [1], [0, 0, 1, 1], [], []>} : vector<2x2xf32>, vector<2x128xf32>, vector<2x128xf32> -> vector<2x128xf32>
    %70 = arith.addf %66, %69 : vector<2x128xf32>
    %c0_51 = arith.constant 0 : index
    %c0_52 = arith.constant 0 : index
    %71 = vector.load %arg24[%c0_51, %c0_52] : memref<2x1xf32, #tpu.memory_space<vmem>>, vector<2x1xf32>
    %72 = vector.broadcast %71 : vector<2x1xf32> to vector<2x128xf32>
    %73 = arith.addf %70, %72 : vector<2x128xf32>
    %74 = arith.negf %73 : vector<2x128xf32>
    %75 = math.exp %74 : vector<2x128xf32>
    %cst_53 = arith.constant 1.000000e+00 : f32
    %76 = vector.broadcast %cst_53 : f32 to vector<2x128xf32>
    %77 = arith.addf %76, %75 : vector<2x128xf32>
    %78 = arith.divf %76, %77 : vector<2x128xf32>
    %79 = arith.mulf %73, %78 : vector<2x128xf32>
    %cst_54 = arith.constant dense<0.000000e+00> : vector<2x128xf32>
    %80 = tpu.matmul %79, %1, %cst_54 {dimension_numbers = #tpu.dot_dimension_numbers<[1], [0], [0], [1], [0, 0, 1, 1], [], []>} : vector<2x128xf32>, vector<128x128xf32>, vector<2x128xf32> -> vector<2x128xf32>
    %cst_55 = arith.constant dense<0.000000e+00> : vector<2x128xf32>
    %81 = tpu.matmul %79, %2, %cst_55 {dimension_numbers = #tpu.dot_dimension_numbers<[1], [0], [0], [1], [0, 0, 1, 1], [], []>} : vector<2x128xf32>, vector<128x128xf32>, vector<2x128xf32> -> vector<2x128xf32>
    %c0_56 = arith.constant 0 : index
    %c0_57 = arith.constant 0 : index
    %c0_58 = arith.constant 0 : index
    %82 = vector.load %arg27[%c0_56, %c0_57, %c0_58] : memref<3x2x2xf32, #tpu.memory_space<vmem>>, vector<1x2x2xf32>
    %83 = vector.shape_cast %82 : vector<1x2x2xf32> to vector<2x2xf32>
    %cst_59 = arith.constant dense<0.000000e+00> : vector<2x128xf32>
    %84 = tpu.matmul %83, %80, %cst_59 {dimension_numbers = #tpu.dot_dimension_numbers<[1], [0], [0], [1], [0, 0, 1, 1], [], []>} : vector<2x2xf32>, vector<2x128xf32>, vector<2x128xf32> -> vector<2x128xf32>
    %c1_60 = arith.constant 1 : index
    %c0_61 = arith.constant 0 : index
    %c0_62 = arith.constant 0 : index
    %85 = vector.load %arg27[%c1_60, %c0_61, %c0_62] : memref<3x2x2xf32, #tpu.memory_space<vmem>>, vector<1x2x2xf32>
    %86 = vector.shape_cast %85 : vector<1x2x2xf32> to vector<2x2xf32>
    %cst_63 = arith.constant dense<0.000000e+00> : vector<2x128xf32>
    %87 = tpu.matmul %86, %79, %cst_63 {dimension_numbers = #tpu.dot_dimension_numbers<[1], [0], [0], [1], [0, 0, 1, 1], [], []>} : vector<2x2xf32>, vector<2x128xf32>, vector<2x128xf32> -> vector<2x128xf32>
    %88 = arith.addf %84, %87 : vector<2x128xf32>
    %c2_64 = arith.constant 2 : index
    %c0_65 = arith.constant 0 : index
    %c0_66 = arith.constant 0 : index
    %89 = vector.load %arg27[%c2_64, %c0_65, %c0_66] : memref<3x2x2xf32, #tpu.memory_space<vmem>>, vector<1x2x2xf32>
    %90 = vector.shape_cast %89 : vector<1x2x2xf32> to vector<2x2xf32>
    %cst_67 = arith.constant dense<0.000000e+00> : vector<2x128xf32>
    %91 = tpu.matmul %90, %81, %cst_67 {dimension_numbers = #tpu.dot_dimension_numbers<[1], [0], [0], [1], [0, 0, 1, 1], [], []>} : vector<2x2xf32>, vector<2x128xf32>, vector<2x128xf32> -> vector<2x128xf32>
    %92 = arith.addf %88, %91 : vector<2x128xf32>
    %c0_68 = arith.constant 0 : index
    %c0_69 = arith.constant 0 : index
    %93 = vector.load %arg26[%c0_68, %c0_69] : memref<2x1xf32, #tpu.memory_space<vmem>>, vector<2x1xf32>
    %94 = vector.broadcast %93 : vector<2x1xf32> to vector<2x128xf32>
    %95 = arith.addf %92, %94 : vector<2x128xf32>
    %c0_70 = arith.constant 0 : index
    %c0_71 = arith.constant 0 : index
    %96 = vector.load %arg28[%c0_70, %c0_71] : memref<2x2xf32, #tpu.memory_space<vmem>>, vector<2x2xf32>
    %cst_72 = arith.constant dense<0.000000e+00> : vector<2x128xf32>
    %97 = tpu.matmul %96, %57, %cst_72 {dimension_numbers = #tpu.dot_dimension_numbers<[1], [0], [0], [1], [0, 0, 1, 1], [], []>} : vector<2x2xf32>, vector<2x128xf32>, vector<2x128xf32> -> vector<2x128xf32>
    %98 = arith.addf %95, %97 : vector<2x128xf32>
    %99 = arith.addf %98, %57 : vector<2x128xf32>
    %c0_73 = arith.constant 0 : index
    %c0_74 = arith.constant 0 : index
    %100 = vector.load %arg23[%c0_73, %c0_74] : memref<2x1xf32, #tpu.memory_space<vmem>>, vector<2x1xf32>
    %101 = vector.broadcast %100 : vector<2x1xf32> to vector<2x128xf32>
    %102 = arith.mulf %99, %101 : vector<2x128xf32>
    %c0_75 = arith.constant 0 : index
    %c0_76 = arith.constant 0 : index
    %103 = vector.load %arg22[%c0_75, %c0_76] : memref<2x1xf32, #tpu.memory_space<vmem>>, vector<2x1xf32>
    %104 = vector.broadcast %103 : vector<2x1xf32> to vector<2x128xf32>
    %105 = arith.addf %102, %104 : vector<2x128xf32>
    %106 = arith.negf %105 : vector<2x128xf32>
    %107 = math.exp %106 : vector<2x128xf32>
    %cst_77 = arith.constant 1.000000e+00 : f32
    %108 = vector.broadcast %cst_77 : f32 to vector<2x128xf32>
    %109 = arith.addf %108, %107 : vector<2x128xf32>
    %110 = arith.divf %108, %109 : vector<2x128xf32>
    %111 = arith.mulf %105, %110 : vector<2x128xf32>
    %c0_78 = arith.constant 0 : index
    %c0_79 = arith.constant 0 : index
    %112 = vector.load %arg18[%c0_78, %c0_79] : memref<2x4xf32, #tpu.memory_space<vmem>>, vector<2x4xf32>
    %cst_80 = arith.constant dense<0.000000e+00> : vector<2x128xf32>
    %113 = tpu.matmul %112, %46, %cst_80 {dimension_numbers = #tpu.dot_dimension_numbers<[1], [0], [0], [1], [0, 0, 1, 1], [], []>} : vector<2x4xf32>, vector<4x128xf32>, vector<2x128xf32> -> vector<2x128xf32>
    %c0_81 = arith.constant 0 : index
    %c0_82 = arith.constant 0 : index
    %114 = vector.load %arg17[%c0_81, %c0_82] : memref<2x1xf32, #tpu.memory_space<vmem>>, vector<2x1xf32>
    %115 = vector.broadcast %114 : vector<2x1xf32> to vector<2x128xf32>
    %116 = arith.addf %113, %115 : vector<2x128xf32>
    %117 = arith.negf %116 : vector<2x128xf32>
    %118 = math.exp %117 : vector<2x128xf32>
    %cst_83 = arith.constant 1.000000e+00 : f32
    %119 = vector.broadcast %cst_83 : f32 to vector<2x128xf32>
    %120 = arith.addf %119, %118 : vector<2x128xf32>
    %121 = arith.divf %119, %120 : vector<2x128xf32>
    %122 = arith.mulf %116, %121 : vector<2x128xf32>
    %c0_84 = arith.constant 0 : index
    %c0_85 = arith.constant 0 : index
    %123 = vector.load %arg19[%c0_84, %c0_85] : memref<4x2xf32, #tpu.memory_space<vmem>>, vector<4x2xf32>
    %cst_86 = arith.constant dense<0.000000e+00> : vector<4x128xf32>
    %124 = tpu.matmul %123, %111, %cst_86 {dimension_numbers = #tpu.dot_dimension_numbers<[1], [0], [0], [1], [0, 0, 1, 1], [], []>} : vector<4x2xf32>, vector<2x128xf32>, vector<4x128xf32> -> vector<4x128xf32>
    %c0_87 = arith.constant 0 : index
    %c0_88 = arith.constant 0 : index
    %125 = vector.load %arg20[%c0_87, %c0_88] : memref<4x2xf32, #tpu.memory_space<vmem>>, vector<4x2xf32>
    %cst_89 = arith.constant dense<0.000000e+00> : vector<4x128xf32>
    %126 = tpu.matmul %125, %122, %cst_89 {dimension_numbers = #tpu.dot_dimension_numbers<[1], [0], [0], [1], [0, 0, 1, 1], [], []>} : vector<4x2xf32>, vector<2x128xf32>, vector<4x128xf32> -> vector<4x128xf32>
    %127 = arith.addf %124, %126 : vector<4x128xf32>
    %c0_90 = arith.constant 0 : index
    %c0_91 = arith.constant 0 : index
    %128 = vector.load %arg21[%c0_90, %c0_91] : memref<4x4xf32, #tpu.memory_space<vmem>>, vector<4x4xf32>
    %cst_92 = arith.constant dense<0.000000e+00> : vector<4x128xf32>
    %129 = tpu.matmul %128, %46, %cst_92 {dimension_numbers = #tpu.dot_dimension_numbers<[1], [0], [0], [1], [0, 0, 1, 1], [], []>} : vector<4x4xf32>, vector<4x128xf32>, vector<4x128xf32> -> vector<4x128xf32>
    %130 = arith.addf %127, %129 : vector<4x128xf32>
    %131 = arith.addf %130, %46 : vector<4x128xf32>
    %c0_93 = arith.constant 0 : index
    %c0_94 = arith.constant 0 : index
    %132 = vector.load %arg14[%c0_93, %c0_94] : memref<4x1xf32, #tpu.memory_space<vmem>>, vector<4x1xf32>
    %133 = vector.broadcast %132 : vector<4x1xf32> to vector<4x128xf32>
    %134 = arith.mulf %131, %133 : vector<4x128xf32>
    %c0_95 = arith.constant 0 : index
    %c0_96 = arith.constant 0 : index
    %135 = vector.load %arg13[%c0_95, %c0_96] : memref<4x1xf32, #tpu.memory_space<vmem>>, vector<4x1xf32>
    %136 = vector.broadcast %135 : vector<4x1xf32> to vector<4x128xf32>
    %137 = arith.addf %134, %136 : vector<4x128xf32>
    %138 = arith.negf %137 : vector<4x128xf32>
    %139 = math.exp %138 : vector<4x128xf32>
    %cst_97 = arith.constant 1.000000e+00 : f32
    %140 = vector.broadcast %cst_97 : f32 to vector<4x128xf32>
    %141 = arith.addf %140, %139 : vector<4x128xf32>
    %142 = arith.divf %140, %141 : vector<4x128xf32>
    %143 = arith.mulf %137, %142 : vector<4x128xf32>
    %cst_98 = arith.constant dense<0.000000e+00> : vector<4x128xf32>
    %144 = tpu.matmul %143, %1, %cst_98 {dimension_numbers = #tpu.dot_dimension_numbers<[1], [0], [0], [1], [0, 0, 1, 1], [], []>} : vector<4x128xf32>, vector<128x128xf32>, vector<4x128xf32> -> vector<4x128xf32>
    %cst_99 = arith.constant dense<0.000000e+00> : vector<4x128xf32>
    %145 = tpu.matmul %143, %2, %cst_99 {dimension_numbers = #tpu.dot_dimension_numbers<[1], [0], [0], [1], [0, 0, 1, 1], [], []>} : vector<4x128xf32>, vector<128x128xf32>, vector<4x128xf32> -> vector<4x128xf32>
    %c0_100 = arith.constant 0 : index
    %c0_101 = arith.constant 0 : index
    %c0_102 = arith.constant 0 : index
    %146 = vector.load %arg30[%c0_100, %c0_101, %c0_102] : memref<3x4x4xf32, #tpu.memory_space<vmem>>, vector<1x4x4xf32>
    %147 = vector.shape_cast %146 : vector<1x4x4xf32> to vector<4x4xf32>
    %cst_103 = arith.constant dense<0.000000e+00> : vector<4x128xf32>
    %148 = tpu.matmul %147, %144, %cst_103 {dimension_numbers = #tpu.dot_dimension_numbers<[1], [0], [0], [1], [0, 0, 1, 1], [], []>} : vector<4x4xf32>, vector<4x128xf32>, vector<4x128xf32> -> vector<4x128xf32>
    %c1_104 = arith.constant 1 : index
    %c0_105 = arith.constant 0 : index
    %c0_106 = arith.constant 0 : index
    %149 = vector.load %arg30[%c1_104, %c0_105, %c0_106] : memref<3x4x4xf32, #tpu.memory_space<vmem>>, vector<1x4x4xf32>
    %150 = vector.shape_cast %149 : vector<1x4x4xf32> to vector<4x4xf32>
    %cst_107 = arith.constant dense<0.000000e+00> : vector<4x128xf32>
    %151 = tpu.matmul %150, %143, %cst_107 {dimension_numbers = #tpu.dot_dimension_numbers<[1], [0], [0], [1], [0, 0, 1, 1], [], []>} : vector<4x4xf32>, vector<4x128xf32>, vector<4x128xf32> -> vector<4x128xf32>
    %152 = arith.addf %148, %151 : vector<4x128xf32>
    %c2_108 = arith.constant 2 : index
    %c0_109 = arith.constant 0 : index
    %c0_110 = arith.constant 0 : index
    %153 = vector.load %arg30[%c2_108, %c0_109, %c0_110] : memref<3x4x4xf32, #tpu.memory_space<vmem>>, vector<1x4x4xf32>
    %154 = vector.shape_cast %153 : vector<1x4x4xf32> to vector<4x4xf32>
    %cst_111 = arith.constant dense<0.000000e+00> : vector<4x128xf32>
    %155 = tpu.matmul %154, %145, %cst_111 {dimension_numbers = #tpu.dot_dimension_numbers<[1], [0], [0], [1], [0, 0, 1, 1], [], []>} : vector<4x4xf32>, vector<4x128xf32>, vector<4x128xf32> -> vector<4x128xf32>
    %156 = arith.addf %152, %155 : vector<4x128xf32>
    %c0_112 = arith.constant 0 : index
    %c0_113 = arith.constant 0 : index
    %157 = vector.load %arg29[%c0_112, %c0_113] : memref<4x1xf32, #tpu.memory_space<vmem>>, vector<4x1xf32>
    %158 = vector.broadcast %157 : vector<4x1xf32> to vector<4x128xf32>
    %159 = arith.addf %156, %158 : vector<4x128xf32>
    %160 = arith.negf %159 : vector<4x128xf32>
    %161 = math.exp %160 : vector<4x128xf32>
    %cst_114 = arith.constant 1.000000e+00 : f32
    %162 = vector.broadcast %cst_114 : f32 to vector<4x128xf32>
    %163 = arith.addf %162, %161 : vector<4x128xf32>
    %164 = arith.divf %162, %163 : vector<4x128xf32>
    %165 = arith.mulf %159, %164 : vector<4x128xf32>
    %c0_115 = arith.constant 0 : index
    %c0_116 = arith.constant 0 : index
    %166 = vector.load %arg34[%c0_115, %c0_116] : memref<2x4xf32, #tpu.memory_space<vmem>>, vector<2x4xf32>
    %cst_117 = arith.constant dense<0.000000e+00> : vector<2x128xf32>
    %167 = tpu.matmul %166, %165, %cst_117 {dimension_numbers = #tpu.dot_dimension_numbers<[1], [0], [0], [1], [0, 0, 1, 1], [], []>} : vector<2x4xf32>, vector<4x128xf32>, vector<2x128xf32> -> vector<2x128xf32>
    %c0_118 = arith.constant 0 : index
    %c0_119 = arith.constant 0 : index
    %168 = vector.load %arg33[%c0_118, %c0_119] : memref<2x1xf32, #tpu.memory_space<vmem>>, vector<2x1xf32>
    %169 = vector.broadcast %168 : vector<2x1xf32> to vector<2x128xf32>
    %170 = arith.addf %167, %169 : vector<2x128xf32>
    %171 = arith.negf %170 : vector<2x128xf32>
    %172 = math.exp %171 : vector<2x128xf32>
    %cst_120 = arith.constant 1.000000e+00 : f32
    %173 = vector.broadcast %cst_120 : f32 to vector<2x128xf32>
    %174 = arith.addf %173, %172 : vector<2x128xf32>
    %175 = arith.divf %173, %174 : vector<2x128xf32>
    %176 = arith.mulf %170, %175 : vector<2x128xf32>
    %cst_121 = arith.constant dense<0.000000e+00> : vector<2x128xf32>
    %177 = tpu.matmul %176, %1, %cst_121 {dimension_numbers = #tpu.dot_dimension_numbers<[1], [0], [0], [1], [0, 0, 1, 1], [], []>} : vector<2x128xf32>, vector<128x128xf32>, vector<2x128xf32> -> vector<2x128xf32>
    %cst_122 = arith.constant dense<0.000000e+00> : vector<2x128xf32>
    %178 = tpu.matmul %176, %2, %cst_122 {dimension_numbers = #tpu.dot_dimension_numbers<[1], [0], [0], [1], [0, 0, 1, 1], [], []>} : vector<2x128xf32>, vector<128x128xf32>, vector<2x128xf32> -> vector<2x128xf32>
    %c0_123 = arith.constant 0 : index
    %c0_124 = arith.constant 0 : index
    %c0_125 = arith.constant 0 : index
    %179 = vector.load %arg43[%c0_123, %c0_124, %c0_125] : memref<3x2x2xf32, #tpu.memory_space<vmem>>, vector<1x2x2xf32>
    %180 = vector.shape_cast %179 : vector<1x2x2xf32> to vector<2x2xf32>
    %cst_126 = arith.constant dense<0.000000e+00> : vector<2x128xf32>
    %181 = tpu.matmul %180, %177, %cst_126 {dimension_numbers = #tpu.dot_dimension_numbers<[1], [0], [0], [1], [0, 0, 1, 1], [], []>} : vector<2x2xf32>, vector<2x128xf32>, vector<2x128xf32> -> vector<2x128xf32>
    %c1_127 = arith.constant 1 : index
    %c0_128 = arith.constant 0 : index
    %c0_129 = arith.constant 0 : index
    %182 = vector.load %arg43[%c1_127, %c0_128, %c0_129] : memref<3x2x2xf32, #tpu.memory_space<vmem>>, vector<1x2x2xf32>
    %183 = vector.shape_cast %182 : vector<1x2x2xf32> to vector<2x2xf32>
    %cst_130 = arith.constant dense<0.000000e+00> : vector<2x128xf32>
    %184 = tpu.matmul %183, %176, %cst_130 {dimension_numbers = #tpu.dot_dimension_numbers<[1], [0], [0], [1], [0, 0, 1, 1], [], []>} : vector<2x2xf32>, vector<2x128xf32>, vector<2x128xf32> -> vector<2x128xf32>
    %185 = arith.addf %181, %184 : vector<2x128xf32>
    %c2_131 = arith.constant 2 : index
    %c0_132 = arith.constant 0 : index
    %c0_133 = arith.constant 0 : index
    %186 = vector.load %arg43[%c2_131, %c0_132, %c0_133] : memref<3x2x2xf32, #tpu.memory_space<vmem>>, vector<1x2x2xf32>
    %187 = vector.shape_cast %186 : vector<1x2x2xf32> to vector<2x2xf32>
    %cst_134 = arith.constant dense<0.000000e+00> : vector<2x128xf32>
    %188 = tpu.matmul %187, %178, %cst_134 {dimension_numbers = #tpu.dot_dimension_numbers<[1], [0], [0], [1], [0, 0, 1, 1], [], []>} : vector<2x2xf32>, vector<2x128xf32>, vector<2x128xf32> -> vector<2x128xf32>
    %189 = arith.addf %185, %188 : vector<2x128xf32>
    %c0_135 = arith.constant 0 : index
    %c0_136 = arith.constant 0 : index
    %190 = vector.load %arg42[%c0_135, %c0_136] : memref<2x1xf32, #tpu.memory_space<vmem>>, vector<2x1xf32>
    %191 = vector.broadcast %190 : vector<2x1xf32> to vector<2x128xf32>
    %192 = arith.addf %189, %191 : vector<2x128xf32>
    %193 = arith.negf %192 : vector<2x128xf32>
    %194 = math.exp %193 : vector<2x128xf32>
    %cst_137 = arith.constant 1.000000e+00 : f32
    %195 = vector.broadcast %cst_137 : f32 to vector<2x128xf32>
    %196 = arith.addf %195, %194 : vector<2x128xf32>
    %197 = arith.divf %195, %196 : vector<2x128xf32>
    %198 = arith.mulf %192, %197 : vector<2x128xf32>
    %cst_138 = arith.constant dense<0.000000e+00> : vector<2x128xf32>
    %199 = tpu.matmul %198, %1, %cst_138 {dimension_numbers = #tpu.dot_dimension_numbers<[1], [0], [0], [1], [0, 0, 1, 1], [], []>} : vector<2x128xf32>, vector<128x128xf32>, vector<2x128xf32> -> vector<2x128xf32>
    %cst_139 = arith.constant dense<0.000000e+00> : vector<2x128xf32>
    %200 = tpu.matmul %198, %2, %cst_139 {dimension_numbers = #tpu.dot_dimension_numbers<[1], [0], [0], [1], [0, 0, 1, 1], [], []>} : vector<2x128xf32>, vector<128x128xf32>, vector<2x128xf32> -> vector<2x128xf32>
    %c0_140 = arith.constant 0 : index
    %c0_141 = arith.constant 0 : index
    %c0_142 = arith.constant 0 : index
    %201 = vector.load %arg45[%c0_140, %c0_141, %c0_142] : memref<3x2x2xf32, #tpu.memory_space<vmem>>, vector<1x2x2xf32>
    %202 = vector.shape_cast %201 : vector<1x2x2xf32> to vector<2x2xf32>
    %cst_143 = arith.constant dense<0.000000e+00> : vector<2x128xf32>
    %203 = tpu.matmul %202, %199, %cst_143 {dimension_numbers = #tpu.dot_dimension_numbers<[1], [0], [0], [1], [0, 0, 1, 1], [], []>} : vector<2x2xf32>, vector<2x128xf32>, vector<2x128xf32> -> vector<2x128xf32>
    %c1_144 = arith.constant 1 : index
    %c0_145 = arith.constant 0 : index
    %c0_146 = arith.constant 0 : index
    %204 = vector.load %arg45[%c1_144, %c0_145, %c0_146] : memref<3x2x2xf32, #tpu.memory_space<vmem>>, vector<1x2x2xf32>
    %205 = vector.shape_cast %204 : vector<1x2x2xf32> to vector<2x2xf32>
    %cst_147 = arith.constant dense<0.000000e+00> : vector<2x128xf32>
    %206 = tpu.matmul %205, %198, %cst_147 {dimension_numbers = #tpu.dot_dimension_numbers<[1], [0], [0], [1], [0, 0, 1, 1], [], []>} : vector<2x2xf32>, vector<2x128xf32>, vector<2x128xf32> -> vector<2x128xf32>
    %207 = arith.addf %203, %206 : vector<2x128xf32>
    %c2_148 = arith.constant 2 : index
    %c0_149 = arith.constant 0 : index
    %c0_150 = arith.constant 0 : index
    %208 = vector.load %arg45[%c2_148, %c0_149, %c0_150] : memref<3x2x2xf32, #tpu.memory_space<vmem>>, vector<1x2x2xf32>
    %209 = vector.shape_cast %208 : vector<1x2x2xf32> to vector<2x2xf32>
    %cst_151 = arith.constant dense<0.000000e+00> : vector<2x128xf32>
    %210 = tpu.matmul %209, %200, %cst_151 {dimension_numbers = #tpu.dot_dimension_numbers<[1], [0], [0], [1], [0, 0, 1, 1], [], []>} : vector<2x2xf32>, vector<2x128xf32>, vector<2x128xf32> -> vector<2x128xf32>
    %211 = arith.addf %207, %210 : vector<2x128xf32>
    %c0_152 = arith.constant 0 : index
    %c0_153 = arith.constant 0 : index
    %212 = vector.load %arg44[%c0_152, %c0_153] : memref<2x1xf32, #tpu.memory_space<vmem>>, vector<2x1xf32>
    %213 = vector.broadcast %212 : vector<2x1xf32> to vector<2x128xf32>
    %214 = arith.addf %211, %213 : vector<2x128xf32>
    %c0_154 = arith.constant 0 : index
    %c0_155 = arith.constant 0 : index
    %215 = vector.load %arg46[%c0_154, %c0_155] : memref<2x2xf32, #tpu.memory_space<vmem>>, vector<2x2xf32>
    %cst_156 = arith.constant dense<0.000000e+00> : vector<2x128xf32>
    %216 = tpu.matmul %215, %176, %cst_156 {dimension_numbers = #tpu.dot_dimension_numbers<[1], [0], [0], [1], [0, 0, 1, 1], [], []>} : vector<2x2xf32>, vector<2x128xf32>, vector<2x128xf32> -> vector<2x128xf32>
    %217 = arith.addf %214, %216 : vector<2x128xf32>
    %218 = arith.addf %217, %176 : vector<2x128xf32>
    %c0_157 = arith.constant 0 : index
    %c0_158 = arith.constant 0 : index
    %219 = vector.load %arg41[%c0_157, %c0_158] : memref<2x1xf32, #tpu.memory_space<vmem>>, vector<2x1xf32>
    %220 = vector.broadcast %219 : vector<2x1xf32> to vector<2x128xf32>
    %221 = arith.mulf %218, %220 : vector<2x128xf32>
    %c0_159 = arith.constant 0 : index
    %c0_160 = arith.constant 0 : index
    %222 = vector.load %arg40[%c0_159, %c0_160] : memref<2x1xf32, #tpu.memory_space<vmem>>, vector<2x1xf32>
    %223 = vector.broadcast %222 : vector<2x1xf32> to vector<2x128xf32>
    %224 = arith.addf %221, %223 : vector<2x128xf32>
    %225 = arith.negf %224 : vector<2x128xf32>
    %226 = math.exp %225 : vector<2x128xf32>
    %cst_161 = arith.constant 1.000000e+00 : f32
    %227 = vector.broadcast %cst_161 : f32 to vector<2x128xf32>
    %228 = arith.addf %227, %226 : vector<2x128xf32>
    %229 = arith.divf %227, %228 : vector<2x128xf32>
    %230 = arith.mulf %224, %229 : vector<2x128xf32>
    %c0_162 = arith.constant 0 : index
    %c0_163 = arith.constant 0 : index
    %231 = vector.load %arg36[%c0_162, %c0_163] : memref<2x4xf32, #tpu.memory_space<vmem>>, vector<2x4xf32>
    %cst_164 = arith.constant dense<0.000000e+00> : vector<2x128xf32>
    %232 = tpu.matmul %231, %165, %cst_164 {dimension_numbers = #tpu.dot_dimension_numbers<[1], [0], [0], [1], [0, 0, 1, 1], [], []>} : vector<2x4xf32>, vector<4x128xf32>, vector<2x128xf32> -> vector<2x128xf32>
    %c0_165 = arith.constant 0 : index
    %c0_166 = arith.constant 0 : index
    %233 = vector.load %arg35[%c0_165, %c0_166] : memref<2x1xf32, #tpu.memory_space<vmem>>, vector<2x1xf32>
    %234 = vector.broadcast %233 : vector<2x1xf32> to vector<2x128xf32>
    %235 = arith.addf %232, %234 : vector<2x128xf32>
    %236 = arith.negf %235 : vector<2x128xf32>
    %237 = math.exp %236 : vector<2x128xf32>
    %cst_167 = arith.constant 1.000000e+00 : f32
    %238 = vector.broadcast %cst_167 : f32 to vector<2x128xf32>
    %239 = arith.addf %238, %237 : vector<2x128xf32>
    %240 = arith.divf %238, %239 : vector<2x128xf32>
    %241 = arith.mulf %235, %240 : vector<2x128xf32>
    %c0_168 = arith.constant 0 : index
    %c0_169 = arith.constant 0 : index
    %242 = vector.load %arg37[%c0_168, %c0_169] : memref<4x2xf32, #tpu.memory_space<vmem>>, vector<4x2xf32>
    %cst_170 = arith.constant dense<0.000000e+00> : vector<4x128xf32>
    %243 = tpu.matmul %242, %230, %cst_170 {dimension_numbers = #tpu.dot_dimension_numbers<[1], [0], [0], [1], [0, 0, 1, 1], [], []>} : vector<4x2xf32>, vector<2x128xf32>, vector<4x128xf32> -> vector<4x128xf32>
    %c0_171 = arith.constant 0 : index
    %c0_172 = arith.constant 0 : index
    %244 = vector.load %arg38[%c0_171, %c0_172] : memref<4x2xf32, #tpu.memory_space<vmem>>, vector<4x2xf32>
    %cst_173 = arith.constant dense<0.000000e+00> : vector<4x128xf32>
    %245 = tpu.matmul %244, %241, %cst_173 {dimension_numbers = #tpu.dot_dimension_numbers<[1], [0], [0], [1], [0, 0, 1, 1], [], []>} : vector<4x2xf32>, vector<2x128xf32>, vector<4x128xf32> -> vector<4x128xf32>
    %246 = arith.addf %243, %245 : vector<4x128xf32>
    %c0_174 = arith.constant 0 : index
    %c0_175 = arith.constant 0 : index
    %247 = vector.load %arg39[%c0_174, %c0_175] : memref<4x4xf32, #tpu.memory_space<vmem>>, vector<4x4xf32>
    %cst_176 = arith.constant dense<0.000000e+00> : vector<4x128xf32>
    %248 = tpu.matmul %247, %165, %cst_176 {dimension_numbers = #tpu.dot_dimension_numbers<[1], [0], [0], [1], [0, 0, 1, 1], [], []>} : vector<4x4xf32>, vector<4x128xf32>, vector<4x128xf32> -> vector<4x128xf32>
    %249 = arith.addf %246, %248 : vector<4x128xf32>
    %250 = arith.addf %249, %165 : vector<4x128xf32>
    %c0_177 = arith.constant 0 : index
    %c0_178 = arith.constant 0 : index
    %251 = vector.load %arg32[%c0_177, %c0_178] : memref<4x1xf32, #tpu.memory_space<vmem>>, vector<4x1xf32>
    %252 = vector.broadcast %251 : vector<4x1xf32> to vector<4x128xf32>
    %253 = arith.mulf %250, %252 : vector<4x128xf32>
    %c0_179 = arith.constant 0 : index
    %c0_180 = arith.constant 0 : index
    %254 = vector.load %arg31[%c0_179, %c0_180] : memref<4x1xf32, #tpu.memory_space<vmem>>, vector<4x1xf32>
    %255 = vector.broadcast %254 : vector<4x1xf32> to vector<4x128xf32>
    %256 = arith.addf %253, %255 : vector<4x128xf32>
    %257 = arith.negf %256 : vector<4x128xf32>
    %258 = math.exp %257 : vector<4x128xf32>
    %cst_181 = arith.constant 1.000000e+00 : f32
    %259 = vector.broadcast %cst_181 : f32 to vector<4x128xf32>
    %260 = arith.addf %259, %258 : vector<4x128xf32>
    %261 = arith.divf %259, %260 : vector<4x128xf32>
    %262 = arith.mulf %256, %261 : vector<4x128xf32>
    %cst_182 = arith.constant dense<0.000000e+00> : vector<4x128xf32>
    %263 = tpu.matmul %262, %1, %cst_182 {dimension_numbers = #tpu.dot_dimension_numbers<[1], [0], [0], [1], [0, 0, 1, 1], [], []>} : vector<4x128xf32>, vector<128x128xf32>, vector<4x128xf32> -> vector<4x128xf32>
    %cst_183 = arith.constant dense<0.000000e+00> : vector<4x128xf32>
    %264 = tpu.matmul %262, %2, %cst_183 {dimension_numbers = #tpu.dot_dimension_numbers<[1], [0], [0], [1], [0, 0, 1, 1], [], []>} : vector<4x128xf32>, vector<128x128xf32>, vector<4x128xf32> -> vector<4x128xf32>
    %c0_184 = arith.constant 0 : index
    %c0_185 = arith.constant 0 : index
    %c0_186 = arith.constant 0 : index
    %265 = vector.load %arg48[%c0_184, %c0_185, %c0_186] : memref<3x4x4xf32, #tpu.memory_space<vmem>>, vector<1x4x4xf32>
    %266 = vector.shape_cast %265 : vector<1x4x4xf32> to vector<4x4xf32>
    %cst_187 = arith.constant dense<0.000000e+00> : vector<4x128xf32>
    %267 = tpu.matmul %266, %263, %cst_187 {dimension_numbers = #tpu.dot_dimension_numbers<[1], [0], [0], [1], [0, 0, 1, 1], [], []>} : vector<4x4xf32>, vector<4x128xf32>, vector<4x128xf32> -> vector<4x128xf32>
    %c1_188 = arith.constant 1 : index
    %c0_189 = arith.constant 0 : index
    %c0_190 = arith.constant 0 : index
    %268 = vector.load %arg48[%c1_188, %c0_189, %c0_190] : memref<3x4x4xf32, #tpu.memory_space<vmem>>, vector<1x4x4xf32>
    %269 = vector.shape_cast %268 : vector<1x4x4xf32> to vector<4x4xf32>
    %cst_191 = arith.constant dense<0.000000e+00> : vector<4x128xf32>
    %270 = tpu.matmul %269, %262, %cst_191 {dimension_numbers = #tpu.dot_dimension_numbers<[1], [0], [0], [1], [0, 0, 1, 1], [], []>} : vector<4x4xf32>, vector<4x128xf32>, vector<4x128xf32> -> vector<4x128xf32>
    %271 = arith.addf %267, %270 : vector<4x128xf32>
    %c2_192 = arith.constant 2 : index
    %c0_193 = arith.constant 0 : index
    %c0_194 = arith.constant 0 : index
    %272 = vector.load %arg48[%c2_192, %c0_193, %c0_194] : memref<3x4x4xf32, #tpu.memory_space<vmem>>, vector<1x4x4xf32>
    %273 = vector.shape_cast %272 : vector<1x4x4xf32> to vector<4x4xf32>
    %cst_195 = arith.constant dense<0.000000e+00> : vector<4x128xf32>
    %274 = tpu.matmul %273, %264, %cst_195 {dimension_numbers = #tpu.dot_dimension_numbers<[1], [0], [0], [1], [0, 0, 1, 1], [], []>} : vector<4x4xf32>, vector<4x128xf32>, vector<4x128xf32> -> vector<4x128xf32>
    %275 = arith.addf %271, %274 : vector<4x128xf32>
    %c0_196 = arith.constant 0 : index
    %c0_197 = arith.constant 0 : index
    %276 = vector.load %arg47[%c0_196, %c0_197] : memref<4x1xf32, #tpu.memory_space<vmem>>, vector<4x1xf32>
    %277 = vector.broadcast %276 : vector<4x1xf32> to vector<4x128xf32>
    %278 = arith.addf %275, %277 : vector<4x128xf32>
    %279 = arith.negf %278 : vector<4x128xf32>
    %280 = math.exp %279 : vector<4x128xf32>
    %cst_198 = arith.constant 1.000000e+00 : f32
    %281 = vector.broadcast %cst_198 : f32 to vector<4x128xf32>
    %282 = arith.addf %281, %280 : vector<4x128xf32>
    %283 = arith.divf %281, %282 : vector<4x128xf32>
    %284 = arith.mulf %278, %283 : vector<4x128xf32>
    %c0_199 = arith.constant 0 : index
    %c0_200 = arith.constant 0 : index
    %285 = vector.load %arg49[%c0_199, %c0_200] : memref<16x4xf32, #tpu.memory_space<vmem>>, vector<16x4xf32>
    %cst_201 = arith.constant dense<0.000000e+00> : vector<16x128xf32>
    %286 = tpu.matmul %285, %35, %cst_201 {dimension_numbers = #tpu.dot_dimension_numbers<[1], [0], [0], [1], [0, 0, 1, 1], [], []>} : vector<16x4xf32>, vector<4x128xf32>, vector<16x128xf32> -> vector<16x128xf32>
    %c0_202 = arith.constant 0 : index
    %c0_203 = arith.constant 0 : index
    %287 = vector.load %arg50[%c0_202, %c0_203] : memref<16x4xf32, #tpu.memory_space<vmem>>, vector<16x4xf32>
    %cst_204 = arith.constant dense<0.000000e+00> : vector<16x128xf32>
    %288 = tpu.matmul %287, %46, %cst_204 {dimension_numbers = #tpu.dot_dimension_numbers<[1], [0], [0], [1], [0, 0, 1, 1], [], []>} : vector<16x4xf32>, vector<4x128xf32>, vector<16x128xf32> -> vector<16x128xf32>
    %289 = arith.addf %286, %288 : vector<16x128xf32>
    %c0_205 = arith.constant 0 : index
    %c0_206 = arith.constant 0 : index
    %290 = vector.load %arg51[%c0_205, %c0_206] : memref<16x4xf32, #tpu.memory_space<vmem>>, vector<16x4xf32>
    %cst_207 = arith.constant dense<0.000000e+00> : vector<16x128xf32>
    %291 = tpu.matmul %290, %165, %cst_207 {dimension_numbers = #tpu.dot_dimension_numbers<[1], [0], [0], [1], [0, 0, 1, 1], [], []>} : vector<16x4xf32>, vector<4x128xf32>, vector<16x128xf32> -> vector<16x128xf32>
    %292 = arith.addf %289, %291 : vector<16x128xf32>
    %c0_208 = arith.constant 0 : index
    %c0_209 = arith.constant 0 : index
    %293 = vector.load %arg52[%c0_208, %c0_209] : memref<16x4xf32, #tpu.memory_space<vmem>>, vector<16x4xf32>
    %cst_210 = arith.constant dense<0.000000e+00> : vector<16x128xf32>
    %294 = tpu.matmul %293, %284, %cst_210 {dimension_numbers = #tpu.dot_dimension_numbers<[1], [0], [0], [1], [0, 0, 1, 1], [], []>} : vector<16x4xf32>, vector<4x128xf32>, vector<16x128xf32> -> vector<16x128xf32>
    %295 = arith.addf %292, %294 : vector<16x128xf32>
    %296 = arith.addf %295, %0 : vector<16x128xf32>
    %c0_211 = arith.constant 0 : index
    %c0_212 = arith.constant 0 : index
    %297 = vector.load %arg8[%c0_211, %c0_212] : memref<16x8xf32, #tpu.memory_space<vmem>>, vector<16x8xf32>
    %cst_213 = arith.constant dense<0.000000e+00> : vector<16x128xf32>
    %298 = tpu.matmul %297, %24, %cst_213 {dimension_numbers = #tpu.dot_dimension_numbers<[1], [0], [0], [1], [0, 0, 1, 1], [], []>} : vector<16x8xf32>, vector<8x128xf32>, vector<16x128xf32> -> vector<16x128xf32>
    %299 = arith.addf %296, %298 : vector<16x128xf32>
    %c0_214 = arith.constant 0 : index
    %c0_215 = arith.constant 0 : index
    %300 = vector.load %arg5[%c0_214, %c0_215] : memref<16x1xf32, #tpu.memory_space<vmem>>, vector<16x1xf32>
    %301 = vector.broadcast %300 : vector<16x1xf32> to vector<16x128xf32>
    %302 = arith.mulf %299, %301 : vector<16x128xf32>
    %c0_216 = arith.constant 0 : index
    %c0_217 = arith.constant 0 : index
    %303 = vector.load %arg4[%c0_216, %c0_217] : memref<16x1xf32, #tpu.memory_space<vmem>>, vector<16x1xf32>
    %304 = vector.broadcast %303 : vector<16x1xf32> to vector<16x128xf32>
    %305 = arith.addf %302, %304 : vector<16x128xf32>
    %306 = arith.negf %305 : vector<16x128xf32>
    %307 = math.exp %306 : vector<16x128xf32>
    %cst_218 = arith.constant 1.000000e+00 : f32
    %308 = vector.broadcast %cst_218 : f32 to vector<16x128xf32>
    %309 = arith.addf %308, %307 : vector<16x128xf32>
    %310 = arith.divf %308, %309 : vector<16x128xf32>
    %311 = arith.mulf %305, %310 : vector<16x128xf32>
    %c0_219 = arith.constant 0 : index
    %c0_220 = arith.constant 0 : index
    %312 = vector.load %arg53[%c0_219, %c0_220] : memref<16x128xf32, #tpu.memory_space<vmem>>, vector<16x128xf32>
    tpu.vector_store %arg53[%c0_219, %c0_220], %311 {strides = array<i32>} : memref<16x128xf32, #tpu.memory_space<vmem>>, vector<16x128xf32>,
    return
  }
  func.func @transform_0(%arg0: i32) -> (i32, i32) {
    %c0_i32 = arith.constant 0 : i32
    %c0_i32_0 = arith.constant 0 : i32
    return %c0_i32, %arg0 : i32, i32
  }
  func.func @transform_1(%arg0: i32) -> (i32, i32) {
    %c0_i32 = arith.constant 0 : i32
    %c0_i32_0 = arith.constant 0 : i32
    %c0_i32_1 = arith.constant 0 : i32
    return %c0_i32, %c0_i32_0 : i32, i32
  }
  func.func @transform_2(%arg0: i32) -> (i32, i32) {
    %c0_i32 = arith.constant 0 : i32
    %c0_i32_0 = arith.constant 0 : i32
    %c0_i32_1 = arith.constant 0 : i32
    return %c0_i32, %c0_i32_0 : i32, i32
  }
  func.func @transform_3(%arg0: i32) -> (i32, i32) {
    %c0_i32 = arith.constant 0 : i32
    %c0_i32_0 = arith.constant 0 : i32
    %c0_i32_1 = arith.constant 0 : i32
    return %c0_i32, %c0_i32_0 : i32, i32
  }
  func.func @transform_4(%arg0: i32) -> (i32, i32) {
    %c0_i32 = arith.constant 0 : i32
    %c0_i32_0 = arith.constant 0 : i32
    %c0_i32_1 = arith.constant 0 : i32
    return %c0_i32, %c0_i32_0 : i32, i32
  }
  func.func @transform_5(%arg0: i32) -> (i32, i32) {
    %c0_i32 = arith.constant 0 : i32
    %c0_i32_0 = arith.constant 0 : i32
    %c0_i32_1 = arith.constant 0 : i32
    return %c0_i32, %c0_i32_0 : i32, i32
  }
  func.func @transform_6(%arg0: i32) -> (i32, i32, i32) {
    %c0_i32 = arith.constant 0 : i32
    %c0_i32_0 = arith.constant 0 : i32
    %c0_i32_1 = arith.constant 0 : i32
    %c0_i32_2 = arith.constant 0 : i32
    return %c0_i32, %c0_i32_0, %c0_i32_1 : i32, i32, i32
  }
  func.func @transform_7(%arg0: i32) -> (i32, i32) {
    %c0_i32 = arith.constant 0 : i32
    %c0_i32_0 = arith.constant 0 : i32
    %c0_i32_1 = arith.constant 0 : i32
    return %c0_i32, %c0_i32_0 : i32, i32
  }
  func.func @transform_8(%arg0: i32) -> (i32, i32) {
    %c0_i32 = arith.constant 0 : i32
    %c0_i32_0 = arith.constant 0 : i32
    %c0_i32_1 = arith.constant 0 : i32
    return %c0_i32, %c0_i32_0 : i32, i32
  }
  func.func @transform_9(%arg0: i32) -> (i32, i32) {
    %c0_i32 = arith.constant 0 : i32
    %c0_i32_0 = arith.constant 0 : i32
    %c0_i32_1 = arith.constant 0 : i32
    return %c0_i32, %c0_i32_0 : i32, i32
  }
  func.func @transform_10(%arg0: i32) -> (i32, i32) {
    %c0_i32 = arith.constant 0 : i32
    %c0_i32_0 = arith.constant 0 : i32
    %c0_i32_1 = arith.constant 0 : i32
    return %c0_i32, %c0_i32_0 : i32, i32
  }
  func.func @transform_11(%arg0: i32) -> (i32, i32) {
    %c0_i32 = arith.constant 0 : i32
    %c0_i32_0 = arith.constant 0 : i32
    %c0_i32_1 = arith.constant 0 : i32
    return %c0_i32, %c0_i32_0 : i32, i32
  }
  func.func @transform_12(%arg0: i32) -> (i32, i32) {
    %c0_i32 = arith.constant 0 : i32
    %c0_i32_0 = arith.constant 0 : i32
    %c0_i32_1 = arith.constant 0 : i32
    return %c0_i32, %c0_i32_0 : i32, i32
  }
  func.func @transform_13(%arg0: i32) -> (i32, i32) {
    %c0_i32 = arith.constant 0 : i32
    %c0_i32_0 = arith.constant 0 : i32
    %c0_i32_1 = arith.constant 0 : i32
    return %c0_i32, %c0_i32_0 : i32, i32
  }
  func.func @transform_14(%arg0: i32) -> (i32, i32) {
    %c0_i32 = arith.constant 0 : i32
    %c0_i32_0 = arith.constant 0 : i32
    %c0_i32_1 = arith.constant 0 : i32
    return %c0_i32, %c0_i32_0 : i32, i32
  }
  func.func @transform_15(%arg0: i32) -> (i32, i32) {
    %c0_i32 = arith.constant 0 : i32
    %c0_i32_0 = arith.constant 0 : i32
    %c0_i32_1 = arith.constant 0 : i32
    return %c0_i32, %c0_i32_0 : i32, i32
  }
  func.func @transform_16(%arg0: i32) -> (i32, i32) {
    %c0_i32 = arith.constant 0 : i32
    %c0_i32_0 = arith.constant 0 : i32
    %c0_i32_1 = arith.constant 0 : i32
    return %c0_i32, %c0_i32_0 : i32, i32
  }
  func.func @transform_17(%arg0: i32) -> (i32, i32) {
    %c0_i32 = arith.constant 0 : i32
    %c0_i32_0 = arith.constant 0 : i32
    %c0_i32_1 = arith.constant 0 : i32
    return %c0_i32, %c0_i32_0 : i32, i32
  }
  func.func @transform_18(%arg0: i32) -> (i32, i32) {
    %c0_i32 = arith.constant 0 : i32
    %c0_i32_0 = arith.constant 0 : i32
    %c0_i32_1 = arith.constant 0 : i32
    return %c0_i32, %c0_i32_0 : i32, i32
  }
  func.func @transform_19(%arg0: i32) -> (i32, i32) {
    %c0_i32 = arith.constant 0 : i32
    %c0_i32_0 = arith.constant 0 : i32
    %c0_i32_1 = arith.constant 0 : i32
    return %c0_i32, %c0_i32_0 : i32, i32
  }
  func.func @transform_20(%arg0: i32) -> (i32, i32) {
    %c0_i32 = arith.constant 0 : i32
    %c0_i32_0 = arith.constant 0 : i32
    %c0_i32_1 = arith.constant 0 : i32
    return %c0_i32, %c0_i32_0 : i32, i32
  }
  func.func @transform_21(%arg0: i32) -> (i32, i32) {
    %c0_i32 = arith.constant 0 : i32
    %c0_i32_0 = arith.constant 0 : i32
    %c0_i32_1 = arith.constant 0 : i32
    return %c0_i32, %c0_i32_0 : i32, i32
  }
  func.func @transform_22(%arg0: i32) -> (i32, i32) {
    %c0_i32 = arith.constant 0 : i32
    %c0_i32_0 = arith.constant 0 : i32
    %c0_i32_1 = arith.constant 0 : i32
    return %c0_i32, %c0_i32_0 : i32, i32
  }
  func.func @transform_23(%arg0: i32) -> (i32, i32) {
    %c0_i32 = arith.constant 0 : i32
    %c0_i32_0 = arith.constant 0 : i32
    %c0_i32_1 = arith.constant 0 : i32
    return %c0_i32, %c0_i32_0 : i32, i32
  }
  func.func @transform_24(%arg0: i32) -> (i32, i32, i32) {
    %c0_i32 = arith.constant 0 : i32
    %c0_i32_0 = arith.constant 0 : i32
    %c0_i32_1 = arith.constant 0 : i32
    %c0_i32_2 = arith.constant 0 : i32
    return %c0_i32, %c0_i32_0, %c0_i32_1 : i32, i32, i32
  }
  func.func @transform_25(%arg0: i32) -> (i32, i32) {
    %c0_i32 = arith.constant 0 : i32
    %c0_i32_0 = arith.constant 0 : i32
    %c0_i32_1 = arith.constant 0 : i32
    return %c0_i32, %c0_i32_0 : i32, i32
  }
  func.func @transform_26(%arg0: i32) -> (i32, i32, i32) {
    %c0_i32 = arith.constant 0 : i32
    %c0_i32_0 = arith.constant 0 : i32
    %c0_i32_1 = arith.constant 0 : i32
    %c0_i32_2 = arith.constant 0 : i32
    return %c0_i32, %c0_i32_0, %c0_i32_1 : i32, i32, i32
  }
  func.func @transform_27(%arg0: i32) -> (i32, i32) {
    %c0_i32 = arith.constant 0 : i32
    %c0_i32_0 = arith.constant 0 : i32
    %c0_i32_1 = arith.constant 0 : i32
    return %c0_i32, %c0_i32_0 : i32, i32
  }
  func.func @transform_28(%arg0: i32) -> (i32, i32) {
    %c0_i32 = arith.constant 0 : i32
    %c0_i32_0 = arith.constant 0 : i32
    %c0_i32_1 = arith.constant 0 : i32
    return %c0_i32, %c0_i32_0 : i32, i32
  }
  func.func @transform_29(%arg0: i32) -> (i32, i32, i32) {
    %c0_i32 = arith.constant 0 : i32
    %c0_i32_0 = arith.constant 0 : i32
    %c0_i32_1 = arith.constant 0 : i32
    %c0_i32_2 = arith.constant 0 : i32
    return %c0_i32, %c0_i32_0, %c0_i32_1 : i32, i32, i32
  }
  func.func @transform_30(%arg0: i32) -> (i32, i32) {
    %c0_i32 = arith.constant 0 : i32
    %c0_i32_0 = arith.constant 0 : i32
    %c0_i32_1 = arith.constant 0 : i32
    return %c0_i32, %c0_i32_0 : i32, i32
  }
  func.func @transform_31(%arg0: i32) -> (i32, i32) {
    %c0_i32 = arith.constant 0 : i32
    %c0_i32_0 = arith.constant 0 : i32
    %c0_i32_1 = arith.constant 0 : i32
    return %c0_i32, %c0_i32_0 : i32, i32
  }
  func.func @transform_32(%arg0: i32) -> (i32, i32) {
    %c0_i32 = arith.constant 0 : i32
    %c0_i32_0 = arith.constant 0 : i32
    %c0_i32_1 = arith.constant 0 : i32
    return %c0_i32, %c0_i32_0 : i32, i32
  }
  func.func @transform_33(%arg0: i32) -> (i32, i32) {
    %c0_i32 = arith.constant 0 : i32
    %c0_i32_0 = arith.constant 0 : i32
    %c0_i32_1 = arith.constant 0 : i32
    return %c0_i32, %c0_i32_0 : i32, i32
  }
  func.func @transform_34(%arg0: i32) -> (i32, i32) {
    %c0_i32 = arith.constant 0 : i32
    %c0_i32_0 = arith.constant 0 : i32
    %c0_i32_1 = arith.constant 0 : i32
    return %c0_i32, %c0_i32_0 : i32, i32
  }
  func.func @transform_35(%arg0: i32) -> (i32, i32) {
    %c0_i32 = arith.constant 0 : i32
    %c0_i32_0 = arith.constant 0 : i32
    %c0_i32_1 = arith.constant 0 : i32
    return %c0_i32, %c0_i32_0 : i32, i32
  }
  func.func @transform_36(%arg0: i32) -> (i32, i32) {
    %c0_i32 = arith.constant 0 : i32
    %c0_i32_0 = arith.constant 0 : i32
    %c0_i32_1 = arith.constant 0 : i32
    return %c0_i32, %c0_i32_0 : i32, i32
  }
  func.func @transform_37(%arg0: i32) -> (i32, i32) {
    %c0_i32 = arith.constant 0 : i32
    %c0_i32_0 = arith.constant 0 : i32
    %c0_i32_1 = arith.constant 0 : i32
    return %c0_i32, %c0_i32_0 : i32, i32
  }
  func.func @transform_38(%arg0: i32) -> (i32, i32) {
    %c0_i32 = arith.constant 0 : i32
    %c0_i32_0 = arith.constant 0 : i32
    %c0_i32_1 = arith.constant 0 : i32
    return %c0_i32, %c0_i32_0 : i32, i32
  }
  func.func @transform_39(%arg0: i32) -> (i32, i32) {
    %c0_i32 = arith.constant 0 : i32
    %c0_i32_0 = arith.constant 0 : i32
    %c0_i32_1 = arith.constant 0 : i32
    return %c0_i32, %c0_i32_0 : i32, i32
  }
  func.func @transform_40(%arg0: i32) -> (i32, i32) {
    %c0_i32 = arith.constant 0 : i32
    %c0_i32_0 = arith.constant 0 : i32
    %c0_i32_1 = arith.constant 0 : i32
    return %c0_i32, %c0_i32_0 : i32, i32
  }
  func.func @transform_41(%arg0: i32) -> (i32, i32) {
    %c0_i32 = arith.constant 0 : i32
    %c0_i32_0 = arith.constant 0 : i32
    %c0_i32_1 = arith.constant 0 : i32
    return %c0_i32, %c0_i32_0 : i32, i32
  }
  func.func @transform_42(%arg0: i32) -> (i32, i32, i32) {
    %c0_i32 = arith.constant 0 : i32
    %c0_i32_0 = arith.constant 0 : i32
    %c0_i32_1 = arith.constant 0 : i32
    %c0_i32_2 = arith.constant 0 : i32
    return %c0_i32, %c0_i32_0, %c0_i32_1 : i32, i32, i32
  }
  func.func @transform_43(%arg0: i32) -> (i32, i32) {
    %c0_i32 = arith.constant 0 : i32
    %c0_i32_0 = arith.constant 0 : i32
    %c0_i32_1 = arith.constant 0 : i32
    return %c0_i32, %c0_i32_0 : i32, i32
  }
  func.func @transform_44(%arg0: i32) -> (i32, i32, i32) {
    %c0_i32 = arith.constant 0 : i32
    %c0_i32_0 = arith.constant 0 : i32
    %c0_i32_1 = arith.constant 0 : i32
    %c0_i32_2 = arith.constant 0 : i32
    return %c0_i32, %c0_i32_0, %c0_i32_1 : i32, i32, i32
  }
  func.func @transform_45(%arg0: i32) -> (i32, i32) {
    %c0_i32 = arith.constant 0 : i32
    %c0_i32_0 = arith.constant 0 : i32
    %c0_i32_1 = arith.constant 0 : i32
    return %c0_i32, %c0_i32_0 : i32, i32
  }
  func.func @transform_46(%arg0: i32) -> (i32, i32) {
    %c0_i32 = arith.constant 0 : i32
    %c0_i32_0 = arith.constant 0 : i32
    %c0_i32_1 = arith.constant 0 : i32
    return %c0_i32, %c0_i32_0 : i32, i32
  }
  func.func @transform_47(%arg0: i32) -> (i32, i32, i32) {
    %c0_i32 = arith.constant 0 : i32
    %c0_i32_0 = arith.constant 0 : i32
    %c0_i32_1 = arith.constant 0 : i32
    %c0_i32_2 = arith.constant 0 : i32
    return %c0_i32, %c0_i32_0, %c0_i32_1 : i32, i32, i32
  }
  func.func @transform_48(%arg0: i32) -> (i32, i32) {
    %c0_i32 = arith.constant 0 : i32
    %c0_i32_0 = arith.constant 0 : i32
    %c0_i32_1 = arith.constant 0 : i32
    return %c0_i32, %c0_i32_0 : i32, i32
  }
  func.func @transform_49(%arg0: i32) -> (i32, i32) {
    %c0_i32 = arith.constant 0 : i32
    %c0_i32_0 = arith.constant 0 : i32
    %c0_i32_1 = arith.constant 0 : i32
    return %c0_i32, %c0_i32_0 : i32, i32
  }
  func.func @transform_50(%arg0: i32) -> (i32, i32) {
    %c0_i32 = arith.constant 0 : i32
    %c0_i32_0 = arith.constant 0 : i32
    %c0_i32_1 = arith.constant 0 : i32
    return %c0_i32, %c0_i32_0 : i32, i32
  }
  func.func @transform_51(%arg0: i32) -> (i32, i32) {
    %c0_i32 = arith.constant 0 : i32
    %c0_i32_0 = arith.constant 0 : i32
    %c0_i32_1 = arith.constant 0 : i32
    return %c0_i32, %c0_i32_0 : i32, i32
  }
  func.func @transform_52(%arg0: i32) -> (i32, i32) {
    %c0_i32 = arith.constant 0 : i32
    %c0_i32_0 = arith.constant 0 : i32
    return %c0_i32, %arg0 : i32, i32
  }
}

</mosaic_0001>

<bundles_post_ra>
// kernel: _lambda_.1
= control target key start
LH: loop header
LB: loop body
LE: loop exit
PB: predicated region body
PF: predicated region fallthrough
CT: control target
= control target key end

     0   :  { %s6003_s3 = smov 1   ;;  %s6004_s7 = smov 2   ;;  %v6005_v34 = vmov 0.0   ;;  %vm6006_vm0 = vmmov 0   ;;  %vm401_vm1 = vcmask 130048   ;;  %v6008_v36 = vmov 0   ;;  %s7145_s0 = inlined_call_operand.smem [shape: u32[53], index: -1, kind: input, shape index: {}] }
   0x1   :  { %s6066_s6 = sld [smem:[%s7145_s0 + %s6003_s3]]   ;;  %s6007_s14 = smov 6   ;;  %5899 = vset.pattern.permute.xlu0 %v6008_v36  ;;  %5900 = vset.pattern.permute.xlu1 %v6008_v36  ;;  %vm645_vm2 = vcmask 64512   ;;  %vm824_vm3 = vcmask 1043456   ;;  %vm820_vm4 = vcmask 31744   ;;  %vm1052_vm5 = vcmask 1041408  }
   0x2   :  { %s6071_s10 = sld [smem:[%s7145_s0 + %s6004_s7]]   ;;  %s6009_s18 = smov 5   ;;  %vm1048_vm6 = vcmask 15360  }
   0x3   :  { %s6194_s13 = sld [smem:[%s7145_s0]]   ;;  %s6010_s22 = smov 9  }
   0x4   :  { %s6251_s17 = sld [smem:[%s7145_s0 + %s6007_s14]]   ;;  %s6011_s26 = smov 25  }
   0x5   :  { %s4662_s21 = sld [smem:[%s7145_s0 + %s6009_s18]]   ;;  %s6012_s30 = smov 16  }
   0x6   :  { %s4666_s25 = sld [smem:[%s7145_s0 + %s6010_s22]]   ;;  %s6013_s4 = smov 13  }
   0x7   :  { %v6074_v0 = vld [vmem:[%s6066_s6 + $0x78] sm:$0xff]  ;;  %v6077_v1 = vld [vmem:[%s6066_s6 + $0x70] sm:$0xff]  ;;  %v6089_v4 = vld [vmem:[%s6066_s6 + $0x68] sm:$0xff]  ;;  %s4682_s29 = sld [smem:[%s7145_s0 + %s6011_s26]]   ;;  %s6014_s9 = smov 28  }
   0x8   :  { %5148 = vmatprep.subr.mxu0 %v6074_v0  ;;  %v6081_v2 = vld [vmem:[%s6071_s10 + $0x78] sm:$0xff]  ;;  %v6084_v3 = vld [vmem:[%s6071_s10 + $0x70] sm:$0xff]  ;;  %v6094_v5 = vld [vmem:[%s6071_s10 + $0x68] sm:$0xff]  ;;  %s4673_s3 = sld [smem:[%s7145_s0 + %s6012_s30]]   ;;  %s6015_s15 = smov 41  }
   0x9   :  { %5183 = vmatprep.subr.mxu1 %v6081_v2  ;;  %5149 = vmatpush3.msra.mxu0 %v6074_v0  ;;  %v6099_v6 = vld [vmem:[%s6066_s6 + $0x60] sm:$0xff]  ;;  %v6109_v8 = vld [vmem:[%s6066_s6 + $0x58] sm:$0xff]  ;;  %v6119_v10 = vld [vmem:[%s6066_s6 + $0x50] sm:$0xff]  ;;  %s4670_s8 = sld [smem:[%s7145_s0 + %s6013_s4]]   ;;  %s6016_s20 = smov 40  }
   0xa   :  { %5184 = vmatpush3.msra.mxu1 %v6081_v2  ;;  %5150 = vmatprep.subr.mxu0 %v6077_v1  ;;  %v6104_v7 = vld [vmem:[%s6071_s10 + $0x60] sm:$0xff]  ;;  %v6114_v9 = vld [vmem:[%s6071_s10 + $0x58] sm:$0xff]  ;;  %v6124_v11 = vld [vmem:[%s6071_s10 + $0x50] sm:$0xff]  ;;  %s4685_s14 = sld [smem:[%s7145_s0 + %s6014_s9]]   ;;  %s6017_s24 = smov 39  }
   0xb   :  { %5185 = vmatprep.subr.mxu1 %v6084_v3  ;;  %5151 = vmatpush3.msra.mxu0 %v6077_v1  ;;  %v6129_v12 = vld [vmem:[%s6066_s6 + $0x48] sm:$0xff]  ;;  %v6139_v14 = vld [vmem:[%s6066_s6 + $0x40] sm:$0xff]  ;;  %v6149_v16 = vld [vmem:[%s6066_s6 + $0x38] sm:$0xff]  ;;  %s4698_s19 = sld [smem:[%s7145_s0 + %s6015_s15]]   ;;  %s6018_s28 = smov 30  }
   0xc   :  { %5186 = vmatpush3.msra.mxu1 %v6084_v3  ;;  %5152 = vmatprep.subr.mxu0 %v6089_v4  ;;  %v6134_v13 = vld [vmem:[%s6071_s10 + $0x48] sm:$0xff]  ;;  %v6144_v15 = vld [vmem:[%s6071_s10 + $0x40] sm:$0xff]  ;;  %v6154_v17 = vld [vmem:[%s6071_s10 + $0x38] sm:$0xff]  ;;  %s4697_s23 = sld [smem:[%s7145_s0 + %s6016_s20]]   ;;  %s6019_s2 = smov 46  }
   0xd   :  { %5187 = vmatprep.subr.mxu1 %v6094_v5  ;;  %5153 = vmatpush3.msra.mxu0 %v6089_v4  ;;  %v6159_v18 = vld [vmem:[%s6066_s6 + $0x30] sm:$0xff]  ;;  %v6169_v20 = vld [vmem:[%s6066_s6 + $0x28] sm:$0xff]  ;;  %v6179_v22 = vld [vmem:[%s6066_s6 + $0x20] sm:$0xff]  ;;  %s4696_s27 = sld [smem:[%s7145_s0 + %s6017_s24]]   ;;  %s6020_s7 = smov 4  }
   0xe   :  { %5188 = vmatpush3.msra.mxu1 %v6094_v5  ;;  %5154 = vmatprep.subr.mxu0 %v6099_v6  ;;  %v6164_v19 = vld [vmem:[%s6071_s10 + $0x30] sm:$0xff]  ;;  %v6174_v21 = vld [vmem:[%s6071_s10 + $0x28] sm:$0xff]  ;;  %v6184_v23 = vld [vmem:[%s6071_s10 + $0x20] sm:$0xff]  ;;  %s4687_s1 = sld [smem:[%s7145_s0 + %s6018_s28]]   ;;  %s6021_s12 = smov 3  }
   0xf   :  { %5189 = vmatprep.subr.mxu1 %v6104_v7  ;;  %5155 = vmatpush3.msra.mxu0 %v6099_v6  ;;  %v6189_v24 = vld [vmem:[%s6066_s6 + $0x18] sm:$0xff]  ;;  %v6204_v26 = vld [vmem:[%s6066_s6 + $0x10] sm:$0xff]  ;;  %v6214_v28 = vld [vmem:[%s6066_s6 + $0x8] sm:$0xff]  ;;  %s4703_s5 = sld [smem:[%s7145_s0 + %s6019_s2]]   ;;  %s6028_s15 = smov 12  }
  0x10   :  { %5190 = vmatpush3.msra.mxu1 %v6104_v7  ;;  %5156 = vmatprep.subr.mxu0 %v6109_v8  ;;  %v6199_v25 = vld [vmem:[%s6071_s10 + $0x18] sm:$0xff]  ;;  %v6209_v27 = vld [vmem:[%s6071_s10 + $0x10] sm:$0xff]  ;;  %v6219_v29 = vld [vmem:[%s6071_s10 + $0x8] sm:$0xff]  ;;  %s6293_s11 = sld [smem:[%s7145_s0 + %s6020_s7]]  }
  0x11   :  { %5191 = vmatprep.subr.mxu1 %v6114_v9  ;;  %5157 = vmatpush3.msra.mxu0 %v6109_v8  ;;  %v6224_v30 = vld [vmem:[%s6066_s6] sm:$0xff]  ;;  %v215_v33 = vld [vmem:[%s6194_s13 + $0x8] sm:$0xff]  ;;  %s6298_s16 = sld [smem:[%s7145_s0 + %s6021_s12]]   ;;  %v4713_v54 = vld [vmem:[%s6251_s17 + $0x10] sm:$0xff] }
  0x12   :  { %5192 = vmatpush3.msra.mxu1 %v6114_v9  ;;  %5158 = vmatprep.subr.mxu0 %v6119_v10  ;;  %v6229_v31 = vld [vmem:[%s6071_s10] sm:$0xff]  ;;  %v4710_v35 = vld [vmem:[%s6251_s17 + $0x8] sm:$0xff] }
  0x13   :  { %5193 = vmatprep.subr.mxu1 %v6124_v11  ;;  %5159 = vmatpush3.msra.mxu0 %v6119_v10  ;;  %v214_v32 = vld [vmem:[%s6194_s13] sm:$0xff] }
  0x14   :  { %5194 = vmatpush3.msra.mxu1 %v6124_v11  ;;  %5160 = vmatprep.subr.mxu0 %v6129_v12  ;;  %v624_v37 = vld [vmem:[%s4662_s21] sm:$0xff]  ;;  %s6023_s21 = smov 10  }
  0x15   :  { %5195 = vmatprep.subr.mxu1 %v6134_v13  ;;  %5161 = vmatpush3.msra.mxu0 %v6129_v12  ;;  %v727_v38 = vld [vmem:[%s4666_s25] sm:$0xf]  ;;  %s4667_s24 = sld [smem:[%s7145_s0 + %s6023_s21]]   ;;  %s6024_s25 = smov 14  }
  0x16   :  { %5196 = vmatpush3.msra.mxu1 %v6134_v13  ;;  %5162 = vmatprep.subr.mxu0 %v6139_v14  ;;  %v1669_v39 = vld [vmem:[%s4682_s29] sm:$0x3]  ;;  %v4611_v48 = vld [vmem:[%s6293_s11 + $0x8] sm:$0xff]  ;;  %s4671_s28 = sld [smem:[%s7145_s0 + %s6024_s25]]   ;;  %s6025_s29 = smov 23  }
  0x17   :  { %5197 = vmatprep.subr.mxu1 %v6144_v15  ;;  %5163 = vmatpush3.msra.mxu0 %v6139_v14  ;;  %v1774_v40 = vld [vmem:[%s4673_s3] sm:$0x3]  ;;  %v4625_v49 = vld [vmem:[%s6298_s16 + $0x8] sm:$0xff]  ;;  %s4680_s2 = sld [smem:[%s7145_s0 + %s6025_s29]]   ;;  %s6026_s3 = smov 22  }
  0x18   :  { %5198 = vmatpush3.msra.mxu1 %v6144_v15  ;;  %5164 = vmatprep.subr.mxu0 %v6149_v16  ;;  %v2090_v41 = vld [vmem:[%s4670_s8] sm:$0xf]  ;;  %s4679_s7 = sld [smem:[%s7145_s0 + %s6026_s3]]   ;;  %s6027_s8 = smov 21  }
  0x19   :  { %5199 = vmatprep.subr.mxu1 %v6154_v17  ;;  %5165 = vmatpush3.msra.mxu0 %v6149_v16  ;;  %v2485_v42 = vld [vmem:[%s4685_s14] sm:$0xf]  ;;  %s4678_s14 = sld [smem:[%s7145_s0 + %s6027_s8]]   ;;  %s6036_s21 = smov 26  }
  0x1a   :  { %5200 = vmatpush3.msra.mxu1 %v6154_v17  ;;  %5166 = vmatprep.subr.mxu0 %v6159_v18  ;;  %v2963_v43 = vld [vmem:[%s4698_s19] sm:$0x3]  ;;  %s4669_s19 = sld [smem:[%s7145_s0 + %s6028_s15]]   ;;  %s6037_s25 = smov 27  }
  0x1b   :  { %5201 = vmatprep.subr.mxu1 %v6164_v19  ;;  %5167 = vmatpush3.msra.mxu0 %v6159_v18  ;;  %v3434_v44 = vld [vmem:[%s4697_s23] sm:$0x3]  ;;  %s6038_s29 = smov 17   ;;  %s6039_s3 = smov 19  }
  0x1c   :  { %5202 = vmatpush3.msra.mxu1 %v6164_v19  ;;  %5168 = vmatprep.subr.mxu0 %v6169_v20  ;;  %v3441_v45 = vld [vmem:[%s4696_s27] sm:$0x3]  ;;  %s6040_s8 = smov 20   ;;  %s6041_s15 = smov 18  }
  0x1d   :  { %5203 = vmatprep.subr.mxu1 %v6174_v21  ;;  %5169 = vmatpush3.msra.mxu0 %v6169_v20  ;;  %v3779_v46 = vld [vmem:[%s4687_s1] sm:$0xf] }
  0x1e   :  { %5204 = vmatpush3.msra.mxu1 %v6174_v21  ;;  %5170 = vmatprep.subr.mxu0 %v6179_v22  ;;  %v4167_v47 = vld [vmem:[%s4703_s5] sm:$0xf] }
  0x1f   :  { %5205 = vmatprep.subr.mxu1 %v6184_v23  ;;  %5171 = vmatpush3.msra.mxu0 %v6179_v22  ;;  %v398_v52 = vld [vmem:[%s6251_s17] sm:$0xff]  ;;  %s6022_s17 = smov 11  }
  0x20   :  { %5206 = vmatpush3.msra.mxu1 %v6184_v23  ;;  %5172 = vmatprep.subr.mxu0 %v6189_v24  ;;  %s4668_s20 = sld [smem:[%s7145_s0 + %s6022_s17]]  }
  0x21   :  { %5207 = vmatprep.subr.mxu1 %v6199_v25  ;;  %5173 = vmatpush3.msra.mxu0 %v6189_v24 }
  0x22   :  { %5208 = vmatpush3.msra.mxu1 %v6199_v25  ;;  %5174 = vmatprep.subr.mxu0 %v6204_v26 }
  0x23   :  { %5209 = vmatprep.subr.mxu1 %v6209_v27  ;;  %5175 = vmatpush3.msra.mxu0 %v6204_v26 }
  0x24   :  { %5210 = vmatpush3.msra.mxu1 %v6209_v27  ;;  %5176 = vmatprep.subr.mxu0 %v6214_v28 }
  0x25   :  { %5211 = vmatprep.subr.mxu1 %v6219_v29  ;;  %5177 = vmatpush3.msra.mxu0 %v6214_v28 }
  0x26   :  { %5212 = vmatpush3.msra.mxu1 %v6219_v29  ;;  %5178 = vmatprep.subr.mxu0 %v6224_v30 }
  0x27   :  { %5213 = vmatprep.subr.mxu1 %v6229_v31  ;;  %5179 = vmatpush3.msra.mxu0 %v6224_v30 }
  0x28   :  { %5180 = vmatprep.mubr.f32.mxu0 %v214_v32  ;;  %5214 = vmatpush3.msra.mxu1 %v6229_v31 }
  0x29   :  { %5215 = vmatprep.mubr.f32.mxu1 %v214_v32  ;;  %5181 = vmatmul.mubr.f32.vlgmr.msra.gmra.mxu0 %v215_v33 }
  0x2a   :  { %5216 = vmatmul.mubr.f32.vlgmr.msra.gmra.mxu1 %v215_v33  ;;  %5218 = vmatprep.subr.mxu0 %v6005_v34 }
  0x2b   :  { %5219 = vmatpush3.msra.mxu0 %v215_v33  ;;  %5222 = vmatprep.mubr.msk.f32.mxu0 %vm6006_vm0, %v6005_v34 }
  0x2c   :  { %5220 = vmatprep.subr.mxu0 %v6005_v34  ;;  %5225 = vmatprep.subr.mxu1 %v6005_v34 }
  0x2d   :  { %5221 = vmatpush3.msra.mxu0 %v214_v32  ;;  %5229 = vmatprep.mubr.msk.f32.mxu1 %vm6006_vm0, %v6005_v34 }
  0x2e   :  { %5232 = vmatprep.subr.mxu0 %v6005_v34  ;;  %5223 = vmatmul.mubr.msk.f32.vlgmr.msra.gmra.mxu0 %vm401_vm1, %v4710_v35 }
  0x2f   :  { %5236 = vmatprep.mubr.msk.f32.mxu0 %vm6006_vm0, %v6005_v34  ;;  %627 = vperm.xlu0 %5899, %v624_v37  }
  0x33   :  { %730 = vperm.xlu0 %5899, %v727_v38  }
  0x37   :  { %1672 = vperm.xlu0 %5899, %v1669_v39  }
  0x3b   :  { %1777 = vperm.xlu0 %5899, %v1774_v40   ;;  %v726_v40 = vld [vmem:[%s4668_s20] sm:$0xf]  ;;  %s6029_s20 = smov 32  }
  0x3c   :  { %s4689_s23 = sld [smem:[%s7145_s0 + %s6029_s20]]  }
  0x3f   :  { %2093 = vperm.xlu0 %5899, %v2090_v41   ;;  %v638_v41 = vld [vmem:[%s4667_s24] sm:$0xf]  ;;  %s6030_s24 = smov 43  }
  0x40   :  { %s4700_s27 = sld [smem:[%s7145_s0 + %s6030_s24]]  }
  0x41   :  { %s4683_s24 = sld [smem:[%s7145_s0 + %s6036_s21]]  }
  0x43   :  { %2488 = vperm.xlu0 %5899, %v2485_v42   ;;  %v814_v42 = vld [vmem:[%s4671_s28] sm:$0x3]  ;;  %s6031_s28 = smov 34  }
  0x44   :  { %817 = vperm.xlu1 %5900, %v814_v42   ;;  %s4691_s1 = sld [smem:[%s7145_s0 + %s6031_s28]]  }
  0x45   :  { %s4684_s28 = sld [smem:[%s7145_s0 + %s6037_s25]]  }
  0x47   :  { %2966 = vperm.xlu0 %5899, %v2963_v43   ;;  %v1281_v43 = vld [vmem:[%s4680_s2] sm:$0x3]  ;;  %s6032_s2 = smov 31  }
  0x48   :  { %1284 = vperm.xlu1 %5900, %v1281_v43   ;;  %s4688_s5 = sld [smem:[%s7145_s0 + %s6032_s2]]  }
  0x49   :  { %s4674_s2 = sld [smem:[%s7145_s0 + %s6038_s29]]  }
  0x4b   :  { %3437 = vperm.xlu0 %5899, %v3434_v44   ;;  %v1752_v44 = vld [vmem:[%s4679_s7] sm:$0x3]  ;;  %s6033_s7 = smov 8  }
  0x4c   :  { %1755 = vperm.xlu1 %5900, %v1752_v44   ;;  %s4665_s12 = sld [smem:[%s7145_s0 + %s6033_s7]]  }
  0x4d   :  { %s4676_s7 = sld [smem:[%s7145_s0 + %s6039_s3]]  }
  0x4f   :  { %3444 = vperm.xlu0 %5899, %v3441_v45   ;;  %v1759_v45 = vld [vmem:[%s4678_s14] sm:$0x3]  ;;  %s6034_s14 = smov 15  }
  0x50   :  { %1762 = vperm.xlu1 %5900, %v1759_v45   ;;  %s4672_s18 = sld [smem:[%s7145_s0 + %s6034_s14]]  }
  0x51   :  { %s4677_s14 = sld [smem:[%s7145_s0 + %s6040_s8]]  }
  0x53   :  { %3782 = vperm.xlu0 %5899, %v3779_v46   ;;  %v2097_v46 = vld [vmem:[%s4669_s19] sm:$0xf] }
  0x54   :  { %2100 = vperm.xlu1 %5900, %v2097_v46  }
  0x57   :  { %4170 = vperm.xlu0 %5899, %v4167_v47   ;;  %v2500_v47 = vld [vmem:[%s4689_s23] sm:$0x3] }
  0x58   :  { %2503 = vperm.xlu1 %5900, %v2500_v47  }
  0x5b   :  { %4619 = vperm.xlu0 %5899, %v4611_v48   ;;  %v3351_v48 = vld [vmem:[%s4700_s27] sm:$0x3] }
  0x5c   :  { %3354 = vperm.xlu1 %5900, %v3351_v48  }
  0x5f   :  { %4633 = vperm.xlu0 %5899, %v4625_v49   ;;  %v3456_v49 = vld [vmem:[%s4691_s1] sm:$0x3] }
  0x60   :  { %3459 = vperm.xlu1 %5900, %v3456_v49  }
  0xaa   :  { %v628_v32 = vpop.permute.xlu0 %627 }
  0xe9   :  { %v5182_v50 = vpop.f32.mrf.mxu0 }
  0xea   :  { %v5217_v51 = vpop.f32.mrf.mxu1  ;;  %5226 = vmatpush3.msra.mxu1 %v5182_v50  ;;  %v3772_v50 = vld [vmem:[%s4688_s5] sm:$0xf] }
  0xeb   :  { %5233 = vmatpush3.msra.mxu0 %v5217_v51  ;;  %v314_v53 = vpop.f32.mrf.mxu0  ;;  %5227 = vmatprep.subr.mxu1 %v6005_v34  ;;  %v639_v51 = vld [vmem:[%s4665_s12] sm:$0xf] }
  0xec   :  { %v389_v55 = vpop.f32.mrf.mxu1  ;;  %5234 = vmatprep.subr.mxu0 %v6005_v34  ;;  %5228 = vmatpush3.msra.mxu1 %v314_v53  ;;  %v4624_v53 = vld [vmem:[%s6298_s16] sm:$0xff] }
  0xed   :  { %5235 = vmatpush3.msra.mxu0 %v389_v55  ;;  %5230 = vmatmul.mubr.msk.f32.vlgmr.msra.gmra.mxu1 %vm401_vm1, %v398_v52  ;;  %v4610_v52 = vld [vmem:[%s6293_s11] sm:$0xff]  ;;  %s6035_s11 = smov 24  }
  0xee   :  { %5237 = vmatmul.mubr.msk.f32.vlgmr.msra.gmra.mxu0 %vm401_vm1, %v4713_v54  ;;  %5239 = vmatprep.subr.mxu1 %v6005_v34  ;;  %v471_v56 = vpop.f32.mrf.mxu0  ;;  %v731_v54 = vpop.permute.xlu0 %730  ;;  %s4681_s20 = sld [smem:[%s7145_s0 + %s6035_s11]]  }
  0xef   :  { %5244 = vmatprep.subr.mxu0 %v6005_v34  ;;  %5246 = vmatprep.mubr.msk.f32.mxu0 %vm6006_vm0, %v6005_v34  ;;  %s4675_s11 = sld [smem:[%s7145_s0 + %s6041_s15]]  }
  0xf0   :  { %5241 = vmatprep.mubr.msk.f32.mxu1 %vm6006_vm0, %v6005_v34  ;;  %v5224_v57 = vpop.f32.mrf.mxu0  ;;  %3775 = vperm.xlu1 %5900, %v3772_v50  }
  0xf4   :  { %642 = vperm.xlu1 %5900, %v639_v51   ;;  %v4723_v45 = vld [vmem:[%s4681_s20 + $0x2] sm:$0x3]  ;;  %v1045_v46 = vld [vmem:[%s4681_s20] sm:$0x3]  ;;  %v4728_v47 = vld [vmem:[%s4681_s20 + $0x4] sm:$0x3] }
  0xf5   :  { %s6043_s20 = smov 33  }
  0xf6   :  { %s4690_s23 = sld [smem:[%s7145_s0 + %s6043_s20]]  }
  0xf8   :  { %4614 = vperm.xlu1 %5900, %v4610_v52  }
  0xfc   :  { %4628 = vperm.xlu1 %5900, %v4624_v53  }
 0x1ad   :  { %v544_v58 = vpop.f32.mrf.mxu1 }
 0x1ae   :  { %v545_v59 = vadd.f32 %v544_v58, %v471_v56  ;;  %v619_v60 = vpop.f32.mrf.mxu0 }
 0x1af   :  { %v5231_v61 = vpop.f32.mrf.mxu1 }
 0x1b0   :  { %v623_v62 = vadd.f32 %v619_v60, %v545_v59  ;;  %v5238_v63 = vpop.f32.mrf.mxu0 }
 0x1b1   :  { %v813_v63 = vld [vmem:[%s4672_s18] sm:$0x3] }
 0x1b2   :  { %v630_v33 = vadd.f32 %v628_v32, %v623_v62 }
 0x1b4   :  { %v4715_v35 = vmul.f32 -1.442695, %v630_v33 }
 0x1b6   :  { %5901 = vpow2.f32 %v4715_v35  ;;  %v818_v35 = vpop.permute.xlu1 %817 }
 0x1c3   :  { %v5902_v36 = vpop.eup %5901 }
 0x1c4   :  { %v634_v37 = vadd.f32 1.0, %v5902_v36 }
 0x1c6   :  { %5903 = vrcp.f32 %v634_v37 }
 0x1d3   :  { %v5904_v38 = vpop.eup %5903 }
 0x1d4   :  { %v6317_v39 = vmul.f32 %v5904_v38, %v630_v33 }
 0x1d6   :  { %5240 = vmatpush3.msra.mxu1 %v6317_v39  ;;  %5245 = vmatpush3.msra.mxu0 %v6317_v39 }
 0x1d7   :  { %5247 = vmatmul.mubr.msk.f32.vlgmr.msra.gmra.mxu0 %vm645_vm2, %v726_v40  ;;  %5249 = vmatprep.subr.mxu1 %v6005_v34 }
 0x1d8   :  { %5254 = vmatprep.subr.mxu0 %v6005_v34  ;;  %5286 = vmatprep.mubr.msk.f32.mxu0 %vm6006_vm0, %v6005_v34 }
 0x1d9   :  { %5255 = vmatpush3.msra.mxu0 %v6074_v0  ;;  %5242 = vmatmul.mubr.msk.f32.vlgmr.msra.gmra.mxu1 %vm645_vm2, %v638_v41 }
 0x1da   :  { %5256 = vmatprep.subr.mxu0 %v6005_v34  ;;  %5251 = vmatprep.mubr.msk.f32.mxu1 %vm6006_vm0, %v6005_v34 }
 0x1db   :  { %5257 = vmatpush3.msra.mxu0 %v6077_v1 }
 0x1dc   :  { %5258 = vmatprep.subr.mxu0 %v6005_v34 }
 0x1dd   :  { %5259 = vmatpush3.msra.mxu0 %v6089_v4 }
 0x1de   :  { %5260 = vmatprep.subr.mxu0 %v6005_v34 }
 0x1df   :  { %5261 = vmatpush3.msra.mxu0 %v6099_v6 }
 0x1e0   :  { %5262 = vmatprep.subr.mxu0 %v6005_v34 }
 0x1e1   :  { %5263 = vmatpush3.msra.mxu0 %v6109_v8 }
 0x1e2   :  { %5264 = vmatprep.subr.mxu0 %v6005_v34 }
 0x1e3   :  { %5265 = vmatpush3.msra.mxu0 %v6119_v10 }
 0x1e4   :  { %5266 = vmatprep.subr.mxu0 %v6005_v34 }
 0x1e5   :  { %5267 = vmatpush3.msra.mxu0 %v6129_v12 }
 0x1e6   :  { %5268 = vmatprep.subr.mxu0 %v6005_v34 }
 0x1e7   :  { %5269 = vmatpush3.msra.mxu0 %v6139_v14 }
 0x1e8   :  { %5270 = vmatprep.subr.mxu0 %v6005_v34 }
 0x1e9   :  { %5271 = vmatpush3.msra.mxu0 %v6149_v16 }
 0x1ea   :  { %5272 = vmatprep.subr.mxu0 %v6005_v34 }
 0x1eb   :  { %5273 = vmatpush3.msra.mxu0 %v6159_v18 }
 0x1ec   :  { %5274 = vmatprep.subr.mxu0 %v6005_v34 }
 0x1ed   :  { %5275 = vmatpush3.msra.mxu0 %v6169_v20 }
 0x1ee   :  { %5276 = vmatprep.subr.mxu0 %v6005_v34 }
 0x1ef   :  { %5277 = vmatpush3.msra.mxu0 %v6179_v22 }
 0x1f0   :  { %5278 = vmatprep.subr.mxu0 %v6005_v34 }
 0x1f1   :  { %5279 = vmatpush3.msra.mxu0 %v6189_v24 }
 0x1f2   :  { %5280 = vmatprep.subr.mxu0 %v6005_v34 }
 0x1f3   :  { %5281 = vmatpush3.msra.mxu0 %v6204_v26 }
 0x1f4   :  { %5282 = vmatprep.subr.mxu0 %v6005_v34 }
 0x1f5   :  { %5283 = vmatpush3.msra.mxu0 %v6214_v28 }
 0x1f6   :  { %5284 = vmatprep.subr.mxu0 %v6005_v34 }
 0x1f7   :  { %5285 = vmatpush3.msra.mxu0 %v6224_v30 }
 0x1f8   :  { %5324 = vmatprep.subr.mxu0 %v6005_v34 }
 0x297   :  { %v802_v55 = vpop.f32.mrf.mxu0 }
 0x298   :  { %v803_v56 = vadd.f32 %v802_v55, %v731_v54 }
 0x299   :  { %v5248_v57 = vpop.f32.mrf.mxu0  ;;  %v6435_v32 = vpop.f32.mrf.mxu1 }
 0x29a   :  { %v4719_v58 = vmul.f32 -1.442695, %v803_v56 }
 0x29b   :  { %v5243_v33 = vpop.f32.mrf.mxu1 }
 0x29c   :  { %5905 = vpow2.f32 %v4719_v58 }
 0x2a9   :  { %v5906_v59 = vpop.eup %5905 }
 0x2aa   :  { %v809_v60 = vadd.f32 1.0, %v5906_v59 }
 0x2ac   :  { %5907 = vrcp.f32 %v809_v60 }
 0x2b9   :  { %v5908_v61 = vpop.eup %5907 }
 0x2ba   :  { %v6399_v62 = vmul.f32 %v5908_v61, %v803_v56 }
 0x2bc   :  { %5250 = vmatpush3.msk.msra.mxu1 %vm824_vm3, %v6399_v62 }
 0x2bd   :  { %5252 = vmatmul.mubr.msk.f32.vlgmr.msra.gmra.mxu1 %vm820_vm4, %v813_v63  ;;  %5289 = vmatprep.subr.mxu1 %v6005_v34 }
 0x2be   :  { %5290 = vmatpush3.msra.mxu1 %v6081_v2  ;;  %5321 = vmatprep.mubr.msk.f32.mxu1 %vm6006_vm0, %v6005_v34 }
 0x2bf   :  { %5291 = vmatprep.subr.mxu1 %v6005_v34 }
 0x2c0   :  { %5292 = vmatpush3.msra.mxu1 %v6084_v3 }
 0x2c1   :  { %5293 = vmatprep.subr.mxu1 %v6005_v34 }
 0x2c2   :  { %5294 = vmatpush3.msra.mxu1 %v6094_v5 }
 0x2c3   :  { %5295 = vmatprep.subr.mxu1 %v6005_v34 }
 0x2c4   :  { %5296 = vmatpush3.msra.mxu1 %v6104_v7 }
 0x2c5   :  { %5297 = vmatprep.subr.mxu1 %v6005_v34 }
 0x2c6   :  { %5298 = vmatpush3.msra.mxu1 %v6114_v9 }
 0x2c7   :  { %5299 = vmatprep.subr.mxu1 %v6005_v34 }
 0x2c8   :  { %5300 = vmatpush3.msra.mxu1 %v6124_v11 }
 0x2c9   :  { %5301 = vmatprep.subr.mxu1 %v6005_v34 }
 0x2ca   :  { %5302 = vmatpush3.msra.mxu1 %v6134_v13 }
 0x2cb   :  { %5303 = vmatprep.subr.mxu1 %v6005_v34 }
 0x2cc   :  { %5304 = vmatpush3.msra.mxu1 %v6144_v15 }
 0x2cd   :  { %5305 = vmatprep.subr.mxu1 %v6005_v34 }
 0x2ce   :  { %5306 = vmatpush3.msra.mxu1 %v6154_v17 }
 0x2cf   :  { %5307 = vmatprep.subr.mxu1 %v6005_v34 }
 0x2d0   :  { %5308 = vmatpush3.msra.mxu1 %v6164_v19 }
 0x2d1   :  { %5309 = vmatprep.subr.mxu1 %v6005_v34 }
 0x2d2   :  { %5310 = vmatpush3.msra.mxu1 %v6174_v21 }
 0x2d3   :  { %5311 = vmatprep.subr.mxu1 %v6005_v34 }
 0x2d4   :  { %5312 = vmatpush3.msra.mxu1 %v6184_v23 }
 0x2d5   :  { %5313 = vmatprep.subr.mxu1 %v6005_v34 }
 0x2d6   :  { %5314 = vmatpush3.msra.mxu1 %v6199_v25 }
 0x2d7   :  { %5315 = vmatprep.subr.mxu1 %v6005_v34 }
 0x2d8   :  { %5316 = vmatpush3.msra.mxu1 %v6209_v27 }
 0x2d9   :  { %5317 = vmatprep.subr.mxu1 %v6005_v34 }
 0x2da   :  { %5318 = vmatpush3.msra.mxu1 %v6219_v29 }
 0x2db   :  { %5319 = vmatprep.subr.mxu1 %v6005_v34 }
 0x2dc   :  { %5320 = vmatpush3.msra.mxu1 %v6229_v31 }
 0x2dd   :  { %5329 = vmatprep.subr.mxu1 %v6005_v34 }
 0x37d   :  { %v894_v36 = vpop.f32.mrf.mxu1 }
 0x37e   :  { %v895_v37 = vadd.f32 %v894_v36, %v818_v35 }
 0x37f   :  { %v5253_v38 = vpop.f32.mrf.mxu1 }
 0x380   :  { %v4722_v40 = vmul.f32 -1.442695, %v895_v37 }
 0x382   :  { %5909 = vpow2.f32 %v4722_v40 }
 0x38f   :  { %v5910_v41 = vpop.eup %5909 }
 0x390   :  { %v901_v42 = vadd.f32 1.0, %v5910_v41 }
 0x392   :  { %5911 = vrcp.f32 %v901_v42 }
 0x39f   :  { %v5912_v43 = vpop.eup %5911 }
 0x3a0   :  { %v6444_v44 = vmul.f32 %v5912_v43, %v895_v37 }
 0x3a2   :  { %5287 = vmatmul.mubr.f32.vlgmr.msra.gmra.mxu0 %v6444_v44  ;;  %5322 = vmatmul.mubr.f32.vlgmr.msra.gmra.mxu1 %v6444_v44 }
 0x3a3   :  { %5325 = vmatpush3.msk.msra.mxu0 %vm1052_vm5, %v6444_v44  ;;  %5326 = vmatprep.mubr.msk.f32.mxu0 %vm6006_vm0, %v6005_v34 }
 0x3a4   :  { %5334 = vmatprep.subr.mxu0 %v6005_v34  ;;  %5331 = vmatprep.mubr.msk.f32.mxu1 %vm6006_vm0, %v6005_v34 }
 0x3a6   :  { %5327 = vmatmul.mubr.msk.f32.vlgmr.msra.gmra.mxu0 %vm1048_vm6, %v4723_v45 }
 0x3a7   :  { %5336 = vmatprep.mubr.msk.f32.mxu0 %vm6006_vm0, %v6005_v34 }
 0x462   :  { %v971_v48 = vpop.f32.mrf.mxu0  ;;  %v1041_v49 = vpop.f32.mrf.mxu1 }
 0x463   :  { %5330 = vmatpush3.msk.msra.mxu1 %vm1052_vm5, %v971_v48  ;;  %5335 = vmatpush3.msk.msra.mxu0 %vm1052_vm5, %v1041_v49 }
 0x464   :  { %v5288_v50 = vpop.f32.mrf.mxu0  ;;  %v5323_v51 = vpop.f32.mrf.mxu1  ;;  %5332 = vmatmul.mubr.msk.f32.vlgmr.msra.gmra.mxu1 %vm1048_vm6, %v1045_v46  ;;  %5337 = vmatmul.mubr.msk.f32.vlgmr.msra.gmra.mxu0 %vm1048_vm6, %v4728_v47  ;;  %v1861_v46 = vld [vmem:[%s4676_s7] sm:$0xf]  ;;  %s6047_s7 = smov 35  }
 0x465   :  { %5339 = vmatprep.subr.mxu1 %v6005_v34  ;;  %5374 = vmatprep.subr.mxu0 %v6005_v34  ;;  %v2014_v47 = vld [vmem:[%s4677_s14] sm:$0xf]  ;;  %v6595_v51 = vld [vmem:[%s6071_s10 + $0x78] sm:$0xff]  ;;  %s4692_s12 = sld [smem:[%s7145_s0 + %s6047_s7]]   ;;  %s6048_s14 = smov 37  }
 0x466   :  { %v6464_v52 = vpop.f32.mrf.mxu0  ;;  %5340 = vmatpush3.msra.mxu1 %v6074_v0  ;;  %5375 = vmatpush3.msra.mxu0 %v6081_v2  ;;  %v1860_v50 = vld [vmem:[%s4675_s11] sm:$0xf]  ;;  %s4694_s18 = sld [smem:[%s7145_s0 + %s6048_s14]]   ;;  %s6049_s11 = smov 38  }
 0x467   :  { %5341 = vmatprep.subr.mxu1 %v6005_v34  ;;  %5376 = vmatprep.subr.mxu0 %v6005_v34  ;;  %s4695_s16 = sld [smem:[%s7145_s0 + %s6049_s11]]  }
 0x468   :  { %v5328_v53 = vpop.f32.mrf.mxu0  ;;  %5342 = vmatpush3.msra.mxu1 %v6077_v1  ;;  %5377 = vmatpush3.msra.mxu0 %v6084_v3 }
 0x469   :  { %5343 = vmatprep.subr.mxu1 %v6005_v34  ;;  %5378 = vmatprep.subr.mxu0 %v6005_v34  ;;  %v6609_v53 = vld [vmem:[%s6066_s6 + $0x78] sm:$0xff] }
 0x46a   :  { %5344 = vmatpush3.msra.mxu1 %v6089_v4  ;;  %5379 = vmatpush3.msra.mxu0 %v6094_v5 }
 0x46b   :  { %5345 = vmatprep.subr.mxu1 %v6005_v34  ;;  %5380 = vmatprep.subr.mxu0 %v6005_v34 }
 0x46c   :  { %5346 = vmatpush3.msra.mxu1 %v6099_v6  ;;  %5381 = vmatpush3.msra.mxu0 %v6104_v7  ;;  %v1285_v6 = vpop.permute.xlu1 %1284 }
 0x46d   :  { %5347 = vmatprep.subr.mxu1 %v6005_v34  ;;  %5382 = vmatprep.subr.mxu0 %v6005_v34 }
 0x46e   :  { %5348 = vmatpush3.msra.mxu1 %v6109_v8  ;;  %5383 = vmatpush3.msra.mxu0 %v6114_v9 }
 0x46f   :  { %5349 = vmatprep.subr.mxu1 %v6005_v34  ;;  %5384 = vmatprep.subr.mxu0 %v6005_v34 }
 0x470   :  { %5350 = vmatpush3.msra.mxu1 %v6119_v10  ;;  %5385 = vmatpush3.msra.mxu0 %v6124_v11  ;;  %v1756_v56 = vpop.permute.xlu1 %1755 }
 0x471   :  { %5351 = vmatprep.subr.mxu1 %v6005_v34  ;;  %5386 = vmatprep.subr.mxu0 %v6005_v34 }
 0x472   :  { %5352 = vmatpush3.msra.mxu1 %v6129_v12  ;;  %5387 = vmatpush3.msra.mxu0 %v6134_v13  ;;  %v4732_v13 = vld [vmem:[%s4683_s24 + $0x2] sm:$0x3] }
 0x473   :  { %5353 = vmatprep.subr.mxu1 %v6005_v34  ;;  %5388 = vmatprep.subr.mxu0 %v6005_v34 }
 0x474   :  { %5354 = vmatpush3.msra.mxu1 %v6139_v14  ;;  %5389 = vmatpush3.msra.mxu0 %v6144_v15  ;;  %v1435_v14 = vld [vmem:[%s4683_s24] sm:$0x3]  ;;  %v4737_v15 = vld [vmem:[%s4683_s24 + $0x4] sm:$0x3]  ;;  %v1763_v36 = vpop.permute.xlu1 %1762  ;;  %s6044_s24 = smov 42  }
 0x475   :  { %5355 = vmatprep.subr.mxu1 %v6005_v34  ;;  %5390 = vmatprep.subr.mxu0 %v6005_v34  ;;  %s4699_s27 = sld [smem:[%s7145_s0 + %s6044_s24]]  }
 0x476   :  { %5356 = vmatpush3.msra.mxu1 %v6149_v16  ;;  %5391 = vmatpush3.msra.mxu0 %v6154_v17 }
 0x477   :  { %5357 = vmatprep.subr.mxu1 %v6005_v34  ;;  %5392 = vmatprep.subr.mxu0 %v6005_v34 }
 0x478   :  { %5358 = vmatpush3.msra.mxu1 %v6159_v18  ;;  %5393 = vmatpush3.msra.mxu0 %v6164_v19 }
 0x479   :  { %5359 = vmatprep.subr.mxu1 %v6005_v34  ;;  %5394 = vmatprep.subr.mxu0 %v6005_v34 }
 0x47a   :  { %5360 = vmatpush3.msra.mxu1 %v6169_v20  ;;  %5395 = vmatpush3.msra.mxu0 %v6174_v21  ;;  %v1676_v20 = vld [vmem:[%s4684_s28] sm:$0x3]  ;;  %s6045_s28 = smov 44  }
 0x47b   :  { %5361 = vmatprep.subr.mxu1 %v6005_v34  ;;  %5396 = vmatprep.subr.mxu0 %v6005_v34  ;;  %v1773_v21 = vld [vmem:[%s4674_s2] sm:$0x3]  ;;  %s4701_s1 = sld [smem:[%s7145_s0 + %s6045_s28]]   ;;  %s6046_s2 = smov 45  }
 0x47c   :  { %5362 = vmatpush3.msra.mxu1 %v6179_v22  ;;  %5397 = vmatpush3.msra.mxu0 %v6184_v23  ;;  %s4702_s5 = sld [smem:[%s7145_s0 + %s6046_s2]]  }
 0x47d   :  { %5363 = vmatprep.subr.mxu1 %v6005_v34  ;;  %5398 = vmatprep.subr.mxu0 %v6005_v34 }
 0x47e   :  { %5364 = vmatpush3.msra.mxu1 %v6189_v24  ;;  %5399 = vmatpush3.msra.mxu0 %v6199_v25  ;;  %v1673_v24 = vpop.permute.xlu0 %1672 }
 0x47f   :  { %5365 = vmatprep.subr.mxu1 %v6005_v34  ;;  %5400 = vmatprep.subr.mxu0 %v6005_v34 }
 0x480   :  { %5366 = vmatpush3.msra.mxu1 %v6204_v26  ;;  %5401 = vmatpush3.msra.mxu0 %v6209_v27 }
 0x481   :  { %5367 = vmatprep.subr.mxu1 %v6005_v34  ;;  %5402 = vmatprep.subr.mxu0 %v6005_v34 }
 0x482   :  { %5368 = vmatpush3.msra.mxu1 %v6214_v28  ;;  %5403 = vmatpush3.msra.mxu0 %v6219_v29 }
 0x483   :  { %5369 = vmatprep.subr.mxu1 %v6005_v34  ;;  %5404 = vmatprep.subr.mxu0 %v6005_v34 }
 0x484   :  { %5370 = vmatpush3.msra.mxu1 %v6224_v30  ;;  %5371 = vmatprep.mubr.msk.f32.mxu1 %vm6006_vm0, %v6005_v34  ;;  %v1778_v30 = vpop.permute.xlu0 %1777 }
 0x485   :  { %5405 = vmatpush3.msra.mxu0 %v6229_v31  ;;  %5406 = vmatprep.mubr.msk.f32.mxu0 %vm6006_vm0, %v6005_v34 }
 0x486   :  { %5409 = vmatprep.subr.mxu1 %v6005_v34  ;;  %5414 = vmatprep.subr.mxu0 %v6005_v34 }
 0x524   :  { %v1198_v0 = vpop.f32.mrf.mxu1  ;;  %v1276_v1 = vpop.f32.mrf.mxu0 }
 0x525   :  { %v1199_v2 = vadd.f32 %v1198_v0, %v6464_v52  ;;  %v6603_v52 = vld [vmem:[%s6071_s10 + $0x70] sm:$0xff]  ;;  %v6615_v0 = vld [vmem:[%s6071_s10 + $0x68] sm:$0xff] }
 0x526   :  { %v5333_v3 = vpop.f32.mrf.mxu1  ;;  %v5338_v4 = vpop.f32.mrf.mxu0 }
 0x527   :  { %v1280_v5 = vadd.f32 %v1276_v1, %v1199_v2  ;;  %v6619_v1 = vld [vmem:[%s6066_s6 + $0x70] sm:$0xff]  ;;  %v6625_v2 = vld [vmem:[%s6071_s10 + $0x60] sm:$0xff]  ;;  %v6629_v3 = vld [vmem:[%s6066_s6 + $0x68] sm:$0xff] }
 0x528   :  { %v6635_v4 = vld [vmem:[%s6071_s10 + $0x58] sm:$0xff] }
 0x529   :  { %v1287_v7 = vadd.f32 %v1285_v6, %v1280_v5  ;;  %v6639_v5 = vld [vmem:[%s6066_s6 + $0x60] sm:$0xff]  ;;  %v6645_v6 = vld [vmem:[%s6071_s10 + $0x50] sm:$0xff] }
 0x52b   :  { %v4731_v8 = vmul.f32 -1.442695, %v1287_v7 }
 0x52d   :  { %5913 = vpow2.f32 %v4731_v8  ;;  %v6655_v8 = vld [vmem:[%s6071_s10 + $0x48] sm:$0xff] }
 0x53a   :  { %v5914_v9 = vpop.eup %5913 }
 0x53b   :  { %v1291_v10 = vadd.f32 1.0, %v5914_v9  ;;  %v6659_v9 = vld [vmem:[%s6066_s6 + $0x50] sm:$0xff] }
 0x53d   :  { %5915 = vrcp.f32 %v1291_v10  ;;  %v6665_v10 = vld [vmem:[%s6071_s10 + $0x40] sm:$0xff] }
 0x54a   :  { %v5916_v11 = vpop.eup %5915 }
 0x54b   :  { %v1294_v12 = vmul.f32 %v5916_v11, %v1287_v7  ;;  %v6649_v7 = vld [vmem:[%s6066_s6 + $0x58] sm:$0xff]  ;;  %v6669_v11 = vld [vmem:[%s6066_s6 + $0x48] sm:$0xff] }
 0x54d   :  { %5372 = vmatmul.mubr.f32.vlgmr.msra.gmra.mxu1 %v1294_v12  ;;  %5407 = vmatmul.mubr.f32.vlgmr.msra.gmra.mxu0 %v1294_v12 }
 0x54e   :  { %5410 = vmatpush3.msk.msra.mxu1 %vm1052_vm5, %v1294_v12  ;;  %5411 = vmatprep.mubr.msk.f32.mxu1 %vm6006_vm0, %v6005_v34  ;;  %v6675_v12 = vld [vmem:[%s6071_s10 + $0x38] sm:$0xff] }
 0x54f   :  { %5419 = vmatprep.subr.mxu1 %v6005_v34  ;;  %5416 = vmatprep.mubr.msk.f32.mxu0 %vm6006_vm0, %v6005_v34 }
 0x551   :  { %5412 = vmatmul.mubr.msk.f32.vlgmr.msra.gmra.mxu1 %vm1048_vm6, %v4732_v13  ;;  %v6679_v13 = vld [vmem:[%s6066_s6 + $0x40] sm:$0xff] }
 0x552   :  { %5421 = vmatprep.mubr.msk.f32.mxu1 %vm6006_vm0, %v6005_v34 }
 0x60d   :  { %v1361_v16 = vpop.f32.mrf.mxu1  ;;  %v1431_v17 = vpop.f32.mrf.mxu0 }
 0x60e   :  { %5415 = vmatpush3.msk.msra.mxu0 %vm1052_vm5, %v1361_v16  ;;  %5420 = vmatpush3.msk.msra.mxu1 %vm1052_vm5, %v1431_v17  ;;  %v6695_v16 = vld [vmem:[%s6071_s10 + $0x28] sm:$0xff]  ;;  %v6699_v17 = vld [vmem:[%s6066_s6 + $0x30] sm:$0xff] }
 0x60f   :  { %v5373_v18 = vpop.f32.mrf.mxu1  ;;  %v5408_v19 = vpop.f32.mrf.mxu0  ;;  %5417 = vmatmul.mubr.msk.f32.vlgmr.msra.gmra.mxu0 %vm1048_vm6, %v1435_v14  ;;  %5422 = vmatmul.mubr.msk.f32.vlgmr.msra.gmra.mxu1 %vm1048_vm6, %v4737_v15  ;;  %v6685_v14 = vld [vmem:[%s6071_s10 + $0x30] sm:$0xff]  ;;  %v6689_v15 = vld [vmem:[%s6066_s6 + $0x38] sm:$0xff] }
 0x610   :  { %5424 = vmatprep.subr.mxu0 %v6005_v34  ;;  %5429 = vmatprep.subr.mxu1 %v6005_v34  ;;  %v6705_v18 = vld [vmem:[%s6071_s10 + $0x20] sm:$0xff]  ;;  %v6709_v19 = vld [vmem:[%s6066_s6 + $0x28] sm:$0xff] }
 0x611   :  { %5425 = vmatpush3.msk.msra.mxu0 %vm1052_vm5, %v6444_v44  ;;  %5430 = vmatpush3.msk.msra.mxu1 %vm824_vm3, %v6399_v62  ;;  %v1510_v22 = vpop.f32.mrf.mxu1 }
 0x612   :  { %5426 = vmatprep.mubr.msk.f32.mxu0 %vm6006_vm0, %v6005_v34  ;;  %5431 = vmatprep.mubr.msk.f32.mxu1 %vm6006_vm0, %v6005_v34 }
 0x613   :  { %5427 = vmatmul.mubr.msk.f32.vlgmr.msra.gmra.mxu0 %vm1048_vm6, %v1676_v20  ;;  %5432 = vmatmul.mubr.msk.f32.vlgmr.msra.gmra.mxu1 %vm820_vm4, %v1773_v21  ;;  %v5413_v23 = vpop.f32.mrf.mxu1  ;;  %v6715_v20 = vld [vmem:[%s6071_s10 + $0x18] sm:$0xff]  ;;  %v6719_v21 = vld [vmem:[%s6066_s6 + $0x20] sm:$0xff] }
 0x614   :  { %5434 = vmatprep.subr.mxu0 %v6005_v34  ;;  %5436 = vmatprep.mubr.msk.f32.mxu0 %vm6006_vm0, %v6005_v34  ;;  %v6729_v23 = vld [vmem:[%s6066_s6 + $0x18] sm:$0xff] }
 0x615   :  { %5439 = vmatprep.subr.mxu1 %v6005_v34  ;;  %5441 = vmatprep.mubr.msk.f32.mxu1 %vm6006_vm0, %v6005_v34 }
 0x6cf   :  { %v1586_v25 = vpop.f32.mrf.mxu0  ;;  %v1664_v26 = vpop.f32.mrf.mxu1 }
 0x6d0   :  { %v1587_v27 = vadd.f32 %v1586_v25, %v1510_v22  ;;  %v6725_v22 = vld [vmem:[%s6071_s10 + $0x10] sm:$0xff] }
 0x6d1   :  { %v5418_v28 = vpop.f32.mrf.mxu0  ;;  %v5423_v29 = vpop.f32.mrf.mxu1  ;;  %v6739_v25 = vld [vmem:[%s6066_s6 + $0x10] sm:$0xff] }
 0x6d2   :  { %v1668_v31 = vadd.f32 %v1664_v26, %v1587_v27  ;;  %v6747_v26 = vld [vmem:[%s6066_s6 + $0x8] sm:$0xff]  ;;  %v6751_v27 = vld [vmem:[%s6071_s10] sm:$0xff] }
 0x6d3   :  { %v1746_v54 = vpop.f32.mrf.mxu0  ;;  %v1849_v55 = vpop.f32.mrf.mxu1  ;;  %v6757_v28 = vld [vmem:[%s6066_s6] sm:$0xff]  ;;  %s6042_s6 = smov 29  }
 0x6d4   :  { %v1675_v57 = vadd.f32 %v1673_v24, %v1668_v31  ;;  %v1850_v58 = vadd.f32 %v1849_v55, %v1778_v30  ;;  %v6735_v24 = vld [vmem:[%s6071_s10 + $0x8] sm:$0xff]  ;;  %s4686_s19 = sld [smem:[%s7145_s0 + %s6042_s6]]  }
 0x6d5   :  { %v5428_v59 = vpop.f32.mrf.mxu0  ;;  %v5433_v60 = vpop.f32.mrf.mxu1 }
 0x6d6   :  { %v1750_v61 = vadd.f32 %v1746_v54, %v1675_v57  ;;  %v4745_v63 = vmul.f32 -1.442695, %v1850_v58  ;;  %v2094_v60 = vpop.permute.xlu0 %2093 }
 0x6d8   :  { %v1751_v33 = vadd.f32 %v1750_v61, %v6444_v44  ;;  %5917 = vpow2.f32 %v4745_v63  ;;  %v2101_v63 = vpop.permute.xlu1 %2100 }
 0x6da   :  { %v1758_v35 = vmul.f32 %v1756_v56, %v1751_v33 }
 0x6dc   :  { %v1765_v37 = vadd.f32 %v1763_v36, %v1758_v35 }
 0x6de   :  { %v4742_v38 = vmul.f32 -1.442695, %v1765_v37 }
 0x6e0   :  { %5919 = vpow2.f32 %v4742_v38 }
 0x6e5   :  { %v5918_v40 = vpop.eup %5917 }
 0x6e6   :  { %v1856_v41 = vadd.f32 1.0, %v5918_v40 }
 0x6e8   :  { %5921 = vrcp.f32 %v1856_v41  ;;  %v4753_v41 = vld [vmem:[%s4686_s19 + $0x4] sm:$0xf] }
 0x6ed   :  { %v5920_v42 = vpop.eup %5919 }
 0x6ee   :  { %v1769_v43 = vadd.f32 1.0, %v5920_v42  ;;  %v2251_v42 = vld [vmem:[%s4686_s19] sm:$0xf] }
 0x6f0   :  { %5923 = vrcp.f32 %v1769_v43  ;;  %v4758_v43 = vld [vmem:[%s4686_s19 + $0x8] sm:$0xf]  ;;  %s6050_s19 = smov 36  }
 0x6f1   :  { %s4693_s22 = sld [smem:[%s7145_s0 + %s6050_s19]]  }
 0x6f5   :  { %v5922_v44 = vpop.eup %5921 }
 0x6f6   :  { %v1859_v45 = vmul.f32 %v5922_v44, %v1850_v58 }
 0x6f8   :  { %5435 = vmatpush3.msk.msra.mxu0 %vm1052_vm5, %v1859_v45 }
 0x6f9   :  { %5444 = vmatprep.subr.mxu0 %v6005_v34  ;;  %5437 = vmatmul.mubr.msk.f32.vlgmr.msra.gmra.mxu0 %vm1048_vm6, %v1861_v46 }
 0x6fa   :  { %5445 = vmatpush3.msk.msra.mxu0 %vm824_vm3, %v6399_v62  ;;  %5446 = vmatprep.mubr.msk.f32.mxu0 %vm6006_vm0, %v6005_v34 }
 0x6fb   :  { %5484 = vmatprep.subr.mxu0 %v6005_v34 }
 0x6fd   :  { %v5924_v48 = vpop.eup %5923  ;;  %5447 = vmatmul.mubr.msk.f32.vlgmr.msra.gmra.mxu0 %vm820_vm4, %v2014_v47 }
 0x6fe   :  { %v1772_v49 = vmul.f32 %v5924_v48, %v1765_v37  ;;  %5485 = vmatpush3.msra.mxu0 %v6595_v51  ;;  %5516 = vmatprep.mubr.msk.f32.mxu0 %vm6006_vm0, %v6005_v34 }
 0x6ff   :  { %5486 = vmatprep.subr.mxu0 %v6005_v34 }
 0x700   :  { %5440 = vmatpush3.msk.msra.mxu1 %vm1052_vm5, %v1772_v49  ;;  %5487 = vmatpush3.msra.mxu0 %v6603_v52 }
 0x701   :  { %5442 = vmatmul.mubr.msk.f32.vlgmr.msra.gmra.mxu1 %vm1048_vm6, %v1860_v50  ;;  %5449 = vmatprep.subr.mxu1 %v6005_v34 }
 0x702   :  { %5450 = vmatpush3.msra.mxu1 %v6609_v53  ;;  %5488 = vmatprep.subr.mxu0 %v6005_v34 }
 0x703   :  { %5451 = vmatprep.subr.mxu1 %v6005_v34  ;;  %5489 = vmatpush3.msra.mxu0 %v6615_v0 }
 0x704   :  { %5452 = vmatpush3.msra.mxu1 %v6619_v1  ;;  %5490 = vmatprep.subr.mxu0 %v6005_v34 }
 0x705   :  { %5453 = vmatprep.subr.mxu1 %v6005_v34  ;;  %5491 = vmatpush3.msra.mxu0 %v6625_v2 }
 0x706   :  { %5454 = vmatpush3.msra.mxu1 %v6629_v3  ;;  %5492 = vmatprep.subr.mxu0 %v6005_v34 }
 0x707   :  { %5455 = vmatprep.subr.mxu1 %v6005_v34  ;;  %5493 = vmatpush3.msra.mxu0 %v6635_v4 }
 0x708   :  { %5456 = vmatpush3.msra.mxu1 %v6639_v5  ;;  %5494 = vmatprep.subr.mxu0 %v6005_v34 }
 0x709   :  { %5457 = vmatprep.subr.mxu1 %v6005_v34  ;;  %5495 = vmatpush3.msra.mxu0 %v6645_v6 }
 0x70a   :  { %5458 = vmatpush3.msra.mxu1 %v6649_v7  ;;  %5496 = vmatprep.subr.mxu0 %v6005_v34 }
 0x70b   :  { %5459 = vmatprep.subr.mxu1 %v6005_v34  ;;  %5497 = vmatpush3.msra.mxu0 %v6655_v8 }
 0x70c   :  { %5460 = vmatpush3.msra.mxu1 %v6659_v9  ;;  %5498 = vmatprep.subr.mxu0 %v6005_v34 }
 0x70d   :  { %5461 = vmatprep.subr.mxu1 %v6005_v34  ;;  %5499 = vmatpush3.msra.mxu0 %v6665_v10 }
 0x70e   :  { %5462 = vmatpush3.msra.mxu1 %v6669_v11  ;;  %5500 = vmatprep.subr.mxu0 %v6005_v34 }
 0x70f   :  { %5463 = vmatprep.subr.mxu1 %v6005_v34  ;;  %5501 = vmatpush3.msra.mxu0 %v6675_v12 }
 0x710   :  { %5464 = vmatpush3.msra.mxu1 %v6679_v13  ;;  %5502 = vmatprep.subr.mxu0 %v6005_v34 }
 0x711   :  { %5465 = vmatprep.subr.mxu1 %v6005_v34  ;;  %5503 = vmatpush3.msra.mxu0 %v6685_v14 }
 0x712   :  { %5466 = vmatpush3.msra.mxu1 %v6689_v15  ;;  %5504 = vmatprep.subr.mxu0 %v6005_v34 }
 0x713   :  { %5467 = vmatprep.subr.mxu1 %v6005_v34  ;;  %5505 = vmatpush3.msra.mxu0 %v6695_v16 }
 0x714   :  { %5468 = vmatpush3.msra.mxu1 %v6699_v17  ;;  %5506 = vmatprep.subr.mxu0 %v6005_v34 }
 0x715   :  { %5469 = vmatprep.subr.mxu1 %v6005_v34  ;;  %5507 = vmatpush3.msra.mxu0 %v6705_v18 }
 0x716   :  { %5470 = vmatpush3.msra.mxu1 %v6709_v19  ;;  %5508 = vmatprep.subr.mxu0 %v6005_v34 }
 0x717   :  { %5471 = vmatprep.subr.mxu1 %v6005_v34  ;;  %5509 = vmatpush3.msra.mxu0 %v6715_v20 }
 0x718   :  { %5472 = vmatpush3.msra.mxu1 %v6719_v21  ;;  %5510 = vmatprep.subr.mxu0 %v6005_v34 }
 0x719   :  { %5473 = vmatprep.subr.mxu1 %v6005_v34  ;;  %5511 = vmatpush3.msra.mxu0 %v6725_v22 }
 0x71a   :  { %5474 = vmatpush3.msra.mxu1 %v6729_v23  ;;  %5512 = vmatprep.subr.mxu0 %v6005_v34 }
 0x71b   :  { %5475 = vmatprep.subr.mxu1 %v6005_v34  ;;  %5513 = vmatpush3.msra.mxu0 %v6735_v24 }
 0x71c   :  { %5476 = vmatpush3.msra.mxu1 %v6739_v25  ;;  %5514 = vmatprep.subr.mxu0 %v6005_v34 }
 0x71d   :  { %5477 = vmatprep.subr.mxu1 %v6005_v34  ;;  %5481 = vmatprep.mubr.msk.f32.mxu1 %vm6006_vm0, %v6005_v34 }
 0x71e   :  { %5478 = vmatpush3.msra.mxu1 %v6747_v26  ;;  %5515 = vmatpush3.msra.mxu0 %v6751_v27 }
 0x71f   :  { %5479 = vmatprep.subr.mxu1 %v6005_v34  ;;  %5524 = vmatprep.subr.mxu0 %v6005_v34 }
 0x720   :  { %5480 = vmatpush3.msra.mxu1 %v6757_v28 }
 0x721   :  { %5519 = vmatprep.subr.mxu1 %v6005_v34 }
 0x7b9   :  { %v1934_v29 = vpop.f32.mrf.mxu0 }
 0x7bb   :  { %v5438_v30 = vpop.f32.mrf.mxu0 }
 0x7bd   :  { %v2084_v31 = vpop.f32.mrf.mxu0 }
 0x7bf   :  { %v5448_v54 = vpop.f32.mrf.mxu0 }
 0x7c1   :  { %v2010_v55 = vpop.f32.mrf.mxu1 }
 0x7c2   :  { %v2011_v56 = vadd.f32 %v2010_v55, %v1934_v29 }
 0x7c3   :  { %v5443_v57 = vpop.f32.mrf.mxu1 }
 0x7c4   :  { %v2088_v58 = vadd.f32 %v2084_v31, %v2011_v56  ;;  %v2489_v56 = vpop.permute.xlu0 %2488 }
 0x7c6   :  { %v2089_v59 = vadd.f32 %v2088_v58, %v6399_v62 }
 0x7c8   :  { %v2096_v61 = vmul.f32 %v2094_v60, %v2089_v59 }
 0x7ca   :  { %v2103_v33 = vadd.f32 %v2101_v63, %v2096_v61 }
 0x7cc   :  { %v4752_v35 = vmul.f32 -1.442695, %v2103_v33 }
 0x7ce   :  { %5925 = vpow2.f32 %v4752_v35  ;;  %v2504_v35 = vpop.permute.xlu1 %2503 }
 0x7db   :  { %v5926_v36 = vpop.eup %5925 }
 0x7dc   :  { %v2107_v37 = vadd.f32 1.0, %v5926_v36 }
 0x7de   :  { %5927 = vrcp.f32 %v2107_v37 }
 0x7eb   :  { %v5928_v38 = vpop.eup %5927 }
 0x7ec   :  { %v2110_v40 = vmul.f32 %v5928_v38, %v2103_v33  ;;  %v2499_v33 = vld [vmem:[%s4690_s23] sm:$0x3]  ;;  %s6051_s23 = smov 47  }
 0x7ed   :  { %s4704_s26 = sld [smem:[%s7145_s0 + %s6051_s23]]  }
 0x7ee   :  { %5482 = vmatmul.mubr.f32.vlgmr.msra.gmra.mxu1 %v2110_v40  ;;  %5517 = vmatmul.mubr.f32.vlgmr.msra.gmra.mxu0 %v2110_v40 }
 0x7ef   :  { %5520 = vmatpush3.msk.msra.mxu1 %vm824_vm3, %v2110_v40  ;;  %5521 = vmatprep.mubr.msk.f32.mxu1 %vm6006_vm0, %v6005_v34 }
 0x7f0   :  { %5529 = vmatprep.subr.mxu1 %v6005_v34  ;;  %5526 = vmatprep.mubr.msk.f32.mxu0 %vm6006_vm0, %v6005_v34 }
 0x7f2   :  { %5522 = vmatmul.mubr.msk.f32.vlgmr.msra.gmra.mxu1 %vm820_vm4, %v4753_v41 }
 0x7f3   :  { %5531 = vmatprep.mubr.msk.f32.mxu1 %vm6006_vm0, %v6005_v34 }
 0x8ae   :  { %v2177_v44 = vpop.f32.mrf.mxu1  ;;  %v2247_v45 = vpop.f32.mrf.mxu0 }
 0x8af   :  { %5525 = vmatpush3.msk.msra.mxu0 %vm824_vm3, %v2177_v44  ;;  %5530 = vmatpush3.msk.msra.mxu1 %vm824_vm3, %v2247_v45  ;;  %v4765_v45 = vld [vmem:[%s4699_s27 + $0x2] sm:$0x3] }
 0x8b0   :  { %v5483_v46 = vpop.f32.mrf.mxu1  ;;  %v5518_v47 = vpop.f32.mrf.mxu0  ;;  %5527 = vmatmul.mubr.msk.f32.vlgmr.msra.gmra.mxu0 %vm820_vm4, %v2251_v42  ;;  %5532 = vmatmul.mubr.msk.f32.vlgmr.msra.gmra.mxu1 %vm820_vm4, %v4758_v43 }
 0x8b1   :  { %5534 = vmatprep.subr.mxu0 %v6005_v34  ;;  %5536 = vmatprep.mubr.msk.f32.mxu0 %vm6006_vm0, %v6005_v34  ;;  %v2729_v46 = vld [vmem:[%s4699_s27] sm:$0x3]  ;;  %v4770_v47 = vld [vmem:[%s4699_s27 + $0x4] sm:$0x3]  ;;  %s6052_s27 = smov 49  }
 0x8b2   :  { %v2326_v48 = vpop.f32.mrf.mxu1  ;;  %5539 = vmatprep.subr.mxu1 %v6005_v34  ;;  %5571 = vmatprep.mubr.msk.f32.mxu1 %vm6006_vm0, %v6005_v34  ;;  %s4706_s30 = sld [smem:[%s7145_s0 + %s6052_s27]]  }
 0x8b3   :  { %5540 = vmatpush3.msra.mxu1 %v6609_v53 }
 0x8b4   :  { %v5523_v49 = vpop.f32.mrf.mxu1  ;;  %5541 = vmatprep.subr.mxu1 %v6005_v34 }
 0x8b5   :  { %5542 = vmatpush3.msra.mxu1 %v6619_v1 }
 0x8b6   :  { %5543 = vmatprep.subr.mxu1 %v6005_v34 }
 0x8b7   :  { %5544 = vmatpush3.msra.mxu1 %v6629_v3 }
 0x8b8   :  { %5545 = vmatprep.subr.mxu1 %v6005_v34 }
 0x8b9   :  { %5546 = vmatpush3.msra.mxu1 %v6639_v5 }
 0x8ba   :  { %5547 = vmatprep.subr.mxu1 %v6005_v34 }
 0x8bb   :  { %5548 = vmatpush3.msra.mxu1 %v6649_v7 }
 0x8bc   :  { %5549 = vmatprep.subr.mxu1 %v6005_v34 }
 0x8bd   :  { %5550 = vmatpush3.msra.mxu1 %v6659_v9 }
 0x8be   :  { %5551 = vmatprep.subr.mxu1 %v6005_v34 }
 0x8bf   :  { %5552 = vmatpush3.msra.mxu1 %v6669_v11 }
 0x8c0   :  { %5553 = vmatprep.subr.mxu1 %v6005_v34 }
 0x8c1   :  { %5554 = vmatpush3.msra.mxu1 %v6679_v13 }
 0x8c2   :  { %5555 = vmatprep.subr.mxu1 %v6005_v34 }
 0x8c3   :  { %5556 = vmatpush3.msra.mxu1 %v6689_v15 }
 0x8c4   :  { %5557 = vmatprep.subr.mxu1 %v6005_v34 }
 0x8c5   :  { %5558 = vmatpush3.msra.mxu1 %v6699_v17 }
 0x8c6   :  { %5559 = vmatprep.subr.mxu1 %v6005_v34 }
 0x8c7   :  { %5560 = vmatpush3.msra.mxu1 %v6709_v19 }
 0x8c8   :  { %5561 = vmatprep.subr.mxu1 %v6005_v34 }
 0x8c9   :  { %5562 = vmatpush3.msra.mxu1 %v6719_v21 }
 0x8ca   :  { %5563 = vmatprep.subr.mxu1 %v6005_v34 }
 0x8cb   :  { %5564 = vmatpush3.msra.mxu1 %v6729_v23 }
 0x8cc   :  { %5565 = vmatprep.subr.mxu1 %v6005_v34 }
 0x8cd   :  { %5566 = vmatpush3.msra.mxu1 %v6739_v25 }
 0x8ce   :  { %5567 = vmatprep.subr.mxu1 %v6005_v34 }
 0x8cf   :  { %5568 = vmatpush3.msra.mxu1 %v6747_v26 }
 0x8d0   :  { %5569 = vmatprep.subr.mxu1 %v6005_v34 }
 0x8d1   :  { %5570 = vmatpush3.msra.mxu1 %v6757_v28 }
 0x8d2   :  { %5609 = vmatprep.subr.mxu1 %v6005_v34 }
 0x970   :  { %v2402_v50 = vpop.f32.mrf.mxu0  ;;  %v2480_v29 = vpop.f32.mrf.mxu1 }
 0x971   :  { %v2403_v30 = vadd.f32 %v2402_v50, %v2326_v48 }
 0x972   :  { %v5528_v31 = vpop.f32.mrf.mxu0  ;;  %v5533_v54 = vpop.f32.mrf.mxu1 }
 0x973   :  { %v2484_v55 = vadd.f32 %v2480_v29, %v2403_v30 }
 0x975   :  { %v2491_v57 = vadd.f32 %v2489_v56, %v2484_v55 }
 0x977   :  { %v4761_v58 = vmul.f32 -1.442695, %v2491_v57 }
 0x979   :  { %5929 = vpow2.f32 %v4761_v58 }
 0x986   :  { %v5930_v59 = vpop.eup %5929 }
 0x987   :  { %v2495_v60 = vadd.f32 1.0, %v5930_v59 }
 0x989   :  { %5931 = vrcp.f32 %v2495_v60  ;;  %v2967_v60 = vpop.permute.xlu0 %2966 }
 0x996   :  { %v5932_v61 = vpop.eup %5931 }
 0x997   :  { %v6819_v63 = vmul.f32 %v5932_v61, %v2491_v57 }
 0x999   :  { %5535 = vmatpush3.msk.msra.mxu0 %vm824_vm3, %v6819_v63 }
 0x99a   :  { %5537 = vmatmul.mubr.msk.f32.vlgmr.msra.gmra.mxu0 %vm820_vm4, %v2499_v33  ;;  %5574 = vmatprep.subr.mxu0 %v6005_v34 }
 0x99b   :  { %5575 = vmatpush3.msra.mxu0 %v6595_v51  ;;  %5606 = vmatprep.mubr.msk.f32.mxu0 %vm6006_vm0, %v6005_v34 }
 0x99c   :  { %5576 = vmatprep.subr.mxu0 %v6005_v34 }
 0x99d   :  { %5577 = vmatpush3.msra.mxu0 %v6603_v52 }
 0x99e   :  { %5578 = vmatprep.subr.mxu0 %v6005_v34 }
 0x99f   :  { %5579 = vmatpush3.msra.mxu0 %v6615_v0 }
 0x9a0   :  { %5580 = vmatprep.subr.mxu0 %v6005_v34 }
 0x9a1   :  { %5581 = vmatpush3.msra.mxu0 %v6625_v2 }
 0x9a2   :  { %5582 = vmatprep.subr.mxu0 %v6005_v34 }
 0x9a3   :  { %5583 = vmatpush3.msra.mxu0 %v6635_v4 }
 0x9a4   :  { %5584 = vmatprep.subr.mxu0 %v6005_v34 }
 0x9a5   :  { %5585 = vmatpush3.msra.mxu0 %v6645_v6 }
 0x9a6   :  { %5586 = vmatprep.subr.mxu0 %v6005_v34 }
 0x9a7   :  { %5587 = vmatpush3.msra.mxu0 %v6655_v8 }
 0x9a8   :  { %5588 = vmatprep.subr.mxu0 %v6005_v34 }
 0x9a9   :  { %5589 = vmatpush3.msra.mxu0 %v6665_v10 }
 0x9aa   :  { %5590 = vmatprep.subr.mxu0 %v6005_v34 }
 0x9ab   :  { %5591 = vmatpush3.msra.mxu0 %v6675_v12 }
 0x9ac   :  { %5592 = vmatprep.subr.mxu0 %v6005_v34 }
 0x9ad   :  { %5593 = vmatpush3.msra.mxu0 %v6685_v14 }
 0x9ae   :  { %5594 = vmatprep.subr.mxu0 %v6005_v34 }
 0x9af   :  { %5595 = vmatpush3.msra.mxu0 %v6695_v16 }
 0x9b0   :  { %5596 = vmatprep.subr.mxu0 %v6005_v34 }
 0x9b1   :  { %5597 = vmatpush3.msra.mxu0 %v6705_v18 }
 0x9b2   :  { %5598 = vmatprep.subr.mxu0 %v6005_v34 }
 0x9b3   :  { %5599 = vmatpush3.msra.mxu0 %v6715_v20 }
 0x9b4   :  { %5600 = vmatprep.subr.mxu0 %v6005_v34 }
 0x9b5   :  { %5601 = vmatpush3.msra.mxu0 %v6725_v22 }
 0x9b6   :  { %5602 = vmatprep.subr.mxu0 %v6005_v34 }
 0x9b7   :  { %5603 = vmatpush3.msra.mxu0 %v6735_v24 }
 0x9b8   :  { %5604 = vmatprep.subr.mxu0 %v6005_v34 }
 0x9b9   :  { %5605 = vmatpush3.msra.mxu0 %v6751_v27 }
 0x9ba   :  { %5614 = vmatprep.subr.mxu0 %v6005_v34 }
 0xa5a   :  { %v2578_v36 = vpop.f32.mrf.mxu0 }
 0xa5b   :  { %v2579_v37 = vadd.f32 %v2578_v36, %v2504_v35 }
 0xa5c   :  { %v5538_v38 = vpop.f32.mrf.mxu0 }
 0xa5d   :  { %v4764_v40 = vmul.f32 -1.442695, %v2579_v37 }
 0xa5f   :  { %5933 = vpow2.f32 %v4764_v40  ;;  %v4774_v40 = vld [vmem:[%s4701_s1 + $0x2] sm:$0x3] }
 0xa6c   :  { %v5934_v41 = vpop.eup %5933 }
 0xa6d   :  { %v2585_v42 = vadd.f32 1.0, %v5934_v41  ;;  %v3117_v41 = vld [vmem:[%s4701_s1] sm:$0x3] }
 0xa6f   :  { %5935 = vrcp.f32 %v2585_v42  ;;  %v4779_v42 = vld [vmem:[%s4701_s1 + $0x4] sm:$0x3]  ;;  %s6053_s1 = smov 50  }
 0xa70   :  { %s4707_s4 = sld [smem:[%s7145_s0 + %s6053_s1]]  }
 0xa7c   :  { %v5936_v43 = vpop.eup %5935 }
 0xa7d   :  { %v6862_v44 = vmul.f32 %v5936_v43, %v2579_v37 }
 0xa7f   :  { %5572 = vmatmul.mubr.f32.vlgmr.msra.gmra.mxu1 %v6862_v44  ;;  %5607 = vmatmul.mubr.f32.vlgmr.msra.gmra.mxu0 %v6862_v44 }
 0xa80   :  { %5610 = vmatpush3.msk.msra.mxu1 %vm1052_vm5, %v6862_v44  ;;  %5611 = vmatprep.mubr.msk.f32.mxu1 %vm6006_vm0, %v6005_v34 }
 0xa81   :  { %5619 = vmatprep.subr.mxu1 %v6005_v34  ;;  %5616 = vmatprep.mubr.msk.f32.mxu0 %vm6006_vm0, %v6005_v34 }
 0xa83   :  { %5612 = vmatmul.mubr.msk.f32.vlgmr.msra.gmra.mxu1 %vm1048_vm6, %v4765_v45 }
 0xa84   :  { %5621 = vmatprep.mubr.msk.f32.mxu1 %vm6006_vm0, %v6005_v34 }
 0xb3f   :  { %v2655_v48 = vpop.f32.mrf.mxu1  ;;  %v2725_v49 = vpop.f32.mrf.mxu0 }
 0xb40   :  { %5615 = vmatpush3.msk.msra.mxu0 %vm1052_vm5, %v2655_v48  ;;  %5620 = vmatpush3.msk.msra.mxu1 %vm1052_vm5, %v2725_v49  ;;  %v3358_v48 = vld [vmem:[%s4702_s5] sm:$0x3]  ;;  %s6054_s5 = smov 48  }
 0xb41   :  { %v5573_v50 = vpop.f32.mrf.mxu1  ;;  %v5608_v29 = vpop.f32.mrf.mxu0  ;;  %5617 = vmatmul.mubr.msk.f32.vlgmr.msra.gmra.mxu0 %vm1048_vm6, %v2729_v46  ;;  %5622 = vmatmul.mubr.msk.f32.vlgmr.msra.gmra.mxu1 %vm1048_vm6, %v4770_v47  ;;  %v3455_v49 = vld [vmem:[%s4692_s12] sm:$0x3]  ;;  %s4705_s9 = sld [smem:[%s7145_s0 + %s6054_s5]]   ;;  %s6055_s12 = smov 51  }
 0xb42   :  { %5624 = vmatprep.subr.mxu0 %v6005_v34  ;;  %5659 = vmatprep.subr.mxu1 %v6005_v34  ;;  %s4708_s17 = sld [smem:[%s7145_s0 + %s6055_s12]]  }
 0xb43   :  { %v6882_v30 = vpop.f32.mrf.mxu1  ;;  %5625 = vmatpush3.msra.mxu0 %v6609_v53  ;;  %5660 = vmatpush3.msra.mxu1 %v6595_v51 }
 0xb44   :  { %5626 = vmatprep.subr.mxu0 %v6005_v34  ;;  %5661 = vmatprep.subr.mxu1 %v6005_v34 }
 0xb45   :  { %v5613_v31 = vpop.f32.mrf.mxu1  ;;  %5627 = vmatpush3.msra.mxu0 %v6619_v1  ;;  %5662 = vmatpush3.msra.mxu1 %v6603_v52 }
 0xb46   :  { %5628 = vmatprep.subr.mxu0 %v6005_v34  ;;  %5663 = vmatprep.subr.mxu1 %v6005_v34 }
 0xb47   :  { %5629 = vmatpush3.msra.mxu0 %v6629_v3  ;;  %5664 = vmatpush3.msra.mxu1 %v6615_v0 }
 0xb48   :  { %5630 = vmatprep.subr.mxu0 %v6005_v34  ;;  %5665 = vmatprep.subr.mxu1 %v6005_v34 }
 0xb49   :  { %5631 = vmatpush3.msra.mxu0 %v6639_v5  ;;  %5666 = vmatpush3.msra.mxu1 %v6625_v2 }
 0xb4a   :  { %5632 = vmatprep.subr.mxu0 %v6005_v34  ;;  %5667 = vmatprep.subr.mxu1 %v6005_v34 }
 0xb4b   :  { %5633 = vmatpush3.msra.mxu0 %v6649_v7  ;;  %5668 = vmatpush3.msra.mxu1 %v6635_v4 }
 0xb4c   :  { %5634 = vmatprep.subr.mxu0 %v6005_v34  ;;  %5669 = vmatprep.subr.mxu1 %v6005_v34 }
 0xb4d   :  { %5635 = vmatpush3.msra.mxu0 %v6659_v9  ;;  %5670 = vmatpush3.msra.mxu1 %v6645_v6 }
 0xb4e   :  { %5636 = vmatprep.subr.mxu0 %v6005_v34  ;;  %5671 = vmatprep.subr.mxu1 %v6005_v34 }
 0xb4f   :  { %5637 = vmatpush3.msra.mxu0 %v6669_v11  ;;  %5672 = vmatpush3.msra.mxu1 %v6655_v8 }
 0xb50   :  { %5638 = vmatprep.subr.mxu0 %v6005_v34  ;;  %5673 = vmatprep.subr.mxu1 %v6005_v34 }
 0xb51   :  { %5639 = vmatpush3.msra.mxu0 %v6679_v13  ;;  %5674 = vmatpush3.msra.mxu1 %v6665_v10 }
 0xb52   :  { %5640 = vmatprep.subr.mxu0 %v6005_v34  ;;  %5675 = vmatprep.subr.mxu1 %v6005_v34 }
 0xb53   :  { %5641 = vmatpush3.msra.mxu0 %v6689_v15  ;;  %5676 = vmatpush3.msra.mxu1 %v6675_v12 }
 0xb54   :  { %5642 = vmatprep.subr.mxu0 %v6005_v34  ;;  %5677 = vmatprep.subr.mxu1 %v6005_v34 }
 0xb55   :  { %5643 = vmatpush3.msra.mxu0 %v6699_v17  ;;  %5678 = vmatpush3.msra.mxu1 %v6685_v14 }
 0xb56   :  { %5644 = vmatprep.subr.mxu0 %v6005_v34  ;;  %5679 = vmatprep.subr.mxu1 %v6005_v34 }
 0xb57   :  { %5645 = vmatpush3.msra.mxu0 %v6709_v19  ;;  %5680 = vmatpush3.msra.mxu1 %v6695_v16 }
 0xb58   :  { %5646 = vmatprep.subr.mxu0 %v6005_v34  ;;  %5681 = vmatprep.subr.mxu1 %v6005_v34 }
 0xb59   :  { %5647 = vmatpush3.msra.mxu0 %v6719_v21  ;;  %5682 = vmatpush3.msra.mxu1 %v6705_v18 }
 0xb5a   :  { %5648 = vmatprep.subr.mxu0 %v6005_v34  ;;  %5683 = vmatprep.subr.mxu1 %v6005_v34 }
 0xb5b   :  { %5649 = vmatpush3.msra.mxu0 %v6729_v23  ;;  %5684 = vmatpush3.msra.mxu1 %v6715_v20 }
 0xb5c   :  { %5650 = vmatprep.subr.mxu0 %v6005_v34  ;;  %5685 = vmatprep.subr.mxu1 %v6005_v34 }
 0xb5d   :  { %5651 = vmatpush3.msra.mxu0 %v6739_v25  ;;  %5686 = vmatpush3.msra.mxu1 %v6725_v22 }
 0xb5e   :  { %5652 = vmatprep.subr.mxu0 %v6005_v34  ;;  %5687 = vmatprep.subr.mxu1 %v6005_v34 }
 0xb5f   :  { %5653 = vmatpush3.msra.mxu0 %v6747_v26  ;;  %5688 = vmatpush3.msra.mxu1 %v6735_v24 }
 0xb60   :  { %5654 = vmatprep.subr.mxu0 %v6005_v34  ;;  %5689 = vmatprep.subr.mxu1 %v6005_v34 }
 0xb61   :  { %5655 = vmatpush3.msra.mxu0 %v6757_v28  ;;  %5656 = vmatprep.mubr.msk.f32.mxu0 %vm6006_vm0, %v6005_v34 }
 0xb62   :  { %5690 = vmatpush3.msra.mxu1 %v6751_v27  ;;  %5691 = vmatprep.mubr.msk.f32.mxu1 %vm6006_vm0, %v6005_v34 }
 0xb63   :  { %5694 = vmatprep.subr.mxu0 %v6005_v34  ;;  %5699 = vmatprep.subr.mxu1 %v6005_v34 }
 0xc01   :  { %v2880_v54 = vpop.f32.mrf.mxu0  ;;  %v2958_v55 = vpop.f32.mrf.mxu1 }
 0xc02   :  { %v2881_v56 = vadd.f32 %v2880_v54, %v6882_v30  ;;  %v3355_v30 = vpop.permute.xlu1 %3354 }
 0xc03   :  { %v5618_v57 = vpop.f32.mrf.mxu0  ;;  %v5623_v58 = vpop.f32.mrf.mxu1 }
 0xc04   :  { %v2962_v59 = vadd.f32 %v2958_v55, %v2881_v56 }
 0xc06   :  { %v2969_v61 = vadd.f32 %v2967_v60, %v2962_v59  ;;  %v3460_v58 = vpop.permute.xlu1 %3459 }
 0xc08   :  { %v4773_v33 = vmul.f32 -1.442695, %v2969_v61 }
 0xc0a   :  { %5937 = vpow2.f32 %v4773_v33  ;;  %v3438_v33 = vpop.permute.xlu0 %3437 }
 0xc17   :  { %v5938_v35 = vpop.eup %5937 }
 0xc18   :  { %v2973_v36 = vadd.f32 1.0, %v5938_v35 }
 0xc1a   :  { %5939 = vrcp.f32 %v2973_v36 }
 0xc27   :  { %v5940_v37 = vpop.eup %5939 }
 0xc28   :  { %v2976_v38 = vmul.f32 %v5940_v37, %v2969_v61 }
 0xc2a   :  { %5657 = vmatmul.mubr.f32.vlgmr.msra.gmra.mxu0 %v2976_v38  ;;  %5692 = vmatmul.mubr.f32.vlgmr.msra.gmra.mxu1 %v2976_v38 }
 0xc2b   :  { %5695 = vmatpush3.msk.msra.mxu0 %vm1052_vm5, %v2976_v38  ;;  %5696 = vmatprep.mubr.msk.f32.mxu0 %vm6006_vm0, %v6005_v34 }
 0xc2c   :  { %5704 = vmatprep.subr.mxu0 %v6005_v34  ;;  %5701 = vmatprep.mubr.msk.f32.mxu1 %vm6006_vm0, %v6005_v34 }
 0xc2e   :  { %5697 = vmatmul.mubr.msk.f32.vlgmr.msra.gmra.mxu0 %vm1048_vm6, %v4774_v40 }
 0xc2f   :  { %5706 = vmatprep.mubr.msk.f32.mxu0 %vm6006_vm0, %v6005_v34 }
 0xcea   :  { %v3043_v43 = vpop.f32.mrf.mxu0  ;;  %v3113_v45 = vpop.f32.mrf.mxu1 }
 0xceb   :  { %5700 = vmatpush3.msk.msra.mxu1 %vm1052_vm5, %v3043_v43  ;;  %5705 = vmatpush3.msk.msra.mxu0 %vm1052_vm5, %v3113_v45  ;;  %v3445_v45 = vpop.permute.xlu0 %3444 }
 0xcec   :  { %v5658_v46 = vpop.f32.mrf.mxu0  ;;  %v5693_v47 = vpop.f32.mrf.mxu1  ;;  %5702 = vmatmul.mubr.msk.f32.vlgmr.msra.gmra.mxu1 %vm1048_vm6, %v3117_v41  ;;  %5707 = vmatmul.mubr.msk.f32.vlgmr.msra.gmra.mxu0 %vm1048_vm6, %v4779_v42 }
 0xced   :  { %5709 = vmatprep.subr.mxu1 %v6005_v34  ;;  %5714 = vmatprep.subr.mxu0 %v6005_v34 }
 0xcee   :  { %5710 = vmatpush3.msk.msra.mxu1 %vm1052_vm5, %v6862_v44  ;;  %5715 = vmatpush3.msk.msra.mxu0 %vm824_vm3, %v6819_v63  ;;  %v3192_v50 = vpop.f32.mrf.mxu0 }
 0xcef   :  { %5711 = vmatprep.mubr.msk.f32.mxu1 %vm6006_vm0, %v6005_v34  ;;  %5716 = vmatprep.mubr.msk.f32.mxu0 %vm6006_vm0, %v6005_v34 }
 0xcf0   :  { %5712 = vmatmul.mubr.msk.f32.vlgmr.msra.gmra.mxu1 %vm1048_vm6, %v3358_v48  ;;  %5717 = vmatmul.mubr.msk.f32.vlgmr.msra.gmra.mxu0 %vm820_vm4, %v3455_v49  ;;  %v5698_v29 = vpop.f32.mrf.mxu0 }
 0xcf1   :  { %5719 = vmatprep.subr.mxu1 %v6005_v34  ;;  %5721 = vmatprep.mubr.msk.f32.mxu1 %vm6006_vm0, %v6005_v34 }
 0xcf2   :  { %5724 = vmatprep.subr.mxu0 %v6005_v34  ;;  %5726 = vmatprep.mubr.msk.f32.mxu0 %vm6006_vm0, %v6005_v34 }
 0xdac   :  { %v3268_v31 = vpop.f32.mrf.mxu1  ;;  %v3346_v54 = vpop.f32.mrf.mxu0 }
 0xdad   :  { %v3269_v55 = vadd.f32 %v3268_v31, %v3192_v50  ;;  %v3543_v31 = vld [vmem:[%s4694_s18] sm:$0xf]  ;;  %s6056_s18 = smov 7  }
 0xdae   :  { %v5703_v56 = vpop.f32.mrf.mxu1  ;;  %v5708_v57 = vpop.f32.mrf.mxu0  ;;  %s4664_s10 = sld [smem:[%s7145_s0 + %s6056_s18]]  }
 0xdaf   :  { %v3350_v59 = vadd.f32 %v3346_v54, %v3269_v55  ;;  %v3696_v54 = vld [vmem:[%s4695_s16] sm:$0xf] }
 0xdb0   :  { %v3428_v60 = vpop.f32.mrf.mxu1  ;;  %v3531_v61 = vpop.f32.mrf.mxu0  ;;  %v3542_v57 = vld [vmem:[%s4693_s22] sm:$0xf] }
 0xdb1   :  { %v3357_v35 = vadd.f32 %v3355_v30, %v3350_v59  ;;  %v3532_v36 = vadd.f32 %v3531_v61, %v3460_v58  ;;  %v4350_v58 = vld [vmem:[%s4707_s4] sm:$0xff]  ;;  %v4351_v61 = vld [vmem:[%s4707_s4 + $0x8] sm:$0xff] }
 0xdb2   :  { %v5713_v37 = vpop.f32.mrf.mxu1  ;;  %v5718_v38 = vpop.f32.mrf.mxu0 }
 0xdb3   :  { %v3432_v40 = vadd.f32 %v3428_v60, %v3357_v35  ;;  %v4787_v41 = vmul.f32 -1.442695, %v3532_v36 }
 0xdb4   :  { %v4526_v35 = vld [vmem:[%s4664_s10 + $0x8] sm:$0xff] }
 0xdb5   :  { %v3433_v42 = vadd.f32 %v3432_v40, %v6862_v44  ;;  %5941 = vpow2.f32 %v4787_v41 }
 0xdb7   :  { %v3440_v43 = vmul.f32 %v3438_v33, %v3433_v42  ;;  %v4182_v33 = vld [vmem:[%s4705_s9 + $0x8] sm:$0xff] }
 0xdb9   :  { %v3447_v46 = vadd.f32 %v3445_v45, %v3440_v43 }
 0xdbb   :  { %v4784_v47 = vmul.f32 -1.442695, %v3447_v46 }
 0xdbd   :  { %5943 = vpow2.f32 %v4784_v47 }
 0xdc2   :  { %v5942_v48 = vpop.eup %5941 }
 0xdc3   :  { %v3538_v49 = vadd.f32 1.0, %v5942_v48 }
 0xdc5   :  { %5945 = vrcp.f32 %v3538_v49 }
 0xdca   :  { %v5944_v50 = vpop.eup %5943 }
 0xdcb   :  { %v3451_v29 = vadd.f32 1.0, %v5944_v50 }
 0xdcd   :  { %5947 = vrcp.f32 %v3451_v29  ;;  %v4436_v29 = vld [vmem:[%s4708_s17 + $0x8] sm:$0xff] }
 0xdd2   :  { %v5946_v44 = vpop.eup %5945 }
 0xdd3   :  { %v3541_v30 = vmul.f32 %v5946_v44, %v3532_v36 }
 0xdd5   :  { %5720 = vmatpush3.msk.msra.mxu1 %vm1052_vm5, %v3541_v30 }
 0xdd6   :  { %5729 = vmatprep.subr.mxu1 %v6005_v34  ;;  %5722 = vmatmul.mubr.msk.f32.vlgmr.msra.gmra.mxu1 %vm1048_vm6, %v3543_v31 }
 0xdd7   :  { %5730 = vmatpush3.msk.msra.mxu1 %vm824_vm3, %v6819_v63  ;;  %5731 = vmatprep.mubr.msk.f32.mxu1 %vm6006_vm0, %v6005_v34 }
 0xdd8   :  { %5769 = vmatprep.subr.mxu1 %v6005_v34 }
 0xdda   :  { %v5948_v55 = vpop.eup %5947  ;;  %5732 = vmatmul.mubr.msk.f32.vlgmr.msra.gmra.mxu1 %vm820_vm4, %v3696_v54 }
 0xddb   :  { %v3454_v56 = vmul.f32 %v5948_v55, %v3447_v46  ;;  %5770 = vmatpush3.msra.mxu1 %v6595_v51  ;;  %5801 = vmatprep.mubr.msk.f32.mxu1 %vm6006_vm0, %v6005_v34 }
 0xddc   :  { %5771 = vmatprep.subr.mxu1 %v6005_v34 }
 0xddd   :  { %5725 = vmatpush3.msk.msra.mxu0 %vm1052_vm5, %v3454_v56  ;;  %5772 = vmatpush3.msra.mxu1 %v6603_v52 }
 0xdde   :  { %5727 = vmatmul.mubr.msk.f32.vlgmr.msra.gmra.mxu0 %vm1048_vm6, %v3542_v57  ;;  %5734 = vmatprep.subr.mxu0 %v6005_v34 }
 0xddf   :  { %5735 = vmatpush3.msra.mxu0 %v6609_v53  ;;  %5773 = vmatprep.subr.mxu1 %v6005_v34 }
 0xde0   :  { %5736 = vmatprep.subr.mxu0 %v6005_v34  ;;  %5774 = vmatpush3.msra.mxu1 %v6615_v0 }
 0xde1   :  { %5737 = vmatpush3.msra.mxu0 %v6619_v1  ;;  %5775 = vmatprep.subr.mxu1 %v6005_v34 }
 0xde2   :  { %5738 = vmatprep.subr.mxu0 %v6005_v34  ;;  %5776 = vmatpush3.msra.mxu1 %v6625_v2 }
 0xde3   :  { %5739 = vmatpush3.msra.mxu0 %v6629_v3  ;;  %5777 = vmatprep.subr.mxu1 %v6005_v34 }
 0xde4   :  { %5740 = vmatprep.subr.mxu0 %v6005_v34  ;;  %5778 = vmatpush3.msra.mxu1 %v6635_v4 }
 0xde5   :  { %5741 = vmatpush3.msra.mxu0 %v6639_v5  ;;  %5779 = vmatprep.subr.mxu1 %v6005_v34 }
 0xde6   :  { %5742 = vmatprep.subr.mxu0 %v6005_v34  ;;  %5780 = vmatpush3.msra.mxu1 %v6645_v6  ;;  %v3776_v6 = vpop.permute.xlu1 %3775 }
 0xde7   :  { %5743 = vmatpush3.msra.mxu0 %v6649_v7  ;;  %5781 = vmatprep.subr.mxu1 %v6005_v34 }
 0xde8   :  { %5744 = vmatprep.subr.mxu0 %v6005_v34  ;;  %5782 = vmatpush3.msra.mxu1 %v6655_v8  ;;  %v3783_v8 = vpop.permute.xlu0 %3782 }
 0xde9   :  { %5745 = vmatpush3.msra.mxu0 %v6659_v9  ;;  %5783 = vmatprep.subr.mxu1 %v6005_v34 }
 0xdea   :  { %5746 = vmatprep.subr.mxu0 %v6005_v34  ;;  %5784 = vmatpush3.msra.mxu1 %v6665_v10 }
 0xdeb   :  { %5747 = vmatpush3.msra.mxu0 %v6669_v11  ;;  %5785 = vmatprep.subr.mxu1 %v6005_v34 }
 0xdec   :  { %5748 = vmatprep.subr.mxu0 %v6005_v34  ;;  %5786 = vmatpush3.msra.mxu1 %v6675_v12  ;;  %v4171_v43 = vpop.permute.xlu0 %4170 }
 0xded   :  { %5749 = vmatpush3.msra.mxu0 %v6679_v13  ;;  %5787 = vmatprep.subr.mxu1 %v6005_v34 }
 0xdee   :  { %5750 = vmatprep.subr.mxu0 %v6005_v34  ;;  %5788 = vmatpush3.msra.mxu1 %v6685_v14 }
 0xdef   :  { %5751 = vmatpush3.msra.mxu0 %v6689_v15  ;;  %5789 = vmatprep.subr.mxu1 %v6005_v34  ;;  %v4795_v15 = vld [vmem:[%s4704_s26 + $0x4] sm:$0xf] }
 0xdf0   :  { %5752 = vmatprep.subr.mxu0 %v6005_v34  ;;  %5790 = vmatpush3.msra.mxu1 %v6695_v16  ;;  %v643_v16 = vpop.permute.xlu1 %642 }
 0xdf1   :  { %5753 = vmatpush3.msra.mxu0 %v6699_v17  ;;  %5791 = vmatprep.subr.mxu1 %v6005_v34  ;;  %v716_v17 = vadd.f32 %v6435_v32, %v643_v16 }
 0xdf2   :  { %5754 = vmatprep.subr.mxu0 %v6005_v34  ;;  %5792 = vmatpush3.msra.mxu1 %v6705_v18 }
 0xdf3   :  { %5755 = vmatpush3.msra.mxu0 %v6709_v19  ;;  %5793 = vmatprep.subr.mxu1 %v6005_v34  ;;  %v4717_v18 = vmul.f32 -1.442695, %v716_v17 }
 0xdf4   :  { %5756 = vmatprep.subr.mxu0 %v6005_v34  ;;  %5794 = vmatpush3.msra.mxu1 %v6715_v20 }
 0xdf5   :  { %5757 = vmatpush3.msra.mxu0 %v6719_v21  ;;  %5795 = vmatprep.subr.mxu1 %v6005_v34 }
 0xdf6   :  { %5758 = vmatprep.subr.mxu0 %v6005_v34  ;;  %5796 = vmatpush3.msra.mxu1 %v6725_v22  ;;  %v4800_v22 = vld [vmem:[%s4704_s26 + $0x8] sm:$0xf] }
 0xdf7   :  { %5759 = vmatpush3.msra.mxu0 %v6729_v23  ;;  %5797 = vmatprep.subr.mxu1 %v6005_v34 }
 0xdf8   :  { %5760 = vmatprep.subr.mxu0 %v6005_v34  ;;  %5798 = vmatpush3.msra.mxu1 %v6735_v24 }
 0xdf9   :  { %5761 = vmatpush3.msra.mxu0 %v6739_v25  ;;  %5799 = vmatprep.subr.mxu1 %v6005_v34 }
 0xdfa   :  { %5762 = vmatprep.subr.mxu0 %v6005_v34  ;;  %5766 = vmatprep.mubr.msk.f32.mxu0 %vm6006_vm0, %v6005_v34 }
 0xdfb   :  { %5763 = vmatpush3.msra.mxu0 %v6747_v26  ;;  %5800 = vmatpush3.msra.mxu1 %v6751_v27  ;;  %v4183_v27 = vld [vmem:[%s4706_s30] sm:$0xff] }
 0xdfc   :  { %5764 = vmatprep.subr.mxu0 %v6005_v34  ;;  %5809 = vmatprep.subr.mxu1 %v6005_v34 }
 0xdfd   :  { %5765 = vmatpush3.msra.mxu0 %v6757_v28  ;;  %v4184_v28 = vld [vmem:[%s4706_s30 + $0x8] sm:$0xff] }
 0xdfe   :  { %5804 = vmatprep.subr.mxu0 %v6005_v34 }
 0xe96   :  { %v3616_v51 = vpop.f32.mrf.mxu1 }
 0xe98   :  { %v5723_v52 = vpop.f32.mrf.mxu1 }
 0xe9a   :  { %v3766_v53 = vpop.f32.mrf.mxu1 }
 0xe9c   :  { %v5733_v0 = vpop.f32.mrf.mxu1 }
 0xe9d   :  { %v4620_v0 = vpop.permute.xlu0 %4619 }
 0xe9e   :  { %v3692_v1 = vpop.f32.mrf.mxu0 }
 0xe9f   :  { %v3693_v2 = vadd.f32 %v3692_v1, %v3616_v51 }
 0xea0   :  { %v5728_v3 = vpop.f32.mrf.mxu0 }
 0xea1   :  { %v3770_v4 = vadd.f32 %v3766_v53, %v3693_v2 }
 0xea3   :  { %v3771_v5 = vadd.f32 %v3770_v4, %v6819_v63 }
 0xea5   :  { %v3778_v7 = vmul.f32 %v3776_v6, %v3771_v5  ;;  %v6001_v6 = vld [vmem:[%s6194_s13 + $0x8] sm:$0xff] }
 0xea7   :  { %v3785_v9 = vadd.f32 %v3783_v8, %v3778_v7  ;;  %v4615_v8 = vpop.permute.xlu1 %4614 }
 0xea9   :  { %v4794_v10 = vmul.f32 -1.442695, %v3785_v9 }
 0xeab   :  { %5949 = vpow2.f32 %v4794_v10  ;;  %v6002_v10 = vld [vmem:[%s6194_s13] sm:$0xff]  ;;  %s6057_s13 = smov 52  }
 0xeac   :  { %s4709_s20 = sld [smem:[%s7145_s0 + %s6057_s13]]  }
 0xeb8   :  { %v5950_v11 = vpop.eup %5949 }
 0xeb9   :  { %v3789_v12 = vadd.f32 1.0, %v5950_v11 }
 0xebb   :  { %5951 = vrcp.f32 %v3789_v12 }
 0xebc   :  { %5953 = vpow2.f32 %v4717_v18  ;;  %v4629_v18 = vpop.permute.xlu1 %4628 }
 0xec8   :  { %v5952_v13 = vpop.eup %5951 }
 0xec9   :  { %v3792_v14 = vmul.f32 %v5952_v13, %v3785_v9  ;;  %v5954_v19 = vpop.eup %5953 }
 0xeca   :  { %v722_v20 = vadd.f32 1.0, %v5954_v19 }
 0xecb   :  { %5767 = vmatmul.mubr.f32.vlgmr.msra.gmra.mxu0 %v3792_v14  ;;  %5802 = vmatmul.mubr.f32.vlgmr.msra.gmra.mxu1 %v3792_v14 }
 0xecc   :  { %5805 = vmatpush3.msk.msra.mxu0 %vm824_vm3, %v3792_v14  ;;  %5806 = vmatprep.mubr.msk.f32.mxu0 %vm6006_vm0, %v6005_v34  ;;  %5955 = vrcp.f32 %v722_v20 }
 0xecd   :  { %5814 = vmatprep.subr.mxu0 %v6005_v34  ;;  %5811 = vmatprep.mubr.msk.f32.mxu1 %vm6006_vm0, %v6005_v34 }
 0xecf   :  { %5807 = vmatmul.mubr.msk.f32.vlgmr.msra.gmra.mxu0 %vm820_vm4, %v4795_v15  ;;  %v4634_v15 = vpop.permute.xlu0 %4633 }
 0xed0   :  { %5816 = vmatprep.mubr.msk.f32.mxu0 %vm6006_vm0, %v6005_v34  ;;  %v3933_v34 = vld [vmem:[%s4704_s26] sm:$0xf] }
 0xed9   :  { %v5956_v21 = vpop.eup %5955 }
 0xeda   :  { %v725_v24 = vmul.f32 %v5956_v21, %v716_v17 }
 0xf8b   :  { %v3859_v23 = vpop.f32.mrf.mxu0  ;;  %v3929_v32 = vpop.f32.mrf.mxu1 }
 0xf8c   :  { %5810 = vmatpush3.msk.msra.mxu1 %vm824_vm3, %v3859_v23  ;;  %5815 = vmatpush3.msk.msra.mxu0 %vm824_vm3, %v3929_v32 }
 0xf8d   :  { %v5768_v25 = vpop.f32.mrf.mxu0  ;;  %v5803_v26 = vpop.f32.mrf.mxu1  ;;  %5812 = vmatmul.mubr.msk.f32.vlgmr.msra.gmra.mxu1 %vm820_vm4, %v3933_v34  ;;  %5817 = vmatmul.mubr.msk.f32.vlgmr.msra.gmra.mxu0 %vm820_vm4, %v4800_v22 }
 0xf8e   :  { %5819 = vmatprep.subr.msk.mxu1 %vm824_vm3, %v6399_v62  ;;  %5824 = vmatprep.subr.msk.mxu0 %vm824_vm3, %v725_v24 }
 0xf8f   :  { %5820 = vmatpush3.msk.msra.mxu1 %vm824_vm3, %v6399_v62  ;;  %5825 = vmatpush3.msk.msra.mxu0 %vm824_vm3, %v725_v24  ;;  %v4008_v59 = vpop.f32.mrf.mxu0  ;;  %v4181_v62 = vld [vmem:[%s4705_s9] sm:$0xff] }
 0xf90   :  { %5829 = vmatprep.subr.msk.mxu1 %vm824_vm3, %v6819_v63  ;;  %5821 = vmatprep.mubr.msk.f32.mxu1 %vm820_vm4, %v4183_v27 }
 0xf91   :  { %5822 = vmatmul.mubr.msk.f32.vlgmr.msra.gmra.mxu1 %vm820_vm4, %v4184_v28  ;;  %v5808_v60 = vpop.f32.mrf.mxu0  ;;  %5826 = vmatprep.mubr.msk.f32.mxu0 %vm820_vm4, %v4181_v62 }
 0xf92   :  { %5830 = vmatpush3.msk.msra.mxu1 %vm824_vm3, %v6819_v63  ;;  %5831 = vmatprep.mubr.msk.f32.mxu1 %vm820_vm4, %v4350_v58  ;;  %v4525_v63 = vld [vmem:[%s4664_s10] sm:$0xff] }
 0xf93   :  { %5839 = vmatprep.subr.mxu1 %v6317_v39  ;;  %5827 = vmatmul.mubr.msk.f32.vlgmr.msra.gmra.mxu0 %vm820_vm4, %v4182_v33 }
 0xf95   :  { %5832 = vmatmul.mubr.msk.f32.vlgmr.msra.gmra.mxu1 %vm820_vm4, %v4351_v61 }
 0xf96   :  { %5840 = vmatpush3.msra.mxu1 %v6317_v39  ;;  %v4435_v39 = vld [vmem:[%s4708_s17] sm:$0xff]  ;;  %5841 = vmatprep.mubr.msk.f32.mxu1 %vm645_vm2, %v4525_v63 }
 0xf97   :  { %5836 = vmatprep.mubr.msk.f32.mxu0 %vm820_vm4, %v4435_v39 }
 0xf99   :  { %5842 = vmatmul.mubr.msk.f32.vlgmr.msra.gmra.mxu1 %vm645_vm2, %v4526_v35 }
0x104d   :  { %v4084_v36 = vpop.f32.mrf.mxu1  ;;  %v4162_v37 = vpop.f32.mrf.mxu0 }
0x104e   :  { %v4085_v38 = vadd.f32 %v4084_v36, %v4008_v59 }
0x104f   :  { %v5813_v40 = vpop.f32.mrf.mxu1  ;;  %v5818_v41 = vpop.f32.mrf.mxu0 }
0x1050   :  { %v4166_v42 = vadd.f32 %v4162_v37, %v4085_v38 }
0x1051   :  { %v5823_v44 = vpop.f32.mrf.mxu1 }
0x1052   :  { %v4173_v45 = vadd.f32 %v4171_v43, %v4166_v42 }
0x1053   :  { %v4257_v30 = vpop.f32.mrf.mxu1  ;;  %v5828_v31 = vpop.f32.mrf.mxu0 }
0x1054   :  { %v4803_v46 = vmul.f32 -1.442695, %v4173_v45  ;;  %v4347_v56 = vadd.f32 %v5828_v31, %v5823_v44 }
0x1055   :  { %v4341_v54 = vpop.f32.mrf.mxu0  ;;  %v5833_v55 = vpop.f32.mrf.mxu1 }
0x1056   :  { %5957 = vpow2.f32 %v4803_v46  ;;  %v4342_v57 = vadd.f32 %v4341_v54, %v4257_v30  ;;  %v4434_v52 = vadd.f32 %v5833_v55, %v4347_v56 }
0x1057   :  { %v4424_v51 = vpop.f32.mrf.mxu1 }
0x1058   :  { %v4433_v1 = vadd.f32 %v4424_v51, %v4342_v57 }
0x1059   :  { %v5843_v4 = vpop.f32.mrf.mxu1 }
0x105b   :  { %v4599_v12 = vpop.f32.mrf.mxu1 }
0x1063   :  { %v5958_v47 = vpop.eup %5957 }
0x1064   :  { %v4177_v48 = vadd.f32 1.0, %v5958_v47 }
0x1066   :  { %5959 = vrcp.f32 %v4177_v48 }
0x1073   :  { %v5960_v49 = vpop.eup %5959 }
0x1074   :  { %v4180_v50 = vmul.f32 %v5960_v49, %v4173_v45 }
0x1076   :  { %5834 = vmatprep.subr.msk.mxu0 %vm824_vm3, %v4180_v50 }
0x1077   :  { %5835 = vmatpush3.msk.msra.mxu0 %vm824_vm3, %v4180_v50 }
0x1078   :  { %5837 = vmatmul.mubr.msk.f32.vlgmr.msra.gmra.mxu0 %vm820_vm4, %v4436_v29 }
0x1138   :  { %v5838_v53 = vpop.f32.mrf.mxu0 }
0x1139   :  { %v4522_v2 = vadd.f32 %v5838_v53, %v4434_v52 }
0x113a   :  { %v4512_v3 = vpop.f32.mrf.mxu0 }
0x113b   :  { %v4521_v5 = vadd.f32 %v4512_v3, %v4433_v1  ;;  %v4524_v7 = vadd.f32 %v6001_v6, %v4522_v2 }
0x113d   :  { %v4609_v9 = vadd.f32 %v5843_v4, %v4524_v7  ;;  %v4523_v11 = vadd.f32 %v6002_v10, %v4521_v5 }
0x113f   :  { %v4623_v13 = vmul.f32 %v4620_v0, %v4609_v9  ;;  %v4608_v14 = vadd.f32 %v4599_v12, %v4523_v11 }
0x1141   :  { %v4637_v16 = vadd.f32 %v4634_v15, %v4623_v13  ;;  %v4622_v17 = vmul.f32 %v4615_v8, %v4608_v14 }
0x1143   :  { %v4819_v19 = vmul.f32 -1.442695, %v4637_v16  ;;  %v4636_v20 = vadd.f32 %v4629_v18, %v4622_v17 }
0x1145   :  { %5961 = vpow2.f32 %v4819_v19  ;;  %v4818_v21 = vmul.f32 -1.442695, %v4636_v20 }
0x1147   :  { %5963 = vpow2.f32 %v4818_v21 }
0x1152   :  { %v5962_v34 = vpop.eup %5961 }
0x1153   :  { %v4645_v22 = vadd.f32 1.0, %v5962_v34 }
0x1154   :  { %v5964_v23 = vpop.eup %5963 }
0x1155   :  { %5965 = vrcp.f32 %v4645_v22  ;;  %v4644_v32 = vadd.f32 1.0, %v5964_v23 }
0x1157   :  { %5967 = vrcp.f32 %v4644_v32 }
0x1162   :  { %v5966_v24 = vpop.eup %5965 }
0x1163   :  { %v4651_v25 = vmul.f32 %v5966_v24, %v4637_v16 }
0x1164   :  { %v5968_v26 = vpop.eup %5967 }
0x1165   :  { %4653 = vst [vmem:[%s4709_s20 + $0x8] sm:$0xff] %v4651_v25  ;;  %v4650_v27 = vmul.f32 %v5968_v26, %v4636_v20 }
0x1167   :  { %4652 = vst [vmem:[%s4709_s20] sm:$0xff] %v4650_v27 }

</bundles_post_ra>
